<compile_context>
chip_gen: v7x
topology: tpu7x:2x2x1
jax: 0.10.0
libtpu: 0.0.40
codegen_flags: <defaults>
</compile_context>

<pallas_src>
import jax
import jax.numpy as jnp
from jax.experimental import pallas as pl
from jax.experimental.pallas import tpu as pltpu

# ---- model hyper-parameters (consistent with the model_params dict) ----------
VOCAB_SIZE = 50
N_EMBDS = 32          # num_embeddings
BLOCK_SIZE = 16       # max positions
N_HEADS = 4
HEAD_SIZE = N_EMBDS // N_HEADS
N_LAYERS = 2
NUM_CLASSES = 5       # output_classes
DROPOUT = 0.0         # eval-mode -> identity
LN_EPS = 1e-5
LANE = 128            # lane-padded width for packed small params / logits

# rows of the packed per-layer small-parameter block (8, LANE)
ROW_LN1_W, ROW_LN1_B, ROW_LN2_W, ROW_LN2_B, ROW_BP, ROW_B2, ROW_B1 = range(7)
# rows of the packed classifier-head slab (8 + C, LANE); classifier W starts at row 8
ROW_LNF_W, ROW_LNF_B, ROW_BC = range(3)
HEAD_W_ROW = 8

# column offsets inside the packed per-layer (C, 8C) weight block:
#   [ w_qkv (3C) | w_proj (C) | w_ff1 (4C) ]
COL_QKV = 0
COL_PROJ = 3 * N_EMBDS
COL_FF1 = 4 * N_EMBDS


def _layernorm(h, w, b):
    mu = jnp.mean(h, axis=-1, keepdims=True)
    xc = h - mu
    var = jnp.mean(xc * xc, axis=-1, keepdims=True)
    return xc * jax.lax.rsqrt(var + LN_EPS) * w + b


# --------------------------- single fused kernel ------------------------------
def gpt_decoder_kernel(x_ref, wbig_ref, wff2_ref, vecs_ref, head_ref, out_ref):
    Bc, T, C = x_ref.shape
    NH, hs = N_HEADS, HEAD_SIZE
    scale = hs ** -0.5

    # flatten batch chunk into the GEMM M dimension
    x2 = x_ref[...].astype(jnp.float32).reshape(Bc * T, C)            # (Bc*T, C)

    def to_heads(m):  # (Bc*T, NH*hs), head-major columns -> (Bc*NH, T, hs)
        m4 = m.reshape(Bc, T, NH, hs)
        return jnp.transpose(m4, (0, 2, 1, 3)).reshape(Bc * NH, T, hs)

    for layer in range(N_LAYERS):                                     # static unroll
        vec = vecs_ref[layer]                                         # (8, LANE) f32
        ln1_w = vec[ROW_LN1_W:ROW_LN1_W + 1, :C]
        ln1_b = vec[ROW_LN1_B:ROW_LN1_B + 1, :C]
        ln2_w = vec[ROW_LN2_W:ROW_LN2_W + 1, :C]
        ln2_b = vec[ROW_LN2_B:ROW_LN2_B + 1, :C]
        bp = vec[ROW_BP:ROW_BP + 1, :C]
        b2 = vec[ROW_B2:ROW_B2 + 1, :C]
        b1 = vec[ROW_B1:ROW_B1 + 1, :]                                # (1, 4C)

        wbig = wbig_ref[layer]                                        # (C, 8C) bf16
        w_qkv = wbig[:, COL_QKV:COL_QKV + 3 * C]                      # (C, 3C)
        w_pr = wbig[:, COL_PROJ:COL_PROJ + C]                         # (C, C)
        w_f1 = wbig[:, COL_FF1:COL_FF1 + 4 * C]                       # (C, 4C)
        w_f2 = wff2_ref[layer]                                        # (4C, C) bf16

        # ---- multi-head self-attention branch (pre-LN), fused QKV GEMM ----
        h = _layernorm(x2, ln1_w, ln1_b)                              # (Bc*T, C) f32
        qkv = jnp.dot(h.astype(jnp.bfloat16), w_qkv,
                      preferred_element_type=jnp.float32)             # (Bc*T, 3C) f32

        # one head-batched layout (no per-head lane slices, no K=8 dots)
        q = to_heads(qkv[:, 0:C]).astype(jnp.bfloat16)                # (Bc*NH, T, hs)
        k = to_heads(qkv[:, C:2 * C]).astype(jnp.bfloat16)
        v = to_heads(qkv[:, 2 * C:3 * C]).astype(jnp.bfloat16)

        s = jnp.einsum('btd,bsd->bts', q, k,
                       preferred_element_type=jnp.float32) * scale    # (Bc*NH, T, T)
        # TODO(synk): optional attention `mask` argument not implemented (mask=None path)
        s = s - jnp.max(s, axis=-1, keepdims=True)
        p = jnp.exp(s)
        p = p / jnp.sum(p, axis=-1, keepdims=True)                    # exact softmax

        ctx = jnp.einsum('bts,bsd->btd', p.astype(jnp.bfloat16), v,
                         preferred_element_type=jnp.float32)          # (Bc*NH, T, hs)
        ctx = jnp.transpose(ctx.reshape(Bc, NH, T, hs),
                            (0, 2, 1, 3)).reshape(Bc * T, C)          # head-concat layout
        attn = jnp.dot(ctx.astype(jnp.bfloat16), w_pr,
                       preferred_element_type=jnp.float32)            # single proj GEMM
        x2 = x2 + attn + bp                                           # residual

        # ---- feed-forward branch (pre-LN) ----
        h2 = _layernorm(x2, ln2_w, ln2_b)
        f = jnp.dot(h2.astype(jnp.bfloat16), w_f1,
                    preferred_element_type=jnp.float32) + b1          # (Bc*T, 4C)
        f = jnp.maximum(f, 0.0)                                       # ReLU
        x2 = x2 + jnp.dot(f.astype(jnp.bfloat16), w_f2,
                          preferred_element_type=jnp.float32) + b2    # residual

    # ---- final LN -> mean-pool over T (sublane reduction) -> classifier ----
    head = head_ref[...]                                              # (8+C, LANE) f32
    lnf_w = head[ROW_LNF_W:ROW_LNF_W + 1, :C]
    lnf_b = head[ROW_LNF_B:ROW_LNF_B + 1, :C]
    bcls = head[ROW_BC:ROW_BC + 1, :]                                 # (1, LANE)
    wc = head[HEAD_W_ROW:HEAD_W_ROW + C, :]                           # (C, LANE)

    hf = _layernorm(x2, lnf_w, lnf_b)                                 # (Bc*T, C)
    pooled = jnp.mean(hf.reshape(Bc, T, C), axis=1)                   # (Bc, C)
    logits = jnp.dot(pooled, wc, preferred_element_type=jnp.float32) + bcls   # (Bc, LANE)
    out_ref[...] = logits.astype(out_ref.dtype)


# ------------------------------- forward pass ----------------------------------
def gpt_decoder_forward(params, idx):
    B, T = idx.shape
    C = N_EMBDS
    # embedding gathers are glue (plain JAX); the fused kernel does dense compute
    tok = jnp.take(params["tok_emb"], idx, axis=0)                    # (B, T, C)
    pos = params["pos_emb"][:T][None, :, :]                           # (1, T, C)
    x = (tok + pos).astype(jnp.float32)

    # Generation-aware batch split: default to a single grid step (v5e/v6e are
    # single-TensorCore, and at tiny B*T the extra step/DMA overhead beats any
    # v7x 2-TC gain). Only split when each chunk has >=128 rows and bc % 8 == 0.
    split_ok = (B % 2 == 0) and ((B // 2) % 8 == 0) and ((B // 2) * T >= 128)
    nb = 2 if split_ok else 1
    bc = B // nb

    def wspec(shape, index_map):
        # weights never change across grid steps -> single-buffer them when grid > 1
        if nb > 1:
            return pl.BlockSpec(shape, index_map, pipeline_mode=pl.Buffered(1))
        return pl.BlockSpec(shape, index_map)

    # NOTE: on v7x (64 MiB VMEM) re-derive vmem_limit_bytes if chunk sizes grow;
    # at these shapes total VMEM use is well under the scoped default.
    logits_pad = pl.pallas_call(
        gpt_decoder_kernel,
        out_shape=jax.ShapeDtypeStruct((B, LANE), jnp.float32),
        grid=(nb,),
        in_specs=[
            pl.BlockSpec((bc, T, C), lambda b: (b, 0, 0)),            # x
            wspec((N_LAYERS, C, 8 * C), lambda b: (0, 0, 0)),         # [qkv|proj|ff1] bf16
            wspec((N_LAYERS, 4 * C, C), lambda b: (0, 0, 0)),         # ff2 bf16
            wspec((N_LAYERS, 8, LANE), lambda b: (0, 0, 0)),          # packed LN/bias f32
            wspec((8 + C, LANE), lambda b: (0, 0)),                   # head LN/bias + classifier W
        ],
        out_specs=pl.BlockSpec((bc, LANE), lambda b: (b, 0)),
        compiler_params=pltpu.CompilerParams(dimension_semantics=("parallel",)),
    )(x, params["w_big"], params["w_ff2"], params["vecs"], params["head_slab"])

    return logits_pad[:, :NUM_CLASSES]                                # (B, num_classes)


# ------------------------------ parameter init ---------------------------------
def _pad_row(v, width=LANE):
    out = jnp.zeros((width,), jnp.float32)
    return out.at[: v.shape[0]].set(v.astype(jnp.float32))


def init_params(key):
    std = 0.02
    C = N_EMBDS
    ks = iter(jax.random.split(key, 4 + N_LAYERS * 8))
    nxt = lambda: next(ks)

    tok_emb = jax.random.normal(nxt(), (VOCAB_SIZE, C), jnp.float32) * std
    pos_emb = jax.random.normal(nxt(), (BLOCK_SIZE, C), jnp.float32) * std

    w_big, w_ff2, vecs = [], [], []
    for _ in range(N_LAYERS):
        # per-head Q/K/V weights stored (in, head_size) (== torch Linear weight.T)
        wq = jax.random.normal(nxt(), (N_HEADS, C, HEAD_SIZE), jnp.float32) * std
        wk = jax.random.normal(nxt(), (N_HEADS, C, HEAD_SIZE), jnp.float32) * std
        wv = jax.random.normal(nxt(), (N_HEADS, C, HEAD_SIZE), jnp.float32) * std
        # fuse into columns [q_h0..q_h3 | k_h0..k_h3 | v_h0..v_h3] -> (C, 3C)
        to_cols = lambda w: jnp.transpose(w, (1, 0, 2)).reshape(C, C)
        w_qkv = jnp.concatenate([to_cols(wq), to_cols(wk), to_cols(wv)], axis=-1)
        w_proj = jax.random.normal(nxt(), (C, C), jnp.float32) * std
        w_ff1 = jax.random.normal(nxt(), (C, 4 * C), jnp.float32) * std
        w_big.append(jnp.concatenate([w_qkv, w_proj, w_ff1], axis=-1))   # (C, 8C)
        w_ff2.append(jax.random.normal(nxt(), (4 * C, C), jnp.float32) * std)

        ln1_w = jnp.ones((C,), jnp.float32); ln1_b = jnp.zeros((C,), jnp.float32)
        ln2_w = jnp.ones((C,), jnp.float32); ln2_b = jnp.zeros((C,), jnp.float32)
        bp = jnp.zeros((C,), jnp.float32)
        b1 = jnp.zeros((4 * C,), jnp.float32)
        b2 = jnp.zeros((C,), jnp.float32)
        vecs.append(jnp.stack([_pad_row(ln1_w), _pad_row(ln1_b),
                               _pad_row(ln2_w), _pad_row(ln2_b),
                               _pad_row(bp), _pad_row(b2), _pad_row(b1),
                               jnp.zeros((LANE,), jnp.float32)]))        # (8, 128)

    wc = jax.random.normal(nxt(), (C, NUM_CLASSES), jnp.float32) * std
    wc_pad = jnp.zeros((C, LANE), jnp.float32).at[:, :NUM_CLASSES].set(wc)
    lnf_w = jnp.ones((C,), jnp.float32)
    lnf_b = jnp.zeros((C,), jnp.float32)
    bcls = jnp.zeros((NUM_CLASSES,), jnp.float32)
    head_rows = jnp.stack([_pad_row(lnf_w), _pad_row(lnf_b), _pad_row(bcls)]
                          + [jnp.zeros((LANE,), jnp.float32)] * 5)        # (8, 128)
    head_slab = jnp.concatenate([head_rows, wc_pad], axis=0)              # (8+C, 128)

    return {
        "tok_emb": tok_emb,
        "pos_emb": pos_emb,
        "w_big": jnp.stack(w_big).astype(jnp.bfloat16),   # (L, C, 8C)
        "w_ff2": jnp.stack(w_ff2).astype(jnp.bfloat16),   # (L, 4C, C)
        "vecs": jnp.stack(vecs),                          # (L, 8, 128) f32
        "head_slab": head_slab,                           # (8+C, 128) f32
    }


if __name__ == "__main__":
    key = jax.random.PRNGKey(0)
    pkey, ikey = jax.random.split(key)
    params = init_params(pkey)

    B, T = 2, 8
    idx = jax.random.randint(ikey, (B, T), 0, VOCAB_SIZE, dtype=jnp.int32)

    fwd = jax.jit(gpt_decoder_forward)
    logits = jax.block_until_ready(fwd(params, idx))

    assert logits.shape == (B, NUM_CLASSES)
    assert bool(jnp.all(jnp.isfinite(logits)))
    print("KERNEL_OK")
</pallas_src>

<mosaic_0001>
module attributes {stable_mosaic.version = 11 : i64} {
  func.func @gpt_decoder_kernel(%arg0: i32, %arg1: memref<2x8x32xf32, #tpu.memory_space<vmem>>, %arg2: memref<2x32x256xbf16, #tpu.memory_space<vmem>>, %arg3: memref<2x128x32xbf16, #tpu.memory_space<vmem>>, %arg4: memref<2x8x128xf32, #tpu.memory_space<vmem>>, %arg5: memref<40x128xf32, #tpu.memory_space<vmem>>, %arg6: memref<2x128xf32, #tpu.memory_space<vmem>>) attributes {dimension_semantics = [#tpu.dimension_semantics<parallel>], iteration_bounds = array<i64: 1>, scalar_prefetch = 0 : i64, scratch_operands = 0 : i64, tpu.core_type = #tpu.core_type<tc>, window_params = [{transform_indices = @transform_0, window_bounds = array<i64: 2, 8, 32>}, {pipeline_mode = #tpu.pipeline_mode<synchronous>, transform_indices = @transform_1, window_bounds = array<i64: 2, 32, 256>}, {pipeline_mode = #tpu.pipeline_mode<synchronous>, transform_indices = @transform_2, window_bounds = array<i64: 2, 128, 32>}, {pipeline_mode = #tpu.pipeline_mode<synchronous>, transform_indices = @transform_3, window_bounds = array<i64: 2, 8, 128>}, {pipeline_mode = #tpu.pipeline_mode<synchronous>, transform_indices = @transform_4, window_bounds = array<i64: 40, 128>}, {transform_indices = @transform_5, window_bounds = array<i64: 2, 128>}]} {
    %c0 = arith.constant 0 : index
    %c0_0 = arith.constant 0 : index
    %c0_1 = arith.constant 0 : index
    %0 = vector.load %arg1[%c0, %c0_0, %c0_1] : memref<2x8x32xf32, #tpu.memory_space<vmem>>, vector<2x8x32xf32>
    %1 = vector.shape_cast %0 : vector<2x8x32xf32> to vector<16x32xf32>
    %c0_2 = arith.constant 0 : index
    %c0_3 = arith.constant 0 : index
    %c0_4 = arith.constant 0 : index
    %2 = vector.load %arg4[%c0_2, %c0_3, %c0_4] : memref<2x8x128xf32, #tpu.memory_space<vmem>>, vector<1x8x128xf32>
    %3 = vector.shape_cast %2 : vector<1x8x128xf32> to vector<8x128xf32>
    %4 = vector.extract_strided_slice %3 {offsets = [0, 0], sizes = [1, 32], strides = [1, 1]} : vector<8x128xf32> to vector<1x32xf32>
    %5 = vector.extract_strided_slice %3 {offsets = [1, 0], sizes = [1, 32], strides = [1, 1]} : vector<8x128xf32> to vector<1x32xf32>
    %6 = vector.extract_strided_slice %3 {offsets = [2, 0], sizes = [1, 32], strides = [1, 1]} : vector<8x128xf32> to vector<1x32xf32>
    %7 = vector.extract_strided_slice %3 {offsets = [3, 0], sizes = [1, 32], strides = [1, 1]} : vector<8x128xf32> to vector<1x32xf32>
    %8 = vector.extract_strided_slice %3 {offsets = [4, 0], sizes = [1, 32], strides = [1, 1]} : vector<8x128xf32> to vector<1x32xf32>
    %9 = vector.extract_strided_slice %3 {offsets = [5, 0], sizes = [1, 32], strides = [1, 1]} : vector<8x128xf32> to vector<1x32xf32>
    %10 = vector.extract_strided_slice %3 {offsets = [6, 0], sizes = [1, 128], strides = [1, 1]} : vector<8x128xf32> to vector<1x128xf32>
    %c0_5 = arith.constant 0 : index
    %c0_6 = arith.constant 0 : index
    %c0_7 = arith.constant 0 : index
    %11 = vector.load %arg2[%c0_5, %c0_6, %c0_7] : memref<2x32x256xbf16, #tpu.memory_space<vmem>>, vector<1x32x256xbf16>
    %12 = vector.shape_cast %11 : vector<1x32x256xbf16> to vector<32x256xbf16>
    %13 = vector.extract_strided_slice %12 {offsets = [0, 0], sizes = [32, 96], strides = [1, 1]} : vector<32x256xbf16> to vector<32x96xbf16>
    %14 = vector.extract_strided_slice %12 {offsets = [0, 96], sizes = [32, 32], strides = [1, 1]} : vector<32x256xbf16> to vector<32x32xbf16>
    %15 = vector.extract_strided_slice %12 {offsets = [0, 128], sizes = [32, 128], strides = [1, 1]} : vector<32x256xbf16> to vector<32x128xbf16>
    %c0_8 = arith.constant 0 : index
    %c0_9 = arith.constant 0 : index
    %c0_10 = arith.constant 0 : index
    %16 = vector.load %arg3[%c0_8, %c0_9, %c0_10] : memref<2x128x32xbf16, #tpu.memory_space<vmem>>, vector<1x128x32xbf16>
    %17 = vector.shape_cast %16 : vector<1x128x32xbf16> to vector<128x32xbf16>
    %cst = arith.constant dense<0.000000e+00> : vector<16xf32>
    %18 = vector.multi_reduction <add>, %1, %cst [1] : vector<16x32xf32> to vector<16xf32>
    %19 = vector.shape_cast %18 : vector<16xf32> to vector<16x1xf32>
    %cst_11 = arith.constant 3.200000e+01 : f32
    %20 = vector.broadcast %cst_11 : f32 to vector<16x1xf32>
    %21 = arith.divf %19, %20 : vector<16x1xf32>
    %22 = vector.broadcast %21 : vector<16x1xf32> to vector<16x32xf32>
    %23 = arith.subf %1, %22 : vector<16x32xf32>
    %24 = arith.mulf %23, %23 : vector<16x32xf32>
    %cst_12 = arith.constant dense<0.000000e+00> : vector<16xf32>
    %25 = vector.multi_reduction <add>, %24, %cst_12 [1] : vector<16x32xf32> to vector<16xf32>
    %26 = vector.shape_cast %25 : vector<16xf32> to vector<16x1xf32>
    %cst_13 = arith.constant 3.200000e+01 : f32
    %27 = vector.broadcast %cst_13 : f32 to vector<16x1xf32>
    %28 = arith.divf %26, %27 : vector<16x1xf32>
    %cst_14 = arith.constant 9.99999974E-6 : f32
    %29 = vector.broadcast %cst_14 : f32 to vector<16x1xf32>
    %30 = arith.addf %28, %29 : vector<16x1xf32>
    %31 = math.rsqrt %30 : vector<16x1xf32>
    %32 = vector.broadcast %31 : vector<16x1xf32> to vector<16x32xf32>
    %33 = arith.mulf %23, %32 : vector<16x32xf32>
    %34 = vector.broadcast %4 : vector<1x32xf32> to vector<16x32xf32>
    %35 = arith.mulf %33, %34 : vector<16x32xf32>
    %36 = vector.broadcast %5 : vector<1x32xf32> to vector<16x32xf32>
    %37 = arith.addf %35, %36 : vector<16x32xf32>
    %38 = arith.truncf %37 : vector<16x32xf32> to vector<16x32xbf16>
    %cst_15 = arith.constant dense<0.000000e+00> : vector<16x96xf32>
    %39 = tpu.matmul %38, %13, %cst_15 {dimension_numbers = #tpu.dot_dimension_numbers<[1], [0], [0], [1], [0, 0, 1, 1], [], []>} : vector<16x32xbf16>, vector<32x96xbf16>, vector<16x96xf32> -> vector<16x96xf32>
    %40 = vector.extract_strided_slice %39 {offsets = [0, 0], sizes = [16, 32], strides = [1, 1]} : vector<16x96xf32> to vector<16x32xf32>
    %41 = vector.shape_cast %40 : vector<16x32xf32> to vector<2x8x4x8xf32>
    %42 = tpu.transpose %41, [0, 2, 1, 3] : vector<2x8x4x8xf32> -> vector<2x4x8x8xf32>
    %43 = vector.shape_cast %42 : vector<2x4x8x8xf32> to vector<8x8x8xf32>
    %44 = arith.truncf %43 : vector<8x8x8xf32> to vector<8x8x8xbf16>
    %45 = vector.extract_strided_slice %39 {offsets = [0, 32], sizes = [16, 32], strides = [1, 1]} : vector<16x96xf32> to vector<16x32xf32>
    %46 = vector.shape_cast %45 : vector<16x32xf32> to vector<2x8x4x8xf32>
    %47 = tpu.transpose %46, [0, 2, 1, 3] : vector<2x8x4x8xf32> -> vector<2x4x8x8xf32>
    %48 = vector.shape_cast %47 : vector<2x4x8x8xf32> to vector<8x8x8xf32>
    %49 = arith.truncf %48 : vector<8x8x8xf32> to vector<8x8x8xbf16>
    %50 = vector.extract_strided_slice %39 {offsets = [0, 64], sizes = [16, 32], strides = [1, 1]} : vector<16x96xf32> to vector<16x32xf32>
    %51 = vector.shape_cast %50 : vector<16x32xf32> to vector<2x8x4x8xf32>
    %52 = tpu.transpose %51, [0, 2, 1, 3] : vector<2x8x4x8xf32> -> vector<2x4x8x8xf32>
    %53 = vector.shape_cast %52 : vector<2x4x8x8xf32> to vector<8x8x8xf32>
    %54 = arith.truncf %53 : vector<8x8x8xf32> to vector<8x8x8xbf16>
    "tpu.trace_start"() <{level = 10 : i32, message = "btd,bsd->bts"}> : () -> ()
    %cst_16 = arith.constant dense<0.000000e+00> : vector<8x8x8xf32>
    %55 = tpu.matmul %44, %49, %cst_16 {dimension_numbers = #tpu.dot_dimension_numbers<[2], [2], [1], [1], [0, 0, 0, 1, 1, 1], [0], [0]>} : vector<8x8x8xbf16>, vector<8x8x8xbf16>, vector<8x8x8xf32> -> vector<8x8x8xf32>
    "tpu.trace_stop"() : () -> ()
    %cst_17 = arith.constant 0.353553385 : f32
    %56 = vector.broadcast %cst_17 : f32 to vector<8x8x8xf32>
    %57 = arith.mulf %55, %56 : vector<8x8x8xf32>
    %cst_18 = arith.constant dense<0xFF800000> : vector<8x8xf32>
    %58 = vector.multi_reduction <maximumf>, %57, %cst_18 [2] : vector<8x8x8xf32> to vector<8x8xf32>
    %59 = vector.shape_cast %58 : vector<8x8xf32> to vector<8x8x1xf32>
    %60 = vector.broadcast %59 : vector<8x8x1xf32> to vector<8x8x8xf32>
    %61 = arith.subf %57, %60 : vector<8x8x8xf32>
    %62 = math.exp %61 : vector<8x8x8xf32>
    %cst_19 = arith.constant dense<0.000000e+00> : vector<8x8xf32>
    %63 = vector.multi_reduction <add>, %62, %cst_19 [2] : vector<8x8x8xf32> to vector<8x8xf32>
    %64 = vector.shape_cast %63 : vector<8x8xf32> to vector<8x8x1xf32>
    %65 = vector.broadcast %64 : vector<8x8x1xf32> to vector<8x8x8xf32>
    %66 = arith.divf %62, %65 : vector<8x8x8xf32>
    %67 = arith.truncf %66 : vector<8x8x8xf32> to vector<8x8x8xbf16>
    "tpu.trace_start"() <{level = 10 : i32, message = "bts,bsd->btd"}> : () -> ()
    %cst_20 = arith.constant dense<0.000000e+00> : vector<8x8x8xf32>
    %68 = tpu.matmul %67, %54, %cst_20 {dimension_numbers = #tpu.dot_dimension_numbers<[2], [1], [1], [2], [0, 0, 0, 1, 1, 2], [0], [0]>} : vector<8x8x8xbf16>, vector<8x8x8xbf16>, vector<8x8x8xf32> -> vector<8x8x8xf32>
    "tpu.trace_stop"() : () -> ()
    %69 = vector.shape_cast %68 : vector<8x8x8xf32> to vector<2x4x8x8xf32>
    %70 = tpu.transpose %69, [0, 2, 1, 3] : vector<2x4x8x8xf32> -> vector<2x8x4x8xf32>
    %71 = vector.shape_cast %70 : vector<2x8x4x8xf32> to vector<16x32xf32>
    %72 = arith.truncf %71 : vector<16x32xf32> to vector<16x32xbf16>
    %cst_21 = arith.constant dense<0.000000e+00> : vector<16x32xf32>
    %73 = tpu.matmul %72, %14, %cst_21 {dimension_numbers = #tpu.dot_dimension_numbers<[1], [0], [0], [1], [0, 0, 1, 1], [], []>} : vector<16x32xbf16>, vector<32x32xbf16>, vector<16x32xf32> -> vector<16x32xf32>
    %74 = arith.addf %1, %73 : vector<16x32xf32>
    %75 = vector.broadcast %8 : vector<1x32xf32> to vector<16x32xf32>
    %76 = arith.addf %74, %75 : vector<16x32xf32>
    %cst_22 = arith.constant dense<0.000000e+00> : vector<16xf32>
    %77 = vector.multi_reduction <add>, %76, %cst_22 [1] : vector<16x32xf32> to vector<16xf32>
    %78 = vector.shape_cast %77 : vector<16xf32> to vector<16x1xf32>
    %cst_23 = arith.constant 3.200000e+01 : f32
    %79 = vector.broadcast %cst_23 : f32 to vector<16x1xf32>
    %80 = arith.divf %78, %79 : vector<16x1xf32>
    %81 = vector.broadcast %80 : vector<16x1xf32> to vector<16x32xf32>
    %82 = arith.subf %76, %81 : vector<16x32xf32>
    %83 = arith.mulf %82, %82 : vector<16x32xf32>
    %cst_24 = arith.constant dense<0.000000e+00> : vector<16xf32>
    %84 = vector.multi_reduction <add>, %83, %cst_24 [1] : vector<16x32xf32> to vector<16xf32>
    %85 = vector.shape_cast %84 : vector<16xf32> to vector<16x1xf32>
    %cst_25 = arith.constant 3.200000e+01 : f32
    %86 = vector.broadcast %cst_25 : f32 to vector<16x1xf32>
    %87 = arith.divf %85, %86 : vector<16x1xf32>
    %cst_26 = arith.constant 9.99999974E-6 : f32
    %88 = vector.broadcast %cst_26 : f32 to vector<16x1xf32>
    %89 = arith.addf %87, %88 : vector<16x1xf32>
    %90 = math.rsqrt %89 : vector<16x1xf32>
    %91 = vector.broadcast %90 : vector<16x1xf32> to vector<16x32xf32>
    %92 = arith.mulf %82, %91 : vector<16x32xf32>
    %93 = vector.broadcast %6 : vector<1x32xf32> to vector<16x32xf32>
    %94 = arith.mulf %92, %93 : vector<16x32xf32>
    %95 = vector.broadcast %7 : vector<1x32xf32> to vector<16x32xf32>
    %96 = arith.addf %94, %95 : vector<16x32xf32>
    %97 = arith.truncf %96 : vector<16x32xf32> to vector<16x32xbf16>
    %cst_27 = arith.constant dense<0.000000e+00> : vector<16x128xf32>
    %98 = tpu.matmul %97, %15, %cst_27 {dimension_numbers = #tpu.dot_dimension_numbers<[1], [0], [0], [1], [0, 0, 1, 1], [], []>} : vector<16x32xbf16>, vector<32x128xbf16>, vector<16x128xf32> -> vector<16x128xf32>
    %99 = vector.broadcast %10 : vector<1x128xf32> to vector<16x128xf32>
    %100 = arith.addf %98, %99 : vector<16x128xf32>
    %cst_28 = arith.constant 0.000000e+00 : f32
    %101 = vector.broadcast %cst_28 : f32 to vector<16x128xf32>
    %102 = arith.maximumf %100, %101 : vector<16x128xf32>
    %103 = arith.truncf %102 : vector<16x128xf32> to vector<16x128xbf16>
    %cst_29 = arith.constant dense<0.000000e+00> : vector<16x32xf32>
    %104 = tpu.matmul %103, %17, %cst_29 {dimension_numbers = #tpu.dot_dimension_numbers<[1], [0], [0], [1], [0, 0, 1, 1], [], []>} : vector<16x128xbf16>, vector<128x32xbf16>, vector<16x32xf32> -> vector<16x32xf32>
    %105 = arith.addf %76, %104 : vector<16x32xf32>
    %106 = vector.broadcast %9 : vector<1x32xf32> to vector<16x32xf32>
    %107 = arith.addf %105, %106 : vector<16x32xf32>
    %c1 = arith.constant 1 : index
    %c0_30 = arith.constant 0 : index
    %c0_31 = arith.constant 0 : index
    %108 = vector.load %arg4[%c1, %c0_30, %c0_31] : memref<2x8x128xf32, #tpu.memory_space<vmem>>, vector<1x8x128xf32>
    %109 = vector.shape_cast %108 : vector<1x8x128xf32> to vector<8x128xf32>
    %110 = vector.extract_strided_slice %109 {offsets = [0, 0], sizes = [1, 32], strides = [1, 1]} : vector<8x128xf32> to vector<1x32xf32>
    %111 = vector.extract_strided_slice %109 {offsets = [1, 0], sizes = [1, 32], strides = [1, 1]} : vector<8x128xf32> to vector<1x32xf32>
    %112 = vector.extract_strided_slice %109 {offsets = [2, 0], sizes = [1, 32], strides = [1, 1]} : vector<8x128xf32> to vector<1x32xf32>
    %113 = vector.extract_strided_slice %109 {offsets = [3, 0], sizes = [1, 32], strides = [1, 1]} : vector<8x128xf32> to vector<1x32xf32>
    %114 = vector.extract_strided_slice %109 {offsets = [4, 0], sizes = [1, 32], strides = [1, 1]} : vector<8x128xf32> to vector<1x32xf32>
    %115 = vector.extract_strided_slice %109 {offsets = [5, 0], sizes = [1, 32], strides = [1, 1]} : vector<8x128xf32> to vector<1x32xf32>
    %116 = vector.extract_strided_slice %109 {offsets = [6, 0], sizes = [1, 128], strides = [1, 1]} : vector<8x128xf32> to vector<1x128xf32>
    %c1_32 = arith.constant 1 : index
    %c0_33 = arith.constant 0 : index
    %c0_34 = arith.constant 0 : index
    %117 = vector.load %arg2[%c1_32, %c0_33, %c0_34] : memref<2x32x256xbf16, #tpu.memory_space<vmem>>, vector<1x32x256xbf16>
    %118 = vector.shape_cast %117 : vector<1x32x256xbf16> to vector<32x256xbf16>
    %119 = vector.extract_strided_slice %118 {offsets = [0, 0], sizes = [32, 96], strides = [1, 1]} : vector<32x256xbf16> to vector<32x96xbf16>
    %120 = vector.extract_strided_slice %118 {offsets = [0, 96], sizes = [32, 32], strides = [1, 1]} : vector<32x256xbf16> to vector<32x32xbf16>
    %121 = vector.extract_strided_slice %118 {offsets = [0, 128], sizes = [32, 128], strides = [1, 1]} : vector<32x256xbf16> to vector<32x128xbf16>
    %c1_35 = arith.constant 1 : index
    %c0_36 = arith.constant 0 : index
    %c0_37 = arith.constant 0 : index
    %122 = vector.load %arg3[%c1_35, %c0_36, %c0_37] : memref<2x128x32xbf16, #tpu.memory_space<vmem>>, vector<1x128x32xbf16>
    %123 = vector.shape_cast %122 : vector<1x128x32xbf16> to vector<128x32xbf16>
    %cst_38 = arith.constant dense<0.000000e+00> : vector<16xf32>
    %124 = vector.multi_reduction <add>, %107, %cst_38 [1] : vector<16x32xf32> to vector<16xf32>
    %125 = vector.shape_cast %124 : vector<16xf32> to vector<16x1xf32>
    %cst_39 = arith.constant 3.200000e+01 : f32
    %126 = vector.broadcast %cst_39 : f32 to vector<16x1xf32>
    %127 = arith.divf %125, %126 : vector<16x1xf32>
    %128 = vector.broadcast %127 : vector<16x1xf32> to vector<16x32xf32>
    %129 = arith.subf %107, %128 : vector<16x32xf32>
    %130 = arith.mulf %129, %129 : vector<16x32xf32>
    %cst_40 = arith.constant dense<0.000000e+00> : vector<16xf32>
    %131 = vector.multi_reduction <add>, %130, %cst_40 [1] : vector<16x32xf32> to vector<16xf32>
    %132 = vector.shape_cast %131 : vector<16xf32> to vector<16x1xf32>
    %cst_41 = arith.constant 3.200000e+01 : f32
    %133 = vector.broadcast %cst_41 : f32 to vector<16x1xf32>
    %134 = arith.divf %132, %133 : vector<16x1xf32>
    %cst_42 = arith.constant 9.99999974E-6 : f32
    %135 = vector.broadcast %cst_42 : f32 to vector<16x1xf32>
    %136 = arith.addf %134, %135 : vector<16x1xf32>
    %137 = math.rsqrt %136 : vector<16x1xf32>
    %138 = vector.broadcast %137 : vector<16x1xf32> to vector<16x32xf32>
    %139 = arith.mulf %129, %138 : vector<16x32xf32>
    %140 = vector.broadcast %110 : vector<1x32xf32> to vector<16x32xf32>
    %141 = arith.mulf %139, %140 : vector<16x32xf32>
    %142 = vector.broadcast %111 : vector<1x32xf32> to vector<16x32xf32>
    %143 = arith.addf %141, %142 : vector<16x32xf32>
    %144 = arith.truncf %143 : vector<16x32xf32> to vector<16x32xbf16>
    %cst_43 = arith.constant dense<0.000000e+00> : vector<16x96xf32>
    %145 = tpu.matmul %144, %119, %cst_43 {dimension_numbers = #tpu.dot_dimension_numbers<[1], [0], [0], [1], [0, 0, 1, 1], [], []>} : vector<16x32xbf16>, vector<32x96xbf16>, vector<16x96xf32> -> vector<16x96xf32>
    %146 = vector.extract_strided_slice %145 {offsets = [0, 0], sizes = [16, 32], strides = [1, 1]} : vector<16x96xf32> to vector<16x32xf32>
    %147 = vector.shape_cast %146 : vector<16x32xf32> to vector<2x8x4x8xf32>
    %148 = tpu.transpose %147, [0, 2, 1, 3] : vector<2x8x4x8xf32> -> vector<2x4x8x8xf32>
    %149 = vector.shape_cast %148 : vector<2x4x8x8xf32> to vector<8x8x8xf32>
    %150 = arith.truncf %149 : vector<8x8x8xf32> to vector<8x8x8xbf16>
    %151 = vector.extract_strided_slice %145 {offsets = [0, 32], sizes = [16, 32], strides = [1, 1]} : vector<16x96xf32> to vector<16x32xf32>
    %152 = vector.shape_cast %151 : vector<16x32xf32> to vector<2x8x4x8xf32>
    %153 = tpu.transpose %152, [0, 2, 1, 3] : vector<2x8x4x8xf32> -> vector<2x4x8x8xf32>
    %154 = vector.shape_cast %153 : vector<2x4x8x8xf32> to vector<8x8x8xf32>
    %155 = arith.truncf %154 : vector<8x8x8xf32> to vector<8x8x8xbf16>
    %156 = vector.extract_strided_slice %145 {offsets = [0, 64], sizes = [16, 32], strides = [1, 1]} : vector<16x96xf32> to vector<16x32xf32>
    %157 = vector.shape_cast %156 : vector<16x32xf32> to vector<2x8x4x8xf32>
    %158 = tpu.transpose %157, [0, 2, 1, 3] : vector<2x8x4x8xf32> -> vector<2x4x8x8xf32>
    %159 = vector.shape_cast %158 : vector<2x4x8x8xf32> to vector<8x8x8xf32>
    %160 = arith.truncf %159 : vector<8x8x8xf32> to vector<8x8x8xbf16>
    "tpu.trace_start"() <{level = 10 : i32, message = "btd,bsd->bts"}> : () -> ()
    %cst_44 = arith.constant dense<0.000000e+00> : vector<8x8x8xf32>
    %161 = tpu.matmul %150, %155, %cst_44 {dimension_numbers = #tpu.dot_dimension_numbers<[2], [2], [1], [1], [0, 0, 0, 1, 1, 1], [0], [0]>} : vector<8x8x8xbf16>, vector<8x8x8xbf16>, vector<8x8x8xf32> -> vector<8x8x8xf32>
    "tpu.trace_stop"() : () -> ()
    %cst_45 = arith.constant 0.353553385 : f32
    %162 = vector.broadcast %cst_45 : f32 to vector<8x8x8xf32>
    %163 = arith.mulf %161, %162 : vector<8x8x8xf32>
    %cst_46 = arith.constant dense<0xFF800000> : vector<8x8xf32>
    %164 = vector.multi_reduction <maximumf>, %163, %cst_46 [2] : vector<8x8x8xf32> to vector<8x8xf32>
    %165 = vector.shape_cast %164 : vector<8x8xf32> to vector<8x8x1xf32>
    %166 = vector.broadcast %165 : vector<8x8x1xf32> to vector<8x8x8xf32>
    %167 = arith.subf %163, %166 : vector<8x8x8xf32>
    %168 = math.exp %167 : vector<8x8x8xf32>
    %cst_47 = arith.constant dense<0.000000e+00> : vector<8x8xf32>
    %169 = vector.multi_reduction <add>, %168, %cst_47 [2] : vector<8x8x8xf32> to vector<8x8xf32>
    %170 = vector.shape_cast %169 : vector<8x8xf32> to vector<8x8x1xf32>
    %171 = vector.broadcast %170 : vector<8x8x1xf32> to vector<8x8x8xf32>
    %172 = arith.divf %168, %171 : vector<8x8x8xf32>
    %173 = arith.truncf %172 : vector<8x8x8xf32> to vector<8x8x8xbf16>
    "tpu.trace_start"() <{level = 10 : i32, message = "bts,bsd->btd"}> : () -> ()
    %cst_48 = arith.constant dense<0.000000e+00> : vector<8x8x8xf32>
    %174 = tpu.matmul %173, %160, %cst_48 {dimension_numbers = #tpu.dot_dimension_numbers<[2], [1], [1], [2], [0, 0, 0, 1, 1, 2], [0], [0]>} : vector<8x8x8xbf16>, vector<8x8x8xbf16>, vector<8x8x8xf32> -> vector<8x8x8xf32>
    "tpu.trace_stop"() : () -> ()
    %175 = vector.shape_cast %174 : vector<8x8x8xf32> to vector<2x4x8x8xf32>
    %176 = tpu.transpose %175, [0, 2, 1, 3] : vector<2x4x8x8xf32> -> vector<2x8x4x8xf32>
    %177 = vector.shape_cast %176 : vector<2x8x4x8xf32> to vector<16x32xf32>
    %178 = arith.truncf %177 : vector<16x32xf32> to vector<16x32xbf16>
    %cst_49 = arith.constant dense<0.000000e+00> : vector<16x32xf32>
    %179 = tpu.matmul %178, %120, %cst_49 {dimension_numbers = #tpu.dot_dimension_numbers<[1], [0], [0], [1], [0, 0, 1, 1], [], []>} : vector<16x32xbf16>, vector<32x32xbf16>, vector<16x32xf32> -> vector<16x32xf32>
    %180 = arith.addf %107, %179 : vector<16x32xf32>
    %181 = vector.broadcast %114 : vector<1x32xf32> to vector<16x32xf32>
    %182 = arith.addf %180, %181 : vector<16x32xf32>
    %cst_50 = arith.constant dense<0.000000e+00> : vector<16xf32>
    %183 = vector.multi_reduction <add>, %182, %cst_50 [1] : vector<16x32xf32> to vector<16xf32>
    %184 = vector.shape_cast %183 : vector<16xf32> to vector<16x1xf32>
    %cst_51 = arith.constant 3.200000e+01 : f32
    %185 = vector.broadcast %cst_51 : f32 to vector<16x1xf32>
    %186 = arith.divf %184, %185 : vector<16x1xf32>
    %187 = vector.broadcast %186 : vector<16x1xf32> to vector<16x32xf32>
    %188 = arith.subf %182, %187 : vector<16x32xf32>
    %189 = arith.mulf %188, %188 : vector<16x32xf32>
    %cst_52 = arith.constant dense<0.000000e+00> : vector<16xf32>
    %190 = vector.multi_reduction <add>, %189, %cst_52 [1] : vector<16x32xf32> to vector<16xf32>
    %191 = vector.shape_cast %190 : vector<16xf32> to vector<16x1xf32>
    %cst_53 = arith.constant 3.200000e+01 : f32
    %192 = vector.broadcast %cst_53 : f32 to vector<16x1xf32>
    %193 = arith.divf %191, %192 : vector<16x1xf32>
    %cst_54 = arith.constant 9.99999974E-6 : f32
    %194 = vector.broadcast %cst_54 : f32 to vector<16x1xf32>
    %195 = arith.addf %193, %194 : vector<16x1xf32>
    %196 = math.rsqrt %195 : vector<16x1xf32>
    %197 = vector.broadcast %196 : vector<16x1xf32> to vector<16x32xf32>
    %198 = arith.mulf %188, %197 : vector<16x32xf32>
    %199 = vector.broadcast %112 : vector<1x32xf32> to vector<16x32xf32>
    %200 = arith.mulf %198, %199 : vector<16x32xf32>
    %201 = vector.broadcast %113 : vector<1x32xf32> to vector<16x32xf32>
    %202 = arith.addf %200, %201 : vector<16x32xf32>
    %203 = arith.truncf %202 : vector<16x32xf32> to vector<16x32xbf16>
    %cst_55 = arith.constant dense<0.000000e+00> : vector<16x128xf32>
    %204 = tpu.matmul %203, %121, %cst_55 {dimension_numbers = #tpu.dot_dimension_numbers<[1], [0], [0], [1], [0, 0, 1, 1], [], []>} : vector<16x32xbf16>, vector<32x128xbf16>, vector<16x128xf32> -> vector<16x128xf32>
    %205 = vector.broadcast %116 : vector<1x128xf32> to vector<16x128xf32>
    %206 = arith.addf %204, %205 : vector<16x128xf32>
    %cst_56 = arith.constant 0.000000e+00 : f32
    %207 = vector.broadcast %cst_56 : f32 to vector<16x128xf32>
    %208 = arith.maximumf %206, %207 : vector<16x128xf32>
    %209 = arith.truncf %208 : vector<16x128xf32> to vector<16x128xbf16>
    %cst_57 = arith.constant dense<0.000000e+00> : vector<16x32xf32>
    %210 = tpu.matmul %209, %123, %cst_57 {dimension_numbers = #tpu.dot_dimension_numbers<[1], [0], [0], [1], [0, 0, 1, 1], [], []>} : vector<16x128xbf16>, vector<128x32xbf16>, vector<16x32xf32> -> vector<16x32xf32>
    %211 = arith.addf %182, %210 : vector<16x32xf32>
    %212 = vector.broadcast %115 : vector<1x32xf32> to vector<16x32xf32>
    %213 = arith.addf %211, %212 : vector<16x32xf32>
    %c0_58 = arith.constant 0 : index
    %c0_59 = arith.constant 0 : index
    %214 = vector.load %arg5[%c0_58, %c0_59] : memref<40x128xf32, #tpu.memory_space<vmem>>, vector<40x128xf32>
    %215 = vector.extract_strided_slice %214 {offsets = [0, 0], sizes = [1, 32], strides = [1, 1]} : vector<40x128xf32> to vector<1x32xf32>
    %216 = vector.extract_strided_slice %214 {offsets = [1, 0], sizes = [1, 32], strides = [1, 1]} : vector<40x128xf32> to vector<1x32xf32>
    %217 = vector.extract_strided_slice %214 {offsets = [2, 0], sizes = [1, 128], strides = [1, 1]} : vector<40x128xf32> to vector<1x128xf32>
    %218 = vector.extract_strided_slice %214 {offsets = [8, 0], sizes = [32, 128], strides = [1, 1]} : vector<40x128xf32> to vector<32x128xf32>
    %cst_60 = arith.constant dense<0.000000e+00> : vector<16xf32>
    %219 = vector.multi_reduction <add>, %213, %cst_60 [1] : vector<16x32xf32> to vector<16xf32>
    %220 = vector.shape_cast %219 : vector<16xf32> to vector<16x1xf32>
    %cst_61 = arith.constant 3.200000e+01 : f32
    %221 = vector.broadcast %cst_61 : f32 to vector<16x1xf32>
    %222 = arith.divf %220, %221 : vector<16x1xf32>
    %223 = vector.broadcast %222 : vector<16x1xf32> to vector<16x32xf32>
    %224 = arith.subf %213, %223 : vector<16x32xf32>
    %225 = arith.mulf %224, %224 : vector<16x32xf32>
    %cst_62 = arith.constant dense<0.000000e+00> : vector<16xf32>
    %226 = vector.multi_reduction <add>, %225, %cst_62 [1] : vector<16x32xf32> to vector<16xf32>
    %227 = vector.shape_cast %226 : vector<16xf32> to vector<16x1xf32>
    %cst_63 = arith.constant 3.200000e+01 : f32
    %228 = vector.broadcast %cst_63 : f32 to vector<16x1xf32>
    %229 = arith.divf %227, %228 : vector<16x1xf32>
    %cst_64 = arith.constant 9.99999974E-6 : f32
    %230 = vector.broadcast %cst_64 : f32 to vector<16x1xf32>
    %231 = arith.addf %229, %230 : vector<16x1xf32>
    %232 = math.rsqrt %231 : vector<16x1xf32>
    %233 = vector.broadcast %232 : vector<16x1xf32> to vector<16x32xf32>
    %234 = arith.mulf %224, %233 : vector<16x32xf32>
    %235 = vector.broadcast %215 : vector<1x32xf32> to vector<16x32xf32>
    %236 = arith.mulf %234, %235 : vector<16x32xf32>
    %237 = vector.broadcast %216 : vector<1x32xf32> to vector<16x32xf32>
    %238 = arith.addf %236, %237 : vector<16x32xf32>
    %239 = vector.shape_cast %238 : vector<16x32xf32> to vector<2x8x32xf32>
    %cst_65 = arith.constant dense<0.000000e+00> : vector<2x32xf32>
    %240 = vector.multi_reduction <add>, %239, %cst_65 [1] : vector<2x8x32xf32> to vector<2x32xf32>
    %cst_66 = arith.constant 8.000000e+00 : f32
    %241 = vector.broadcast %cst_66 : f32 to vector<2x32xf32>
    %242 = arith.divf %240, %241 : vector<2x32xf32>
    %cst_67 = arith.constant dense<0.000000e+00> : vector<2x128xf32>
    %243 = tpu.matmul %242, %218, %cst_67 {dimension_numbers = #tpu.dot_dimension_numbers<[1], [0], [0], [1], [0, 0, 1, 1], [], []>} : vector<2x32xf32>, vector<32x128xf32>, vector<2x128xf32> -> vector<2x128xf32>
    %244 = vector.broadcast %217 : vector<1x128xf32> to vector<2x128xf32>
    %245 = arith.addf %243, %244 : vector<2x128xf32>
    %c0_68 = arith.constant 0 : index
    %c0_69 = arith.constant 0 : index
    %246 = vector.load %arg6[%c0_68, %c0_69] : memref<2x128xf32, #tpu.memory_space<vmem>>, vector<2x128xf32>
    tpu.vector_store %arg6[%c0_68, %c0_69], %245 {strides = array<i32>} : memref<2x128xf32, #tpu.memory_space<vmem>>, vector<2x128xf32>,
    return
  }
  func.func @transform_0(%arg0: i32) -> (i32, i32, i32) {
    %c0_i32 = arith.constant 0 : i32
    %c0_i32_0 = arith.constant 0 : i32
    %c0_i32_1 = arith.constant 0 : i32
    return %arg0, %c0_i32, %c0_i32_0 : i32, i32, i32
  }
  func.func @transform_1(%arg0: i32) -> (i32, i32, i32) {
    %c0_i32 = arith.constant 0 : i32
    %c0_i32_0 = arith.constant 0 : i32
    %c0_i32_1 = arith.constant 0 : i32
    %c0_i32_2 = arith.constant 0 : i32
    return %c0_i32, %c0_i32_0, %c0_i32_1 : i32, i32, i32
  }
  func.func @transform_2(%arg0: i32) -> (i32, i32, i32) {
    %c0_i32 = arith.constant 0 : i32
    %c0_i32_0 = arith.constant 0 : i32
    %c0_i32_1 = arith.constant 0 : i32
    %c0_i32_2 = arith.constant 0 : i32
    return %c0_i32, %c0_i32_0, %c0_i32_1 : i32, i32, i32
  }
  func.func @transform_3(%arg0: i32) -> (i32, i32, i32) {
    %c0_i32 = arith.constant 0 : i32
    %c0_i32_0 = arith.constant 0 : i32
    %c0_i32_1 = arith.constant 0 : i32
    %c0_i32_2 = arith.constant 0 : i32
    return %c0_i32, %c0_i32_0, %c0_i32_1 : i32, i32, i32
  }
  func.func @transform_4(%arg0: i32) -> (i32, i32) {
    %c0_i32 = arith.constant 0 : i32
    %c0_i32_0 = arith.constant 0 : i32
    %c0_i32_1 = arith.constant 0 : i32
    return %c0_i32, %c0_i32_0 : i32, i32
  }
  func.func @transform_5(%arg0: i32) -> (i32, i32) {
    %c0_i32 = arith.constant 0 : i32
    %c0_i32_0 = arith.constant 0 : i32
    return %arg0, %c0_i32 : i32, i32
  }
}

</mosaic_0001>

<bundles_post_ra>
// kernel: gpt_decoder_forward.1
= control target key start
LH: loop header
LB: loop body
LE: loop exit
PB: predicated region body
PF: predicated region fallthrough
CT: control target
= control target key end

     0   :  { %vm45_vm0 = vcmask 261120   ;;  %s6873_s0 = inlined_call_operand.vmem [shape: f32[2,8,32], index: 0, kind: input, shape index: {}]   ;;  %s6874_s1 = inlined_call_operand.vmem [shape: bf16[2,32,256], index: 1, kind: input, shape index: {}]   ;;  %s6875_s2 = inlined_call_operand.vmem [shape: bf16[2,128,32], index: 2, kind: input, shape index: {}]   ;;  %s6876_s3 = inlined_call_operand.vmem [shape: f32[2,8,128], index: 3, kind: input, shape index: {}]   ;;  %s6877_s4 = inlined_call_operand.vmem [shape: f32[40,128], index: 4, kind: input, shape index: {}]   ;;  %s6878_s5 = inlined_call_operand.hbm [shape: f32[2,128], index: 5, kind: output, shape index: {}]  }
   0x1   :  { %v22_v0 = vld [vmem:[%s6873_s0] sm:$0xff]  ;;  %v23_v1 = vld [vmem:[%s6873_s0 + $0x8] sm:$0xff] }
   0x2   :  { %v46_v2 = vsel %vm45_vm0, %v22_v0, 0.0  ;;  %v49_v3 = vsel %vm45_vm0, %v23_v1, 0.0 }
   0x3   :  { %47 = vadd.xlane.f32.xlu0 %v46_v2 }
   0x7   :  { %50 = vadd.xlane.f32.xlu0 %v49_v3 }
   0x8   :  { %10 = vsyncpa [#allocation3], 0  ;;  %v5591_v14 = vld [vmem:[%s6874_s1] ss:$8 sps:$4 sm:$0xff]   ;;  %v5734_v15 = vmov 0.0   ;;  %vm5735_vm1 = vmmov 0   ;;  %v73_v21 = vlaneseq }
   0x9   :  { %5249 = vmatprep.subr.bf16.mxu1 %v5734_v15  ;;  %5253 = vmatprep.mubr.msk.bf16.mxu1 %vm5735_vm1, %v5734_v15  ;;  %v5594_v16 = vld [vmem:[%s6874_s1 + $0x10] ss:$8 sps:$4 sm:$0xff]   ;;  %v24_v26 = vld [vmem:[%s6876_s3] sm:$0xff]  ;;  %s5736_s28 = smov 112   ;;  %s5737_s29 = smov 120   ;;  %vm1050_vm2 = vcmask 64512  }
   0xa   :  { %5250 = vmatpush3.bf16.msra.mxu1 %v5591_v14  ;;  %5275 = vmatprep.subr.bf16.mxu0 %v5734_v15  ;;  %v5803_v24 = vshrl.u32 %v73_v21, 7  ;;  %s5738_s30 = smov 104   ;;  %s5739_s6 = smov 96   ;;  %v5740_v49 = vmov 1983009808   ;;  %vm1526_vm3 = vcmask 1043456  }
   0xb   :  { %5251 = vmatprep.subr.bf16.mxu1 %v5734_v15  ;;  %5277 = vmatprep.mubr.msk.bf16.mxu0 %vm5735_vm1, %v5734_v15  ;;  %v165_v50 = vunpack.c.l.s4 %v5740_v49  ;;  %v5741_v52 = vmov 1934713408   ;;  %s5742_s7 = smov 64   ;;  %s5743_s14 = smov 32   ;;  %vm2190_vm4 = vcmask 130048   ;;  %vm2193_vm5 = vcmask 195584  }
   0xc   :  { %v5806_v25 = vsub.s32 0, %v5803_v24  ;;  %v5813_v30 = vsub.s32 1, %v5803_v24  ;;  %v197_v53 = vunpack.c.l.s4 %v5741_v52  ;;  %s5744_s15 = smov 16   ;;  %s5745_s16 = smov 8   ;;  %vm4939_vm6 = vcmask 1041409  }
   0xd   :  { %v166_v51 = vunpack.c.0.s8 %v165_v50  ;;  %s5746_s17 = smov 24  }
   0xe   :  { %5252 = vmatpush3.bf16.msra.mxu1 %v5594_v16  ;;  %v76_v29 = vrot.slane %v24_v26, %v5806_v25  ;;  %v82_v34 = vrot.slane %v24_v26, %v5813_v30  ;;  %v198_v59 = vunpack.c.0.s8 %v197_v53 }
   0xf   :  { %5257 = vmatprep.subr.bf16.mxu1 %v5734_v15  ;;  %v5868_v56 = vsub.s32 %v166_v51, %v5803_v24 }
  0x90   :  { %v48_v4 = vpop.xlane.xlu0 %47 }
  0x91   :  { %v53_v5 = vmul.f32 0.03125, %v48_v4 }
  0x93   :  { %v55_v6 = vsub.f32 %v22_v0, %v53_v5  ;;  %v5879_v0 = vsub.s32 %v198_v59, %v5803_v24 }
  0x94   :  { %v51_v7 = vpop.xlane.xlu0 %50 }
  0x95   :  { %v54_v8 = vmul.f32 0.03125, %v51_v7  ;;  %v57_v9 = vmul.f32 %v55_v6, %v55_v6 }
  0x97   :  { %v56_v10 = vsub.f32 %v23_v1, %v54_v8  ;;  %v59_v11 = vsel %vm45_vm0, %v57_v9, 0.0 }
  0x98   :  { %60 = vadd.xlane.f32.xlu1 %v59_v11 }
  0x99   :  { %v58_v12 = vmul.f32 %v56_v10, %v56_v10 }
  0x9b   :  { %v62_v13 = vsel %vm45_vm0, %v58_v12, 0.0 }
  0x9c   :  { %63 = vadd.xlane.f32.xlu1 %v62_v13 }
 0x125   :  { %v61_v17 = vpop.xlane.xlu1 %60 }
 0x126   :  { %v65_v18 = vmul.f32 0.03125, %v61_v17 }
 0x128   :  { %v67_v19 = vadd.f32 1e-05, %v65_v18 }
 0x129   :  { %v64_v20 = vpop.xlane.xlu1 %63 }
 0x12a   :  { %5619 = vrsqrt.f32 %v67_v19  ;;  %v66_v22 = vmul.f32 0.03125, %v64_v20 }
 0x12c   :  { %v68_v23 = vadd.f32 1e-05, %v66_v22 }
 0x12e   :  { %5621 = vrsqrt.f32 %v68_v23 }
 0x134   :  { %v5620_v27 = vpop.eup %5619 }
 0x135   :  { %v71_v28 = vmul.f32 %v5620_v27, %v55_v6 }
 0x137   :  { %v77_v33 = vmul.f32 %v76_v29, %v71_v28 }
 0x138   :  { %v5622_v31 = vpop.eup %5621 }
 0x139   :  { %v72_v32 = vmul.f32 %v5622_v31, %v56_v10  ;;  %v83_v36 = vadd.f32 %v82_v34, %v77_v33 }
 0x13b   :  { %v78_v35 = vmul.f32 %v76_v29, %v72_v32 }
 0x13d   :  { %v84_v37 = vadd.f32 %v82_v34, %v78_v35 }
 0x13f   :  { %v85_v38 = vpack.c.bf16 %v84_v37, %v83_v36 }
 0x141   :  { %5254 = vmatmul.mubr.msk.bf16.vlgmr.msra.gmra.mrb[0].mxu1 %vm45_vm0, %v85_v38 }
 0x142   :  { %5259 = vmatprep.mubr.msk.bf16.mxu1 %vm5735_vm1, %v5734_v15 }
 0x214   :  { %v5819_v39 = vpop.f32.mrb[0].mxu1 }
 0x215   :  { %150 = vrot.lane.b32.xlu1 %v5819_v39, %s5736_s28  ;;  %144 = vrot.lane.b32.xlu0 %v5819_v39, %s5737_s29  ;;  %v5255_v40 = vpop.f32.mrb[1].mxu1 }
 0x216   :  { %v5825_v41 = vpop.f32.mrb[2].mxu1 }
 0x217   :  { %v5256_v42 = vpop.f32.mrb[3].mxu1 }
 0x219   :  { %156 = vrot.lane.b32.xlu1 %v5819_v39, %s5738_s30  ;;  %152 = vrot.lane.b32.xlu0 %v5825_v41, %s5736_s28 }
 0x21d   :  { %442 = vrot.lane.b32.xlu0 %v5819_v39, %s5739_s6  ;;  %146 = vrot.lane.b32.xlu1 %v5825_v41, %s5737_s29 }
 0x221   :  { %158 = vrot.lane.b32.xlu1 %v5825_v41, %s5738_s30 }
 0x287   :  { %v5837_v43 = vpop.permute.xlu1 %150  ;;  %v5839_v44 = vpop.permute.xlu0 %144 }
 0x288   :  { %450 = vrot.lane.b32.xlu0 %v5837_v43, %s5739_s6  ;;  %446 = vrot.lane.b32.xlu1 %v5839_v44, %s5739_s6  ;;  %v162_v57 = vcombine.low %v5819_v39, %v5837_v43  ;;  %v163_v58 = vcombine.high %v5819_v39, %v5837_v43 }
 0x28a   :  { %v170_v62 = vrot.slane %v162_v57, %v5868_v56  ;;  %v177_v63 = vrot.slane %v163_v58, %v5868_v56 }
 0x28b   :  { %v5845_v45 = vpop.permute.xlu1 %156  ;;  %v5851_v46 = vpop.permute.xlu0 %152 }
 0x28c   :  { %444 = vrot.lane.b32.xlu0 %v5825_v41, %s5739_s6  ;;  %454 = vrot.lane.b32.xlu1 %v5845_v45, %s5739_s6  ;;  %v178_v54 = vcombine.low %v5839_v44, %v5845_v45  ;;  %v179_v55 = vcombine.high %v5839_v44, %v5845_v45  ;;  %v230_v16 = vcombine.low %v5825_v41, %v5851_v46 }
 0x28d   :  { %v231_v18 = vcombine.high %v5825_v41, %v5851_v46 }
 0x28e   :  { %v186_v60 = vrot.slane %v178_v54, %v5868_v56  ;;  %v193_v61 = vrot.slane %v179_v55, %v5868_v56  ;;  %v238_v28 = vrot.slane %v230_v16, %v5868_v56 }
 0x28f   :  { %v5853_v47 = vpop.permute.xlu1 %146  ;;  %v443_v10 = vpop.permute.xlu0 %442  ;;  %v245_v31 = vrot.slane %v231_v18, %v5868_v56 }
 0x290   :  { %452 = vrot.lane.b32.xlu0 %v5851_v46, %s5739_s6  ;;  %448 = vrot.lane.b32.xlu1 %v5853_v47, %s5739_s6  ;;  %v194_v1 = vcombine.low %v170_v62, %v186_v60  ;;  %v195_v2 = vcombine.high %v170_v62, %v186_v60  ;;  %v210_v3 = vcombine.low %v177_v63, %v193_v61 }
 0x291   :  { %v211_v4 = vcombine.high %v177_v63, %v193_v61 }
 0x292   :  { %v202_v5 = vrot.slane %v194_v1, %v5879_v0  ;;  %v209_v6 = vrot.slane %v195_v2, %v5879_v0  ;;  %v218_v7 = vrot.slane %v210_v3, %v5879_v0 }
 0x293   :  { %v5859_v48 = vpop.permute.xlu1 %158  ;;  %v225_v8 = vrot.slane %v211_v4, %v5879_v0 }
 0x294   :  { %456 = vrot.lane.b32.xlu1 %v5859_v48, %s5739_s6  ;;  %v298_v9 = vcombine.low %v202_v5, %v209_v6  ;;  %v5031_v11 = vcombine.high %v202_v5, %v209_v6  ;;  %v246_v14 = vcombine.low %v5853_v47, %v5859_v48  ;;  %v247_v17 = vcombine.high %v5853_v47, %v5859_v48 }
 0x295   :  { %v314_v12 = vcombine.low %v218_v7, %v225_v8  ;;  %v5032_v13 = vcombine.high %v218_v7, %v225_v8 }
 0x296   :  { %v305_v21 = vrot.slane %v298_v9, %v5868_v56  ;;  %v254_v22 = vrot.slane %v246_v14, %v5868_v56  ;;  %v313_v23 = vrot.slane %v5031_v11, %v5868_v56  ;;  %v261_v29 = vrot.slane %v247_v17, %v5868_v56 }
 0x297   :  { %v321_v26 = vrot.slane %v314_v12, %v5868_v56  ;;  %v329_v27 = vrot.slane %v5032_v13, %v5868_v56 }
 0x298   :  { %v262_v35 = vcombine.low %v238_v28, %v254_v22  ;;  %v263_v36 = vcombine.high %v238_v28, %v254_v22  ;;  %v330_v38 = vcombine.low %v305_v21, %v313_v23  ;;  %v278_v50 = vcombine.low %v245_v31, %v261_v29 }
 0x299   :  { %v346_v40 = vcombine.low %v321_v26, %v329_v27  ;;  %v279_v51 = vcombine.high %v245_v31, %v261_v29  ;;  %v331_v52 = vcombine.high %v305_v21, %v313_v23  ;;  %v347_v53 = vcombine.high %v321_v26, %v329_v27 }
 0x29a   :  { %v270_v59 = vrot.slane %v262_v35, %v5879_v0  ;;  %v277_v60 = vrot.slane %v263_v36, %v5879_v0  ;;  %v5908_v62 = vrot.slane %v330_v38, %v5879_v0  ;;  %v286_v6 = vrot.slane %v278_v50, %v5879_v0 }
 0x29b   :  { %v5911_v63 = vrot.slane %v346_v40, %v5879_v0  ;;  %v293_v7 = vrot.slane %v279_v51, %v5879_v0  ;;  %v5916_v8 = vrot.slane %v331_v52, %v5879_v0  ;;  %v5919_v9 = vrot.slane %v347_v53, %v5879_v0 }
 0x29c   :  { %v366_v14 = vcombine.low %v270_v59, %v277_v60  ;;  %v5033_v16 = vcombine.high %v270_v59, %v277_v60 }
 0x29d   :  { %v382_v26 = vcombine.low %v286_v6, %v293_v7  ;;  %v5034_v27 = vcombine.high %v286_v6, %v293_v7 }
 0x2fa   :  { %v451_v19 = vpop.permute.xlu0 %450  ;;  %v447_v20 = vpop.permute.xlu1 %446 }
 0x2fb   :  { %v466_v32 = vcombine.low %v443_v10, %v451_v19  ;;  %v467_v33 = vcombine.high %v443_v10, %v451_v19 }
 0x2fd   :  { %v474_v54 = vrot.slane %v466_v32, %v5868_v56  ;;  %v481_v55 = vrot.slane %v467_v33, %v5868_v56 }
 0x2fe   :  { %v445_v34 = vpop.permute.xlu0 %444  ;;  %v455_v37 = vpop.permute.xlu1 %454 }
 0x2ff   :  { %v482_v42 = vcombine.low %v447_v20, %v455_v37  ;;  %v483_v49 = vcombine.high %v447_v20, %v455_v37 }
 0x301   :  { %v490_v57 = vrot.slane %v482_v42, %v5868_v56  ;;  %v497_v58 = vrot.slane %v483_v49, %v5868_v56 }
 0x302   :  { %v449_v61 = vpop.permute.xlu1 %448  ;;  %v453_v5 = vpop.permute.xlu0 %452 }
 0x303   :  { %v498_v1 = vcombine.low %v474_v54, %v490_v57  ;;  %v499_v2 = vcombine.high %v474_v54, %v490_v57  ;;  %v514_v3 = vcombine.low %v481_v55, %v497_v58  ;;  %v515_v4 = vcombine.high %v481_v55, %v497_v58 }
 0x304   :  { %v534_v17 = vcombine.low %v445_v34, %v453_v5  ;;  %v535_v18 = vcombine.high %v445_v34, %v453_v5 }
 0x305   :  { %v506_v10 = vrot.slane %v498_v1, %v5879_v0  ;;  %v513_v11 = vrot.slane %v499_v2, %v5879_v0  ;;  %v522_v12 = vrot.slane %v514_v3, %v5879_v0  ;;  %v529_v13 = vrot.slane %v515_v4, %v5879_v0 }
 0x306   :  { %v457_v19 = vpop.permute.xlu1 %456  ;;  %v542_v34 = vrot.slane %v534_v17, %v5868_v56  ;;  %v549_v36 = vrot.slane %v535_v18, %v5868_v56  ;;  %v5942_v3 = vrot.slane %v366_v14, %v5868_v56  ;;  %v381_v4 = vrot.slane %v5033_v16, %v5868_v56 }
 0x307   :  { %v602_v20 = vcombine.low %v506_v10, %v513_v11  ;;  %v5035_v21 = vcombine.high %v506_v10, %v513_v11  ;;  %v618_v22 = vcombine.low %v522_v12, %v529_v13  ;;  %v5036_v23 = vcombine.high %v522_v12, %v529_v13 }
 0x308   :  { %v550_v28 = vcombine.low %v449_v61, %v457_v19  ;;  %v551_v29 = vcombine.high %v449_v61, %v457_v19  ;;  %v389_v13 = vrot.slane %v382_v26, %v5868_v56  ;;  %v397_v17 = vrot.slane %v5034_v27, %v5868_v56 }
 0x309   :  { %v609_v31 = vrot.slane %v602_v20, %v5868_v56  ;;  %v617_v32 = vrot.slane %v5035_v21, %v5868_v56  ;;  %v625_v33 = vrot.slane %v618_v22, %v5868_v56  ;;  %v633_v35 = vrot.slane %v5036_v23, %v5868_v56 }
 0x30a   :  { %v558_v37 = vrot.slane %v550_v28, %v5868_v56  ;;  %v565_v38 = vrot.slane %v551_v29, %v5868_v56 }
 0x30b   :  { %v634_v40 = vcombine.low %v609_v31, %v617_v32  ;;  %v650_v42 = vcombine.low %v625_v33, %v633_v35  ;;  %v635_v49 = vcombine.high %v609_v31, %v617_v32  ;;  %v651_v50 = vcombine.high %v625_v33, %v633_v35 }
 0x30c   :  { %v566_v51 = vcombine.low %v542_v34, %v558_v37  ;;  %v567_v52 = vcombine.high %v542_v34, %v558_v37  ;;  %v582_v53 = vcombine.low %v549_v36, %v565_v38  ;;  %v583_v54 = vcombine.high %v549_v36, %v565_v38 }
 0x30d   :  { %v642_v55 = vrot.slane %v634_v40, %v5879_v0  ;;  %v658_v57 = vrot.slane %v650_v42, %v5879_v0  ;;  %v649_v58 = vrot.slane %v635_v49, %v5879_v0  ;;  %v665_v59 = vrot.slane %v651_v50, %v5879_v0 }
 0x30e   :  { %v574_v60 = vrot.slane %v566_v51, %v5879_v0  ;;  %v581_v61 = vrot.slane %v567_v52, %v5879_v0  ;;  %v590_v1 = vrot.slane %v582_v53, %v5879_v0  ;;  %v597_v2 = vrot.slane %v583_v54, %v5879_v0 }
 0x30f   :  { %v666_v5 = vcombine.low %v642_v55, %v658_v57  ;;  %v669_v6 = vcombine.high %v649_v58, %v665_v59  ;;  %v667_v28 = vcombine.high %v642_v55, %v658_v57  ;;  %v362_v31 = vcombine.low %v5908_v62, %v5911_v63 }
 0x310   :  { %v670_v7 = vcombine.low %v574_v60, %v581_v61  ;;  %v5037_v10 = vcombine.high %v574_v60, %v581_v61  ;;  %v686_v11 = vcombine.low %v590_v1, %v597_v2  ;;  %v5038_v12 = vcombine.high %v590_v1, %v597_v2 }
 0x311   :  { %v738_v18 = vpack.c.bf16 %v666_v5, %v666_v5  ;;  %v741_v19 = vpack.c.bf16 %v669_v6, %v669_v6  ;;  %v365_v32 = vcombine.high %v5916_v8, %v5919_v9  ;;  %v398_v36 = vcombine.low %v5942_v3, %v381_v4 }
 0x312   :  { %v677_v20 = vrot.slane %v670_v7, %v5868_v56  ;;  %v685_v21 = vrot.slane %v5037_v10, %v5868_v56  ;;  %v693_v14 = vrot.slane %v686_v11, %v5868_v56  ;;  %v701_v16 = vrot.slane %v5038_v12, %v5868_v56 }
 0x313   :  { %v1055_v22 = vsel %vm1050_vm2, %v738_v18, 0  ;;  %v1193_v23 = vsel %vm1050_vm2, %v741_v19, 0  ;;  %v414_v37 = vcombine.low %v389_v13, %v397_v17  ;;  %v739_v38 = vpack.c.bf16 %v667_v28, %v667_v28 }
 0x314   :  { %5258 = vmatpush3.bf16.xpose.msra.mxu1 %v1055_v22  ;;  %5276 = vmatpush3.bf16.xpose.msra.mxu0 %v1193_v23  ;;  %v702_v26 = vcombine.low %v677_v20, %v685_v21  ;;  %v718_v29 = vcombine.low %v693_v14, %v701_v16  ;;  %v703_v27 = vcombine.high %v677_v20, %v685_v21 }
 0x315   :  { %5263 = vmatprep.subr.bf16.mxu1 %v5734_v15  ;;  %5287 = vmatprep.subr.bf16.mxu0 %v5734_v15  ;;  %v719_v33 = vcombine.high %v693_v14, %v701_v16  ;;  %v434_v50 = vpack.c.bf16 %v362_v31, %v362_v31  ;;  %v437_v51 = vpack.c.bf16 %v365_v32, %v365_v32  ;;  %v1101_v55 = vsel %vm1050_vm2, %v739_v38, 0 }
 0x316   :  { %v710_v35 = vrot.slane %v702_v26, %v5879_v0  ;;  %v726_v34 = vrot.slane %v718_v29, %v5879_v0  ;;  %v717_v42 = vrot.slane %v703_v27, %v5879_v0  ;;  %v406_v53 = vrot.slane %v398_v36, %v5879_v0 }
 0x317   :  { %v733_v49 = vrot.slane %v719_v33, %v5879_v0  ;;  %v422_v54 = vrot.slane %v414_v37, %v5879_v0  ;;  %v668_v57 = vcombine.low %v649_v58, %v665_v59  ;;  %v363_v1 = vcombine.high %v5908_v62, %v5911_v63 }
 0x318   :  { %v735_v40 = vcombine.high %v710_v35, %v726_v34  ;;  %v399_v58 = vcombine.high %v5942_v3, %v381_v4  ;;  %v415_v59 = vcombine.high %v389_v13, %v397_v17  ;;  %v734_v63 = vcombine.low %v710_v35, %v726_v34 }
 0x319   :  { %v737_v61 = vcombine.high %v717_v42, %v733_v49  ;;  %v431_v2 = vcombine.high %v406_v53, %v422_v54  ;;  %v740_v5 = vpack.c.bf16 %v668_v57, %v668_v57  ;;  %v435_v7 = vpack.c.bf16 %v363_v1, %v363_v1 }
 0x31a   :  { %v743_v52 = vpack.c.bf16 %v735_v40, %v735_v40  ;;  %v413_v11 = vrot.slane %v399_v58, %v5879_v0  ;;  %v429_v12 = vrot.slane %v415_v59, %v5879_v0  ;;  %v364_v3 = vcombine.low %v5916_v8, %v5919_v9 }
 0x31b   :  { %5260 = vmatmul.mubr.msk.bf16.vlgmr.msra.gmra.mrb[4].mxu1 %vm1050_vm2, %v434_v50  ;;  %5278 = vmatmul.mubr.msk.bf16.vlgmr.msra.gmra.mrb[0].mxu0 %vm1050_vm2, %v437_v51  ;;  %v745_v6 = vpack.c.bf16 %v737_v61, %v737_v61  ;;  %v439_v10 = vpack.c.bf16 %v431_v2, %v431_v2  ;;  %v1147_v62 = vsel %vm1050_vm2, %v740_v5, 0  ;;  %v742_v13 = vpack.c.bf16 %v734_v63, %v734_v63 }
 0x31c   :  { %5264 = vmatpush3.bf16.xpose.msra.mxu1 %v1101_v55  ;;  %v1285_v60 = vsel %vm1050_vm2, %v743_v52, 0  ;;  %5265 = vmatprep.mubr.msk.bf16.mxu1 %vm5735_vm1, %v5734_v15  ;;  %v433_v4 = vcombine.high %v413_v11, %v429_v12  ;;  %v436_v17 = vpack.c.bf16 %v364_v3, %v364_v3  ;;  %v736_v8 = vcombine.low %v717_v42, %v733_v49 }
 0x31d   :  { %5288 = vmatpush3.bf16.xpose.msra.mxu0 %v1285_v60  ;;  %5289 = vmatprep.mubr.msk.bf16.mxu0 %vm5735_vm1, %v5734_v15  ;;  %v1377_v18 = vsel %vm1050_vm2, %v745_v6, 0  ;;  %v1239_v20 = vsel %vm1050_vm2, %v742_v13, 0  ;;  %v430_v9 = vcombine.low %v406_v53, %v422_v54  ;;  %v432_v22 = vcombine.low %v413_v11, %v429_v12 }
 0x31e   :  { %5269 = vmatprep.subr.bf16.mxu1 %v5734_v15  ;;  %5299 = vmatprep.subr.bf16.mxu0 %v5734_v15  ;;  %v441_v19 = vpack.c.bf16 %v433_v4, %v433_v4  ;;  %v744_v21 = vpack.c.bf16 %v736_v8, %v736_v8 }
 0x31f   :  { %v438_v14 = vpack.c.bf16 %v430_v9, %v430_v9  ;;  %v440_v23 = vpack.c.bf16 %v432_v22, %v432_v22 }
 0x320   :  { %v1331_v16 = vsel %vm1050_vm2, %v744_v21, 0 }
 0x323   :  { %5266 = vmatmul.mubr.msk.bf16.vlgmr.msra.gmra.mrb[8].mxu1 %vm1050_vm2, %v435_v7 }
 0x324   :  { %5290 = vmatmul.mubr.msk.bf16.vlgmr.msra.gmra.mrb[4].mxu0 %vm1050_vm2, %v439_v10  ;;  %5270 = vmatpush3.bf16.xpose.msra.mxu1 %v1147_v62 }
 0x325   :  { %5300 = vmatpush3.bf16.xpose.msra.mxu0 %v1377_v18  ;;  %5271 = vmatprep.mubr.msk.bf16.mxu1 %vm5735_vm1, %v5734_v15 }
 0x326   :  { %5301 = vmatprep.mubr.msk.bf16.mxu0 %vm5735_vm1, %v5734_v15  ;;  %5281 = vmatprep.subr.bf16.mxu1 %v5734_v15 }
 0x327   :  { %5311 = vmatprep.subr.bf16.mxu0 %v5734_v15 }
 0x32b   :  { %5272 = vmatmul.mubr.msk.bf16.vlgmr.msra.gmra.mrb[12].mxu1 %vm1050_vm2, %v436_v17 }
 0x32c   :  { %5302 = vmatmul.mubr.msk.bf16.vlgmr.msra.gmra.mrb[8].mxu0 %vm1050_vm2, %v441_v19  ;;  %5282 = vmatpush3.bf16.xpose.msra.mxu1 %v1239_v20 }
 0x32d   :  { %5283 = vmatprep.mubr.msk.bf16.mxu1 %vm5735_vm1, %v5734_v15  ;;  %5293 = vmatprep.subr.bf16.mxu1 %v5734_v15 }
 0x32e   :  { %5313 = vmatprep.mubr.msk.bf16.mxu0 %vm5735_vm1, %v5734_v15 }
 0x333   :  { %5284 = vmatmul.mubr.msk.bf16.vlgmr.msra.gmra.mrb[16].mxu1 %vm1050_vm2, %v438_v14 }
 0x334   :  { %5294 = vmatpush3.bf16.xpose.msra.mxu1 %v1331_v16  ;;  %5295 = vmatprep.mubr.msk.bf16.mxu1 %vm5735_vm1, %v5734_v15 }
 0x335   :  { %5305 = vmatprep.subr.bf16.mxu1 %v5734_v15 }
 0x33b   :  { %5296 = vmatmul.mubr.msk.bf16.vlgmr.msra.gmra.mrb[20].mxu1 %vm1050_vm2, %v440_v23 }
 0x33c   :  { %5307 = vmatprep.mubr.msk.bf16.mxu1 %vm5735_vm1, %v5734_v15 }
 0x3ee   :  { %v1091_v28 = vpop.f32.mrb[4].mxu1  ;;  %v1229_v26 = vpop.f32.mrb[0].mxu0 }
 0x3ef   :  { %v1419_v29 = vmul.f32 0.35355338, %v1091_v28  ;;  %v5261_v27 = vpop.f32.mrb[5].mxu1  ;;  %v5279_v31 = vpop.f32.mrb[1].mxu0  ;;  %v1422_v35 = vmul.f32 0.35355338, %v1229_v26 }
 0x3f0   :  { %v1094_v32 = vpop.f32.mrb[6].mxu1  ;;  %v1232_v33 = vpop.f32.mrb[2].mxu0 }
 0x3f1   :  { %v5262_v34 = vpop.f32.mrb[7].mxu1  ;;  %v5280_v36 = vpop.f32.mrb[3].mxu0  ;;  %v1427_v37 = vsel %vm1050_vm2, %v1419_v29, -inf  ;;  %v1436_v38 = vsel %vm1050_vm2, %v1422_v35, -inf }
 0x3f2   :  { %1428 = vmax.xlane.f32.xlu0 %v1427_v37 }
 0x3f6   :  { %1437 = vmax.xlane.f32.xlu0 %v1436_v38  ;;  %v1137_v40 = vpop.f32.mrb[8].mxu1 }
 0x3f7   :  { %v1321_v42 = vpop.f32.mrb[4].mxu0  ;;  %v1420_v49 = vmul.f32 0.35355338, %v1137_v40  ;;  %v5267_v50 = vpop.f32.mrb[9].mxu1 }
 0x3f8   :  { %v5291_v51 = vpop.f32.mrb[5].mxu0  ;;  %v1140_v52 = vpop.f32.mrb[10].mxu1  ;;  %v1424_v53 = vmul.f32 0.35355338, %v1321_v42 }
 0x3f9   :  { %v1324_v54 = vpop.f32.mrb[6].mxu0  ;;  %v5268_v55 = vpop.f32.mrb[11].mxu1  ;;  %v1430_v57 = vsel %vm1050_vm2, %v1420_v49, -inf }
 0x3fa   :  { %v5292_v60 = vpop.f32.mrb[7].mxu0  ;;  %1431 = vmax.xlane.f32.xlu1 %v1430_v57  ;;  %v1442_v61 = vsel %vm1050_vm2, %v1424_v53, -inf }
 0x3fe   :  { %1443 = vmax.xlane.f32.xlu1 %v1442_v61  ;;  %v1183_v1 = vpop.f32.mrb[12].mxu1 }
 0x3ff   :  { %v1413_v2 = vpop.f32.mrb[8].mxu0  ;;  %v1421_v58 = vmul.f32 0.35355338, %v1183_v1  ;;  %v5273_v59 = vpop.f32.mrb[13].mxu1 }
 0x400   :  { %v6013_v5 = vmul.f32 0.35355338, %v1413_v2  ;;  %v5303_v6 = vpop.f32.mrb[9].mxu0  ;;  %v1186_v7 = vpop.f32.mrb[14].mxu1 }
 0x401   :  { %v1416_v10 = vpop.f32.mrb[10].mxu0  ;;  %v5274_v11 = vpop.f32.mrb[15].mxu1  ;;  %v1433_v12 = vsel %vm1050_vm2, %v1421_v58, -inf }
 0x402   :  { %v5304_v62 = vpop.f32.mrb[11].mxu0  ;;  %v1448_v63 = vsel %vm1050_vm2, %v6013_v5, -inf  ;;  %1434 = vmax.xlane.f32.xlu0 %v1433_v12 }
 0x403   :  { %1449 = vmax.xlane.f32.xlu1 %v1448_v63 }
 0x406   :  { %v1275_v18 = vpop.f32.mrb[16].mxu1 }
 0x407   :  { %v1423_v3 = vmul.f32 0.35355338, %v1275_v18  ;;  %v5285_v4 = vpop.f32.mrb[17].mxu1 }
 0x408   :  { %v1278_v13 = vpop.f32.mrb[18].mxu1 }
 0x409   :  { %v5286_v17 = vpop.f32.mrb[19].mxu1  ;;  %v1439_v19 = vsel %vm1050_vm2, %v1423_v3, -inf }
 0x40a   :  { %1440 = vmax.xlane.f32.xlu0 %v1439_v19 }
 0x40e   :  { %v1367_v20 = vpop.f32.mrb[20].mxu1 }
 0x40f   :  { %v6019_v8 = vmul.f32 0.35355338, %v1367_v20  ;;  %v5297_v9 = vpop.f32.mrb[21].mxu1 }
 0x410   :  { %v1370_v21 = vpop.f32.mrb[22].mxu1 }
 0x411   :  { %v5298_v14 = vpop.f32.mrb[23].mxu1  ;;  %v1445_v16 = vsel %vm1050_vm2, %v6019_v8, -inf }
 0x412   :  { %1446 = vmax.xlane.f32.xlu0 %v1445_v16 }
 0x414   :  { %750 = vrot.lane.b32.xlu1 %v5839_v44, %s5742_s7 }
 0x418   :  { %754 = vrot.lane.b32.xlu1 %v5837_v43, %s5742_s7 }
 0x41c   :  { %758 = vrot.lane.b32.xlu1 %v5845_v45, %s5742_s7 }
 0x428   :  { %746 = vrot.lane.b32.xlu0 %v5819_v39, %s5742_s7 }
 0x47f   :  { %v1429_v22 = vpop.xlane.xlu0 %1428 }
 0x480   :  { %v1451_v23 = vsub.f32 %v1419_v29, %v1429_v22 }
 0x482   :  { %v1459_v28 = vmul.f32 1.442695, %v1451_v23 }
 0x483   :  { %v1438_v26 = vpop.xlane.xlu0 %1437 }
 0x484   :  { %5623 = vpow2.f32 %v1459_v28  ;;  %v1454_v27 = vsub.f32 %v1422_v35, %v1438_v26 }
 0x486   :  { %v1465_v31 = vmul.f32 1.442695, %v1454_v27 }
 0x487   :  { %v1432_v32 = vpop.xlane.xlu1 %1431 }
 0x488   :  { %5625 = vpow2.f32 %v1465_v31  ;;  %v1452_v33 = vsub.f32 %v1420_v49, %v1432_v32 }
 0x48a   :  { %v1461_v44 = vmul.f32 1.442695, %v1452_v33 }
 0x48b   :  { %v1444_v34 = vpop.xlane.xlu1 %1443 }
 0x48c   :  { %5627 = vpow2.f32 %v1461_v44  ;;  %v1456_v43 = vsub.f32 %v1424_v53, %v1444_v34 }
 0x48e   :  { %v6031_v36 = vpop.eup %5623  ;;  %v1469_v45 = vmul.f32 1.442695, %v1456_v43 }
 0x48f   :  { %v1435_v37 = vpop.xlane.xlu0 %1434  ;;  %v1475_v39 = vsel %vm1050_vm2, %v6031_v36, 0.0 }
 0x490   :  { %5629 = vpow2.f32 %v1469_v45  ;;  %v6035_v29 = vpop.xlane.xlu1 %1449  ;;  %v1453_v38 = vsub.f32 %v1421_v58, %v1435_v37  ;;  %1476 = vadd.xlane.f32.xlu0 %v1475_v39 }
 0x492   :  { %v6037_v35 = vpop.eup %5625  ;;  %v1463_v40 = vmul.f32 1.442695, %v1453_v38 }
 0x493   :  { %v1484_v42 = vsel %vm1050_vm2, %v6037_v35, 0.0 }
 0x494   :  { %5631 = vpow2.f32 %v1463_v40  ;;  %v751_v49 = vpop.permute.xlu1 %750  ;;  %1485 = vadd.xlane.f32.xlu1 %v1484_v42 }
 0x496   :  { %v6041_v50 = vpop.eup %5627 }
 0x497   :  { %v1441_v51 = vpop.xlane.xlu0 %1440  ;;  %v1478_v52 = vsel %vm1050_vm2, %v6041_v50, 0.0 }
 0x498   :  { %v1455_v53 = vsub.f32 %v1423_v3, %v1441_v51  ;;  %1479 = vadd.xlane.f32.xlu1 %v1478_v52  ;;  %v755_v54 = vpop.permute.xlu1 %754 }
 0x49a   :  { %v6045_v55 = vpop.eup %5629  ;;  %v1467_v57 = vmul.f32 1.442695, %v1455_v53 }
 0x49b   :  { %v1490_v60 = vsel %vm1050_vm2, %v6045_v55, 0.0 }
 0x49c   :  { %5633 = vpow2.f32 %v1467_v57  ;;  %1491 = vadd.xlane.f32.xlu0 %v1490_v60  ;;  %v759_v1 = vpop.permute.xlu1 %758 }
 0x49d   :  { %v786_v59 = vcombine.low %v751_v49, %v759_v1  ;;  %v787_v6 = vcombine.high %v751_v49, %v759_v1 }
 0x49e   :  { %v6049_v61 = vpop.eup %5631 }
 0x49f   :  { %v1447_v2 = vpop.xlane.xlu0 %1446  ;;  %v1481_v58 = vsel %vm1050_vm2, %v6049_v61, 0.0  ;;  %v794_v62 = vrot.slane %v786_v59, %v5868_v56  ;;  %v801_v63 = vrot.slane %v787_v6, %v5868_v56 }
 0x4a0   :  { %1482 = vadd.xlane.f32.xlu0 %v1481_v58  ;;  %v1457_v60 = vsub.f32 %v6019_v8, %v1447_v2 }
 0x4a2   :  { %v1471_v1 = vmul.f32 1.442695, %v1457_v60 }
 0x4a3   :  { %v747_v7 = vpop.permute.xlu0 %746 }
 0x4a4   :  { %v770_v10 = vcombine.low %v747_v7, %v755_v54  ;;  %v771_v11 = vcombine.high %v747_v7, %v755_v54 }
 0x4a6   :  { %v6053_v12 = vpop.eup %5633  ;;  %v778_v18 = vrot.slane %v770_v10, %v5868_v56  ;;  %v785_v3 = vrot.slane %v771_v11, %v5868_v56 }
 0x4a7   :  { %v1487_v4 = vsel %vm1050_vm2, %v6053_v12, 0.0 }
 0x4a8   :  { %v802_v13 = vcombine.low %v778_v18, %v794_v62  ;;  %v803_v17 = vcombine.high %v778_v18, %v794_v62  ;;  %v818_v19 = vcombine.low %v785_v3, %v801_v63  ;;  %v819_v20 = vcombine.high %v785_v3, %v801_v63  ;;  %1488 = vadd.xlane.f32.xlu0 %v1487_v4 }
 0x4a9   :  { %752 = vrot.lane.b32.xlu1 %v5853_v47, %s5742_s7 }
 0x4aa   :  { %v810_v9 = vrot.slane %v802_v13, %v5879_v0  ;;  %v817_v21 = vrot.slane %v803_v17, %v5879_v0  ;;  %v826_v14 = vrot.slane %v818_v19, %v5879_v0  ;;  %v833_v16 = vrot.slane %v819_v20, %v5879_v0 }
 0x4ac   :  { %v906_v22 = vcombine.low %v810_v9, %v817_v21  ;;  %v5039_v23 = vcombine.high %v810_v9, %v817_v21  ;;  %v922_v28 = vcombine.low %v826_v14, %v833_v16  ;;  %v5040_v26 = vcombine.high %v826_v14, %v833_v16 }
 0x4ad   :  { %756 = vrot.lane.b32.xlu1 %v5851_v46, %s5742_s7 }
 0x4ae   :  { %v913_v27 = vrot.slane %v906_v22, %v5868_v56  ;;  %v921_v31 = vrot.slane %v5039_v23, %v5868_v56  ;;  %v929_v47 = vrot.slane %v922_v28, %v5868_v56  ;;  %v937_v32 = vrot.slane %v5040_v26, %v5868_v56 }
 0x4b0   :  { %v938_v33 = vcombine.low %v913_v27, %v921_v31  ;;  %v954_v44 = vcombine.low %v929_v47, %v937_v32  ;;  %v939_v34 = vcombine.high %v913_v27, %v921_v31  ;;  %v955_v43 = vcombine.high %v929_v47, %v937_v32 }
 0x4b1   :  { %760 = vrot.lane.b32.xlu1 %v5859_v48, %s5742_s7  ;;  %v1458_v48 = vsub.f32 %v6013_v5, %v6035_v29 }
 0x4b2   :  { %v946_v45 = vrot.slane %v938_v33, %v5879_v0  ;;  %v962_v37 = vrot.slane %v954_v44, %v5879_v0  ;;  %v953_v46 = vrot.slane %v939_v34, %v5879_v0  ;;  %v969_v39 = vrot.slane %v955_v43, %v5879_v0 }
 0x4b3   :  { %v1473_v57 = vmul.f32 1.442695, %v1458_v48 }
 0x4b4   :  { %v970_v38 = vcombine.low %v946_v45, %v962_v37  ;;  %v971_v40 = vcombine.high %v946_v45, %v962_v37  ;;  %v972_v42 = vcombine.low %v953_v46, %v969_v39  ;;  %v973_v49 = vcombine.high %v953_v46, %v969_v39 }
 0x4b5   :  { %5635 = vpow2.f32 %v1473_v57 }
 0x4b6   :  { %v1042_v51 = vpack.c.bf16 %v970_v38, %v970_v38  ;;  %v1043_v52 = vpack.c.bf16 %v971_v40, %v971_v40  ;;  %5637 = vpow2.f32 %v1471_v1  ;;  %v1044_v62 = vpack.c.bf16 %v972_v42, %v972_v42 }
 0x4b7   :  { %v1045_v17 = vpack.c.bf16 %v973_v49, %v973_v49 }
 0x4b8   :  { %v1528_v53 = vsel %vm1526_vm3, %v1042_v51, 0  ;;  %v1574_v54 = vsel %vm1526_vm3, %v1043_v52, 0  ;;  %v1620_v18 = vsel %vm1526_vm3, %v1044_v62, 0 }
 0x4b9   :  { %5306 = vmatpush3.bf16.msra.mxu1 %v1528_v53  ;;  %5312 = vmatpush3.bf16.msra.mxu0 %v1574_v54  ;;  %v1666_v21 = vsel %vm1526_vm3, %v1045_v17, 0 }
 0x4ba   :  { %5317 = vmatprep.subr.bf16.mxu1 %v5734_v15  ;;  %5323 = vmatprep.subr.bf16.mxu0 %v5734_v15 }
 0x4be   :  { %748 = vrot.lane.b32.xlu0 %v5825_v41, %s5742_s7 }
 0x4bf   :  { %v6088_v58 = vpop.eup %5635 }
 0x4c0   :  { %v1496_v59 = vsel %vm1050_vm2, %v6088_v58, 0.0  ;;  %v6092_v6 = vpop.eup %5637 }
 0x4c1   :  { %v1493_v41 = vsel %vm1050_vm2, %v6092_v6, 0.0 }
 0x4d5   :  { %1497 = vadd.xlane.f32.xlu1 %v1496_v59 }
 0x4dd   :  { %1494 = vadd.xlane.f32.xlu0 %v1493_v41 }
 0x51d   :  { %v1477_v7 = vpop.xlane.xlu0 %1476 }
 0x51e   :  { %5639 = vrcp.f32 %v1477_v7 }
 0x521   :  { %v1486_v5 = vpop.xlane.xlu1 %1485 }
 0x525   :  { %v1480_v29 = vpop.xlane.xlu1 %1479 }
 0x526   :  { %5641 = vrcp.f32 %v1480_v29 }
 0x527   :  { %5643 = vrcp.f32 %v1486_v5 }
 0x528   :  { %v5640_v8 = vpop.eup %5639 }
 0x529   :  { %v1500_v2 = vmul.f32 %v5640_v8, %v6031_v36  ;;  %v753_v10 = vpop.permute.xlu1 %752  ;;  %v1492_v11 = vpop.xlane.xlu0 %1491 }
 0x52b   :  { %v1515_v63 = vpack.c.bf16 %v1500_v2, %v1500_v2 }
 0x52d   :  { %5308 = vmatmul.mubr.msk.bf16.vlgmr.msra.gmra.mrb[24].mxu1 %vm1050_vm2, %v1515_v63  ;;  %v1483_v3 = vpop.xlane.xlu0 %1482  ;;  %v757_v4 = vpop.permute.xlu1 %756 }
 0x52e   :  { %5318 = vmatpush3.bf16.msra.mxu1 %v1620_v18  ;;  %5645 = vrcp.f32 %v1483_v3  ;;  %5319 = vmatprep.mubr.msk.bf16.mxu1 %vm5735_vm1, %v5734_v15 }
 0x52f   :  { %5329 = vmatprep.subr.bf16.mxu1 %v5734_v15  ;;  %5647 = vrcp.f32 %v1492_v11 }
 0x530   :  { %v5642_v13 = vpop.eup %5641 }
 0x531   :  { %v1502_v36 = vmul.f32 %v5642_v13, %v6041_v50  ;;  %v5644_v20 = vpop.eup %5643  ;;  %v761_v9 = vpop.permute.xlu1 %760 }
 0x532   :  { %v1506_v16 = vmul.f32 %v5644_v20, %v6037_v35  ;;  %v854_v23 = vcombine.low %v753_v10, %v761_v9  ;;  %v855_v50 = vcombine.high %v753_v10, %v761_v9 }
 0x533   :  { %v1516_v19 = vpack.c.bf16 %v1502_v36, %v1502_v36 }
 0x534   :  { %v1518_v32 = vpack.c.bf16 %v1506_v16, %v1506_v16  ;;  %v862_v33 = vrot.slane %v854_v23, %v5868_v56  ;;  %v869_v44 = vrot.slane %v855_v50, %v5868_v56 }
 0x535   :  { %5314 = vmatmul.mubr.msk.bf16.vlgmr.msra.gmra.mrb[12].mxu0 %vm1050_vm2, %v1516_v19  ;;  %v1489_v14 = vpop.xlane.xlu0 %1488 }
 0x536   :  { %5324 = vmatpush3.bf16.msra.mxu0 %v1666_v21  ;;  %5325 = vmatprep.mubr.msk.bf16.mxu0 %vm5735_vm1, %v5734_v15  ;;  %5649 = vrcp.f32 %v1489_v14 }
 0x537   :  { %5335 = vmatprep.subr.bf16.mxu0 %v5734_v15 }
 0x538   :  { %v5646_v22 = vpop.eup %5645 }
 0x539   :  { %v1504_v28 = vmul.f32 %v5646_v22, %v6049_v61  ;;  %v749_v26 = vpop.permute.xlu0 %748  ;;  %v5648_v7 = vpop.eup %5647 }
 0x53a   :  { %v838_v27 = vcombine.low %v749_v26, %v757_v4  ;;  %v839_v31 = vcombine.high %v749_v26, %v757_v4  ;;  %v1510_v3 = vmul.f32 %v5648_v7, %v6045_v55 }
 0x53b   :  { %v1517_v47 = vpack.c.bf16 %v1504_v28, %v1504_v28  ;;  %v5593_v28 = vld [vmem:[%s6874_s1 + $0x4] ss:$8 sps:$4 sm:$0xff]  }
 0x53c   :  { %v846_v34 = vrot.slane %v838_v27, %v5868_v56  ;;  %v853_v35 = vrot.slane %v839_v31, %v5868_v56  ;;  %v1520_v14 = vpack.c.bf16 %v1510_v3, %v1510_v3  ;;  %v5596_v27 = vld [vmem:[%s6874_s1 + $0x14] ss:$8 sps:$4 sm:$0xff]  }
 0x53d   :  { %5320 = vmatmul.mubr.msk.bf16.vlgmr.msra.gmra.mrb[28].mxu1 %vm1050_vm2, %v1517_v47  ;;  %5326 = vmatmul.mubr.msk.bf16.vlgmr.msra.gmra.mrb[16].mxu0 %vm1050_vm2, %v1518_v32  ;;  %v5703_v32 = vld [vmem:[%s6874_s1] ss:$8 sps:$4 sm:$0xff]  }
 0x53e   :  { %v870_v43 = vcombine.low %v846_v34, %v862_v33  ;;  %v871_v61 = vcombine.high %v846_v34, %v862_v33  ;;  %v886_v45 = vcombine.low %v853_v35, %v869_v44  ;;  %v887_v37 = vcombine.high %v853_v35, %v869_v44  ;;  %5331 = vmatprep.mubr.msk.bf16.mxu1 %vm5735_vm1, %v5734_v15 }
 0x53f   :  { %5337 = vmatprep.mubr.msk.bf16.mxu0 %vm5735_vm1, %v5734_v15  ;;  %2197 = vrot.lane.b32.xlu0 %v5703_v32, %s5743_s14 }
 0x540   :  { %v878_v46 = vrot.slane %v870_v43, %v5879_v0  ;;  %v885_v39 = vrot.slane %v871_v61, %v5879_v0  ;;  %v894_v38 = vrot.slane %v886_v45, %v5879_v0  ;;  %v901_v40 = vrot.slane %v887_v37, %v5879_v0  ;;  %v5650_v10 = vpop.eup %5649 }
 0x541   :  { %v1508_v4 = vmul.f32 %v5650_v10, %v6053_v12 }
 0x542   :  { %v974_v42 = vcombine.low %v878_v46, %v885_v39  ;;  %v5041_v49 = vcombine.high %v878_v46, %v885_v39  ;;  %v990_v51 = vcombine.low %v894_v38, %v901_v40  ;;  %v5042_v52 = vcombine.high %v894_v38, %v901_v40 }
 0x543   :  { %v1519_v21 = vpack.c.bf16 %v1508_v4, %v1508_v4 }
 0x544   :  { %v981_v53 = vrot.slane %v974_v42, %v5868_v56  ;;  %v989_v54 = vrot.slane %v5041_v49, %v5868_v56  ;;  %v997_v48 = vrot.slane %v990_v51, %v5868_v56  ;;  %v1005_v57 = vrot.slane %v5042_v52, %v5868_v56 }
 0x546   :  { %v1006_v60 = vcombine.low %v981_v53, %v989_v54  ;;  %v1022_v1 = vcombine.low %v997_v48, %v1005_v57  ;;  %v1007_v59 = vcombine.high %v981_v53, %v989_v54  ;;  %v1023_v41 = vcombine.high %v997_v48, %v1005_v57 }
 0x548   :  { %v1014_v5 = vrot.slane %v1006_v60, %v5879_v0  ;;  %v1030_v29 = vrot.slane %v1022_v1, %v5879_v0  ;;  %v1021_v8 = vrot.slane %v1007_v59, %v5879_v0  ;;  %v1037_v2 = vrot.slane %v1023_v41, %v5879_v0 }
 0x54a   :  { %v1038_v11 = vcombine.low %v1014_v5, %v1030_v29  ;;  %v1039_v62 = vcombine.high %v1014_v5, %v1030_v29  ;;  %v1040_v63 = vcombine.low %v1021_v8, %v1037_v2  ;;  %v1041_v18 = vcombine.high %v1021_v8, %v1037_v2 }
 0x54c   :  { %v1046_v13 = vpack.c.bf16 %v1038_v11, %v1038_v11  ;;  %v1047_v36 = vpack.c.bf16 %v1039_v62, %v1039_v62  ;;  %v1048_v20 = vpack.c.bf16 %v1040_v63, %v1040_v63  ;;  %v1049_v9 = vpack.c.bf16 %v1041_v18, %v1041_v18 }
 0x54e   :  { %v1712_v17 = vsel %vm1526_vm3, %v1046_v13, 0  ;;  %v1758_v19 = vsel %vm1526_vm3, %v1047_v36, 0  ;;  %v1804_v55 = vsel %vm1526_vm3, %v1048_v20, 0  ;;  %v1850_v12 = vsel %vm1526_vm3, %v1049_v9, 0 }
 0x54f   :  { %5330 = vmatpush3.bf16.msra.mxu1 %v1712_v17  ;;  %5336 = vmatpush3.bf16.msra.mxu0 %v1758_v19 }
 0x550   :  { %5341 = vmatprep.subr.bf16.mxu1 %v5734_v15  ;;  %5347 = vmatprep.subr.bf16.mxu0 %v5734_v15 }
 0x552   :  { %5332 = vmatmul.mubr.msk.bf16.vlgmr.msra.gmra.mrb[32].mxu1 %vm1050_vm2, %v1519_v21  ;;  %5338 = vmatmul.mubr.msk.bf16.vlgmr.msra.gmra.mrb[20].mxu0 %vm1050_vm2, %v1520_v14 }
 0x553   :  { %5342 = vmatpush3.bf16.msra.mxu1 %v1804_v55  ;;  %5348 = vmatpush3.bf16.msra.mxu0 %v1850_v12 }
 0x554   :  { %5349 = vmatprep.mubr.msk.bf16.mxu0 %vm5735_vm1, %v5734_v15  ;;  %5343 = vmatprep.mubr.msk.bf16.mxu1 %vm5735_vm1, %v5734_v15 }
 0x555   :  { %5353 = vmatprep.subr.bf16.mxu1 %v5734_v15  ;;  %5361 = vmatprep.subr.bf16.mxu0 %v5734_v15 }
 0x562   :  { %v1498_v16 = vpop.xlane.xlu1 %1497 }
 0x563   :  { %5651 = vrcp.f32 %v1498_v16 }
 0x56a   :  { %v1495_v22 = vpop.xlane.xlu0 %1494 }
 0x56b   :  { %5653 = vrcp.f32 %v1495_v22 }
 0x56d   :  { %v5652_v23 = vpop.eup %5651 }
 0x56e   :  { %v1514_v50 = vmul.f32 %v5652_v23, %v6088_v58 }
 0x570   :  { %v1522_v26 = vpack.c.bf16 %v1514_v50, %v1514_v50 }
 0x572   :  { %5350 = vmatmul.mubr.msk.bf16.vlgmr.msra.gmra.mrb[24].mxu0 %vm1050_vm2, %v1522_v26 }
 0x573   :  { %5362 = vmatpush3.bf16.msra.mxu0 %v5593_v28  ;;  %5365 = vmatprep.mubr.msk.bf16.mxu0 %vm5735_vm1, %v5734_v15 }
 0x574   :  { %5363 = vmatprep.subr.bf16.mxu0 %v5734_v15 }
 0x575   :  { %v5654_v31 = vpop.eup %5653 }
 0x576   :  { %v1512_v58 = vmul.f32 %v5654_v31, %v6092_v6 }
 0x577   :  { %5364 = vmatpush3.bf16.msra.mxu0 %v5596_v27 }
 0x578   :  { %v1521_v47 = vpack.c.bf16 %v1512_v58, %v1512_v58  ;;  %5389 = vmatprep.subr.bf16.mxu0 %v5734_v15 }
 0x57a   :  { %5344 = vmatmul.mubr.msk.bf16.vlgmr.msra.gmra.mrb[36].mxu1 %vm1050_vm2, %v1521_v47 }
 0x57b   :  { %5357 = vmatprep.mubr.msk.bf16.mxu1 %vm5735_vm1, %v5734_v15 }
 0x600   :  { %v1564_v33 = vpop.f32.mrb[24].mxu1 }
 0x601   :  { %v5309_v44 = vpop.f32.mrb[25].mxu1 }
 0x602   :  { %v1567_v34 = vpop.f32.mrb[26].mxu1 }
 0x603   :  { %v5310_v6 = vpop.f32.mrb[27].mxu1 }
 0x608   :  { %v1610_v35 = vpop.f32.mrb[12].mxu0 }
 0x609   :  { %v5315_v43 = vpop.f32.mrb[13].mxu0 }
 0x60a   :  { %v1613_v61 = vpop.f32.mrb[14].mxu0 }
 0x60b   :  { %v5316_v45 = vpop.f32.mrb[15].mxu0 }
 0x610   :  { %v1656_v37 = vpop.f32.mrb[28].mxu1  ;;  %v1702_v46 = vpop.f32.mrb[16].mxu0 }
 0x611   :  { %v1892_v39 = vcombine.low %v1564_v33, %v1656_v37  ;;  %v1893_v38 = vcombine.high %v1564_v33, %v1656_v37  ;;  %v1908_v40 = vcombine.low %v1610_v35, %v1702_v46  ;;  %v1909_v42 = vcombine.high %v1610_v35, %v1702_v46  ;;  %v5321_v49 = vpop.f32.mrb[29].mxu1  ;;  %v5327_v51 = vpop.f32.mrb[17].mxu0 }
 0x612   :  { %v1659_v52 = vpop.f32.mrb[30].mxu1  ;;  %v1705_v53 = vpop.f32.mrb[18].mxu0 }
 0x613   :  { %v1900_v54 = vrot.slane %v1892_v39, %v5868_v56  ;;  %v1907_v48 = vrot.slane %v1893_v38, %v5868_v56  ;;  %v1916_v57 = vrot.slane %v1908_v40, %v5868_v56  ;;  %v1923_v60 = vrot.slane %v1909_v42, %v5868_v56  ;;  %v5322_v1 = vpop.f32.mrb[31].mxu1  ;;  %v5328_v59 = vpop.f32.mrb[19].mxu0 }
 0x614   :  { %v2198_v37 = vpop.permute.xlu0 %2197 }
 0x615   :  { %v1924_v41 = vcombine.low %v1900_v54, %v1916_v57  ;;  %v1925_v7 = vcombine.high %v1900_v54, %v1916_v57  ;;  %v1940_v5 = vcombine.low %v1907_v48, %v1923_v60  ;;  %v1941_v29 = vcombine.high %v1907_v48, %v1923_v60  ;;  %5354 = vmatpush3.bf16.msra.mxu1 %v2198_v37 }
 0x616   :  { %5355 = vmatprep.subr.bf16.mxu1 %v5734_v15 }
 0x617   :  { %v1932_v8 = vrot.slane %v1924_v41, %v5879_v0  ;;  %v1939_v2 = vrot.slane %v1925_v7, %v5879_v0  ;;  %v1948_v10 = vrot.slane %v1940_v5, %v5879_v0  ;;  %v1955_v11 = vrot.slane %v1941_v29, %v5879_v0 }
 0x619   :  { %v2028_v62 = vcombine.low %v1932_v8, %v1939_v2  ;;  %v5059_v63 = vcombine.high %v1932_v8, %v1939_v2  ;;  %v2044_v18 = vcombine.low %v1948_v10, %v1955_v11  ;;  %v5060_v3 = vcombine.high %v1948_v10, %v1955_v11 }
 0x61b   :  { %v2035_v4 = vrot.slane %v2028_v62, %v5868_v56  ;;  %v2043_v13 = vrot.slane %v5059_v63, %v5868_v56  ;;  %v2051_v36 = vrot.slane %v2044_v18, %v5868_v56  ;;  %v2059_v17 = vrot.slane %v5060_v3, %v5868_v56 }
 0x61d   :  { %v2061_v19 = vcombine.high %v2035_v4, %v2043_v13  ;;  %v2077_v20 = vcombine.high %v2051_v36, %v2059_v17  ;;  %v2060_v9 = vcombine.low %v2035_v4, %v2043_v13  ;;  %v2076_v21 = vcombine.low %v2051_v36, %v2059_v17 }
 0x61f   :  { %v6181_v14 = vrot.slane %v2061_v19, %v5879_v0  ;;  %v6184_v55 = vrot.slane %v2077_v20, %v5879_v0  ;;  %v6187_v12 = vrot.slane %v2060_v9, %v5879_v0  ;;  %v6190_v16 = vrot.slane %v2076_v21, %v5879_v0 }
 0x621   :  { %v2094_v22 = vcombine.low %v6181_v14, %v6184_v55  ;;  %v2092_v23 = vcombine.low %v6187_v12, %v6190_v16  ;;  %v2093_v50 = vcombine.high %v6187_v12, %v6190_v16  ;;  %v2095_v28 = vcombine.high %v6181_v14, %v6184_v55 }
 0x625   :  { %v1748_v26 = vpop.f32.mrb[32].mxu1  ;;  %v1794_v27 = vpop.f32.mrb[20].mxu0 }
 0x626   :  { %v5333_v31 = vpop.f32.mrb[33].mxu1  ;;  %v5339_v58 = vpop.f32.mrb[21].mxu0 }
 0x627   :  { %v1751_v47 = vpop.f32.mrb[34].mxu1  ;;  %v1797_v32 = vpop.f32.mrb[22].mxu0 }
 0x628   :  { %v5334_v33 = vpop.f32.mrb[35].mxu1  ;;  %v5340_v44 = vpop.f32.mrb[23].mxu0  ;;  %v5704_v47 = vld [vmem:[%s6874_s1 + $0x10] ss:$8 sps:$4 sm:$0xff]  }
 0x645   :  { %v1886_v34 = vpop.f32.mrb[24].mxu0 }
 0x646   :  { %v1976_v6 = vcombine.low %v1794_v27, %v1886_v34  ;;  %v1977_v35 = vcombine.high %v1794_v27, %v1886_v34  ;;  %v5351_v43 = vpop.f32.mrb[25].mxu0 }
 0x647   :  { %v1889_v61 = vpop.f32.mrb[26].mxu0 }
 0x648   :  { %v5352_v45 = vpop.f32.mrb[27].mxu0  ;;  %v1984_v49 = vrot.slane %v1976_v6, %v5868_v56  ;;  %v1991_v51 = vrot.slane %v1977_v35, %v5868_v56 }
 0x64d   :  { %v1840_v46 = vpop.f32.mrb[36].mxu1 }
 0x64e   :  { %v1960_v39 = vcombine.low %v1748_v26, %v1840_v46  ;;  %v1961_v38 = vcombine.high %v1748_v26, %v1840_v46  ;;  %v5345_v40 = vpop.f32.mrb[37].mxu1 }
 0x64f   :  { %v1843_v42 = vpop.f32.mrb[38].mxu1 }
 0x650   :  { %v1968_v52 = vrot.slane %v1960_v39, %v5868_v56  ;;  %v1975_v53 = vrot.slane %v1961_v38, %v5868_v56  ;;  %v5346_v54 = vpop.f32.mrb[39].mxu1  ;;  %v6241_v38 = vld [vmem:[%s6876_s3] sm:$0xff] }
 0x652   :  { %v1992_v48 = vcombine.low %v1968_v52, %v1984_v49  ;;  %v1993_v57 = vcombine.high %v1968_v52, %v1984_v49  ;;  %v2008_v60 = vcombine.low %v1975_v53, %v1991_v51  ;;  %v2009_v1 = vcombine.high %v1975_v53, %v1991_v51  ;;  %v5706_v49 = vld [vmem:[%s6873_s0] sm:$0xff] }
 0x654   :  { %v2000_v59 = vrot.slane %v1992_v48, %v5879_v0  ;;  %v2007_v41 = vrot.slane %v1993_v57, %v5879_v0  ;;  %v2016_v7 = vrot.slane %v2008_v60, %v5879_v0  ;;  %v2023_v5 = vrot.slane %v2009_v1, %v5879_v0  ;;  %v5707_v48 = vld [vmem:[%s6873_s0 + $0x8] sm:$0xff] }
 0x656   :  { %v2096_v29 = vcombine.low %v2000_v59, %v2007_v41  ;;  %v5061_v8 = vcombine.high %v2000_v59, %v2007_v41  ;;  %v2112_v2 = vcombine.low %v2016_v7, %v2023_v5  ;;  %v5062_v10 = vcombine.high %v2016_v7, %v2023_v5 }
 0x658   :  { %v2103_v11 = vrot.slane %v2096_v29, %v5868_v56  ;;  %v2111_v62 = vrot.slane %v5061_v8, %v5868_v56  ;;  %v2119_v63 = vrot.slane %v2112_v2, %v5868_v56  ;;  %v2127_v18 = vrot.slane %v5062_v10, %v5868_v56 }
 0x65a   :  { %v2129_v3 = vcombine.high %v2103_v11, %v2111_v62  ;;  %v2145_v4 = vcombine.high %v2119_v63, %v2127_v18  ;;  %v2128_v13 = vcombine.low %v2103_v11, %v2111_v62  ;;  %v2144_v36 = vcombine.low %v2119_v63, %v2127_v18 }
 0x65c   :  { %v2143_v17 = vrot.slane %v2129_v3, %v5879_v0  ;;  %v2159_v19 = vrot.slane %v2145_v4, %v5879_v0  ;;  %v2136_v20 = vrot.slane %v2128_v13, %v5879_v0  ;;  %v2152_v9 = vrot.slane %v2144_v36, %v5879_v0  ;;  %v5597_v3 = vld [vmem:[%s6875_s2] sm:$0xff]   ;;  %v5598_v4 = vld [vmem:[%s6875_s2 + $0x8] sm:$0xff]   ;;  %v5599_v13 = vld [vmem:[%s6875_s2 + $0x10] sm:$0xff]  }
 0x65d   :  { %v5600_v36 = vld [vmem:[%s6875_s2 + $0x18] sm:$0xff]  }
 0x65e   :  { %v2162_v21 = vcombine.low %v2143_v17, %v2159_v19  ;;  %v2161_v14 = vcombine.high %v2136_v20, %v2152_v9  ;;  %v2160_v55 = vcombine.low %v2136_v20, %v2152_v9  ;;  %v2163_v26 = vcombine.high %v2143_v17, %v2159_v19  ;;  %v5601_v17 = vld [vmem:[%s6875_s2 + $0x20] sm:$0xff]   ;;  %v5602_v19 = vld [vmem:[%s6875_s2 + $0x28] sm:$0xff]  }
 0x660   :  { %v5566_v27 = vpack.i.bf16 %v2162_v21, %v2094_v22  ;;  %v5561_v31 = vpack.i.bf16 %v2161_v14, %v2093_v50  ;;  %v5571_v58 = vpack.i.bf16 %v2163_v26, %v2095_v28 }
 0x662   :  { %5567 = vrot.lane.b32.xlu0 %v5566_v27, %s5744_s15  ;;  %5562 = vrot.lane.b32.xlu1 %v5561_v31, %s5745_s16  ;;  %v6289_v27 = vsub.s32 2, %v5803_v24 }
 0x666   :  { %5572 = vrot.lane.b32.xlu1 %v5571_v58, %s5746_s17  ;;  %2199 = vrot.lane.b32.xlu0 %v5704_v47, %s5743_s14  ;;  %v2284_v58 = vrot.slane %v6241_v38, %v6289_v27 }
 0x6d4   :  { %v5568_v32 = vpop.permute.xlu0 %5567  ;;  %v5563_v33 = vpop.permute.xlu1 %5562 }
 0x6d5   :  { %v5565_v22 = vunpack.i.h.bf16 %v5563_v33  ;;  %v5564_v50 = vunpack.i.l.bf16 %v5563_v33  ;;  %v5570_v28 = vunpack.i.h.bf16 %v5568_v32  ;;  %v5569_v44 = vunpack.i.l.bf16 %v5568_v32 }
 0x6d6   :  { %v2289_v32 = vsub.s32 3, %v5803_v24 }
 0x6d7   :  { %v2188_v34 = vsel %vm1050_vm2, %v2092_v23, %v5564_v50  ;;  %v2189_v6 = vsel %vm1050_vm2, %v2160_v55, %v5565_v22  ;;  %v2251_v23 = vsub.s32 4, %v5803_v24 }
 0x6d8   :  { %v5573_v35 = vpop.permute.xlu1 %5572  ;;  %v2200_v43 = vpop.permute.xlu0 %2199  ;;  %v2191_v37 = vsel %vm2190_vm4, %v2188_v34, %v5569_v44  ;;  %v2192_v46 = vsel %vm2190_vm4, %v2189_v6, %v5570_v28  ;;  %v2290_v28 = vrot.slane %v6241_v38, %v2289_v32 }
 0x6d9   :  { %v5575_v61 = vunpack.i.h.bf16 %v5573_v35  ;;  %v5574_v45 = vunpack.i.l.bf16 %v5573_v35  ;;  %5356 = vmatpush3.bf16.msra.mxu1 %v2200_v43  ;;  %v2252_v40 = vrot.slane %v6241_v38, %v2251_v23  ;;  %v5603_v43 = vld [vmem:[%s6875_s2 + $0x30] sm:$0xff]  }
 0x6da   :  { %5369 = vmatprep.subr.bf16.mxu1 %v5734_v15 }
 0x6db   :  { %v2194_v39 = vsel %vm2193_vm5, %v2191_v37, %v5574_v45  ;;  %v2195_v12 = vsel %vm2193_vm5, %v2192_v46, %v5575_v61  ;;  %v5604_v61 = vld [vmem:[%s6875_s2 + $0x38] sm:$0xff]   ;;  %v2296_v45 = vsub.s32 6, %v5803_v24 }
 0x6dc   :  { %v2196_v16 = vpack.c.bf16 %v2195_v12, %v2194_v39 }
 0x6dd   :  { %v2297_v37 = vrot.slane %v6241_v38, %v2296_v45 }
 0x6de   :  { %5358 = vmatmul.mubr.msk.bf16.vlgmr.msra.gmra.mrb[40].mxu1 %vm45_vm0, %v2196_v16 }
 0x6df   :  { %5385 = vmatprep.mubr.msk.bf16.mxu1 %vm5735_vm1, %v5734_v15  ;;  %5370 = vmatpush3.bf16.msra.mxu1 %v5597_v3 }
 0x6e0   :  { %5371 = vmatprep.subr.bf16.mxu1 %v5734_v15 }
 0x6e3   :  { %5372 = vmatpush3.bf16.msra.mxu1 %v5598_v4 }
 0x6e4   :  { %5373 = vmatprep.subr.bf16.mxu1 %v5734_v15 }
 0x6e7   :  { %5374 = vmatpush3.bf16.msra.mxu1 %v5599_v13 }
 0x6e8   :  { %5375 = vmatprep.subr.bf16.mxu1 %v5734_v15 }
 0x6eb   :  { %5376 = vmatpush3.bf16.msra.mxu1 %v5600_v36  ;;  %v6335_v36 = vld [vmem:[%s6874_s1 + $0x20] ss:$8 sps:$4 sm:$0xff]  }
 0x6ec   :  { %5377 = vmatprep.subr.bf16.mxu1 %v5734_v15 }
 0x6ef   :  { %5378 = vmatpush3.bf16.msra.mxu1 %v5601_v17  ;;  %v5607_v17 = vld [vmem:[%s6874_s1 + $0x30] ss:$8 sps:$4 sm:$0xff]  }
 0x6f0   :  { %5379 = vmatprep.subr.bf16.mxu1 %v5734_v15 }
 0x6f3   :  { %5380 = vmatpush3.bf16.msra.mxu1 %v5602_v19 }
 0x6f4   :  { %5381 = vmatprep.subr.bf16.mxu1 %v5734_v15 }
 0x6f7   :  { %5382 = vmatpush3.bf16.msra.mxu1 %v5603_v43 }
 0x6f8   :  { %5383 = vmatprep.subr.bf16.mxu1 %v5734_v15 }
 0x6fb   :  { %5384 = vmatpush3.bf16.msra.mxu1 %v5604_v61 }
 0x6fc   :  { %5415 = vmatprep.subr.bf16.mxu1 %v5734_v15 }
 0x7b1   :  { %v2240_v42 = vpop.f32.mrb[40].mxu1 }
 0x7b2   :  { %v2247_v51 = vadd.f32 %v5706_v49, %v2240_v42  ;;  %v5359_v52 = vpop.f32.mrb[41].mxu1 }
 0x7b3   :  { %v2243_v53 = vpop.f32.mrb[42].mxu1 }
 0x7b4   :  { %v6249_v54 = vadd.f32 %v2252_v40, %v2247_v51  ;;  %v2248_v57 = vadd.f32 %v5707_v48, %v2243_v53  ;;  %v5360_v60 = vpop.f32.mrb[43].mxu1  ;;  %v2446_v53 = vsub.s32 5, %v5803_v24 }
 0x7b6   :  { %v6254_v1 = vadd.f32 %v2252_v40, %v2248_v57  ;;  %v2255_v59 = vsel %vm45_vm0, %v6249_v54, 0.0  ;;  %v2447_v48 = vrot.slane %v6241_v38, %v2446_v53 }
 0x7b7   :  { %2256 = vadd.xlane.f32.xlu1 %v2255_v59 }
 0x7b8   :  { %v2258_v41 = vsel %vm45_vm0, %v6254_v1, 0.0 }
 0x7b9   :  { %2259 = vadd.xlane.f32.xlu0 %v2258_v41 }
 0x844   :  { %v2257_v7 = vpop.xlane.xlu1 %2256 }
 0x845   :  { %v2261_v5 = vmul.f32 0.03125, %v2257_v7 }
 0x846   :  { %v2260_v29 = vpop.xlane.xlu0 %2259 }
 0x847   :  { %v2263_v8 = vsub.f32 %v6249_v54, %v2261_v5  ;;  %v2262_v2 = vmul.f32 0.03125, %v2260_v29 }
 0x849   :  { %v2264_v10 = vsub.f32 %v6254_v1, %v2262_v2  ;;  %v2265_v11 = vmul.f32 %v2263_v8, %v2263_v8 }
 0x84b   :  { %v2267_v62 = vsel %vm45_vm0, %v2265_v11, 0.0  ;;  %v2266_v63 = vmul.f32 %v2264_v10, %v2264_v10 }
 0x84c   :  { %2268 = vadd.xlane.f32.xlu0 %v2267_v62 }
 0x84d   :  { %v2270_v18 = vsel %vm45_vm0, %v2266_v63, 0.0 }
 0x850   :  { %2271 = vadd.xlane.f32.xlu0 %v2270_v18 }
 0x8d9   :  { %v2269_v20 = vpop.xlane.xlu0 %2268 }
 0x8da   :  { %v2273_v9 = vmul.f32 0.03125, %v2269_v20 }
 0x8dc   :  { %v2275_v21 = vadd.f32 1e-05, %v2273_v9 }
 0x8dd   :  { %v2272_v14 = vpop.xlane.xlu0 %2271 }
 0x8de   :  { %5655 = vrsqrt.f32 %v2275_v21  ;;  %v2274_v55 = vmul.f32 0.03125, %v2272_v14 }
 0x8e0   :  { %v2276_v26 = vadd.f32 1e-05, %v2274_v55 }
 0x8e2   :  { %5657 = vrsqrt.f32 %v2276_v26  ;;  %v5075_v26 = vld [vmem:[%s6876_s3 + $0x8] sm:$0xff] }
 0x8e8   :  { %v5656_v31 = vpop.eup %5655 }
 0x8e9   :  { %v2279_v47 = vmul.f32 %v5656_v31, %v2263_v8  ;;  %v2503_v31 = vrot.slane %v5075_v26, %v5806_v25 }
 0x8eb   :  { %v2285_v22 = vmul.f32 %v2284_v58, %v2279_v47 }
 0x8ec   :  { %v5658_v33 = vpop.eup %5657 }
 0x8ed   :  { %v2280_v50 = vmul.f32 %v5658_v33, %v2264_v10  ;;  %v2291_v34 = vadd.f32 %v2290_v28, %v2285_v22 }
 0x8ef   :  { %v2286_v44 = vmul.f32 %v2284_v58, %v2280_v50 }
 0x8f1   :  { %v2292_v6 = vadd.f32 %v2290_v28, %v2286_v44  ;;  %v2509_v28 = vrot.slane %v5075_v26, %v5813_v30 }
 0x8f3   :  { %v2293_v35 = vpack.c.bf16 %v2292_v6, %v2291_v34 }
 0x8f5   :  { %5366 = vmatmul.mubr.msk.bf16.vlgmr.msra.gmra.mrb[28].mxu0 %vm45_vm0, %v2293_v35 }
 0x8f6   :  { %5393 = vmatprep.mubr.msk.bf16.mxu0 %vm5735_vm1, %v5734_v15  ;;  %5390 = vmatpush3.bf16.msra.mxu0 %v6335_v36 }
 0x8f7   :  { %5391 = vmatprep.subr.bf16.mxu0 %v5734_v15 }
 0x8fa   :  { %5392 = vmatpush3.bf16.msra.mxu0 %v5607_v17 }
 0x8fb   :  { %5397 = vmatprep.subr.bf16.mxu0 %v5734_v15 }
 0x9c8   :  { %v2343_v46 = vpop.f32.mrb[28].mxu0 }
 0x9c9   :  { %v2344_v39 = vadd.f32 %v2343_v46, %v2297_v37  ;;  %v5367_v12 = vpop.f32.mrb[29].mxu0 }
 0x9ca   :  { %v2346_v16 = vpop.f32.mrb[30].mxu0 }
 0x9cb   :  { %v2347_v40 = vadd.f32 %v2346_v16, %v2297_v37  ;;  %v5368_v42 = vpop.f32.mrb[31].mxu0  ;;  %v2350_v49 = vmax.f32 %v2344_v39, 0.0 }
 0x9cd   :  { %v2351_v51 = vmax.f32 %v2347_v40, 0.0 }
 0x9cf   :  { %v2352_v52 = vpack.c.bf16 %v2351_v51, %v2350_v49 }
 0x9d1   :  { %5386 = vmatmul.mubr.bf16.vlgmr.msra.gmra.mrb[44].mxu1 %v2352_v52 }
 0x9d2   :  { %5417 = vmatprep.mubr.msk.bf16.mxu1 %vm5735_vm1, %v5734_v15 }
 0xaa4   :  { %v2435_v57 = vpop.f32.mrb[44].mxu1 }
 0xaa5   :  { %v2442_v60 = vadd.f32 %v2435_v57, %v6249_v54  ;;  %v5387_v59 = vpop.f32.mrb[45].mxu1 }
 0xaa6   :  { %v2438_v41 = vpop.f32.mrb[46].mxu1 }
 0xaa7   :  { %v6319_v7 = vadd.f32 %v2447_v48, %v2442_v60  ;;  %v2443_v5 = vadd.f32 %v2438_v41, %v6254_v1  ;;  %v5388_v29 = vpop.f32.mrb[47].mxu1 }
 0xaa9   :  { %v6322_v8 = vadd.f32 %v2447_v48, %v2443_v5  ;;  %v2474_v2 = vsel %vm45_vm0, %v6319_v7, 0.0 }
 0xaaa   :  { %2475 = vadd.xlane.f32.xlu1 %v2474_v2 }
 0xaab   :  { %v2477_v10 = vsel %vm45_vm0, %v6322_v8, 0.0 }
 0xaac   :  { %2478 = vadd.xlane.f32.xlu0 %v2477_v10 }
 0xb37   :  { %v2476_v38 = vpop.xlane.xlu1 %2475 }
 0xb38   :  { %v2480_v11 = vmul.f32 0.03125, %v2476_v38 }
 0xb39   :  { %v2479_v54 = vpop.xlane.xlu0 %2478 }
 0xb3a   :  { %v2482_v62 = vsub.f32 %v6319_v7, %v2480_v11  ;;  %v2481_v63 = vmul.f32 0.03125, %v2479_v54 }
 0xb3c   :  { %v2483_v18 = vsub.f32 %v6322_v8, %v2481_v63  ;;  %v2484_v1 = vmul.f32 %v2482_v62, %v2482_v62 }
 0xb3e   :  { %v2486_v3 = vsel %vm45_vm0, %v2484_v1, 0.0  ;;  %v2485_v4 = vmul.f32 %v2483_v18, %v2483_v18 }
 0xb3f   :  { %2487 = vadd.xlane.f32.xlu1 %v2486_v3 }
 0xb40   :  { %v2489_v13 = vsel %vm45_vm0, %v2485_v4, 0.0 }
 0xb41   :  { %2490 = vadd.xlane.f32.xlu0 %v2489_v13 }
 0xbcc   :  { %v2488_v19 = vpop.xlane.xlu1 %2487 }
 0xbcd   :  { %v2492_v20 = vmul.f32 0.03125, %v2488_v19 }
 0xbce   :  { %v2491_v9 = vpop.xlane.xlu0 %2490 }
 0xbcf   :  { %v2494_v21 = vadd.f32 1e-05, %v2492_v20  ;;  %v2493_v14 = vmul.f32 0.03125, %v2491_v9 }
 0xbd1   :  { %5659 = vrsqrt.f32 %v2494_v21  ;;  %v2495_v55 = vadd.f32 1e-05, %v2493_v14 }
 0xbd3   :  { %5661 = vrsqrt.f32 %v2495_v55 }
 0xbdb   :  { %v5660_v58 = vpop.eup %5659 }
 0xbdc   :  { %v2498_v47 = vmul.f32 %v5660_v58, %v2482_v62 }
 0xbdd   :  { %v5662_v33 = vpop.eup %5661 }
 0xbde   :  { %v2504_v22 = vmul.f32 %v2503_v31, %v2498_v47  ;;  %v2499_v50 = vmul.f32 %v5662_v33, %v2483_v18 }
 0xbe0   :  { %v2505_v44 = vmul.f32 %v2503_v31, %v2499_v50  ;;  %v2510_v34 = vadd.f32 %v2509_v28, %v2504_v22 }
 0xbe2   :  { %v2511_v6 = vadd.f32 %v2509_v28, %v2505_v44 }
 0xbe4   :  { %v2512_v35 = vpack.c.bf16 %v2511_v6, %v2510_v34 }
 0xbe6   :  { %5394 = vmatmul.mubr.msk.bf16.vlgmr.msra.gmra.mrb[32].mxu0 %vm45_vm0, %v2512_v35 }
 0xbe7   :  { %5399 = vmatprep.mubr.msk.bf16.mxu0 %vm5735_vm1, %v5734_v15 }
 0xcb9   :  { %v2562_v43 = vpop.f32.mrb[32].mxu0 }
 0xcba   :  { %2577 = vrot.lane.b32.xlu0 %v2562_v43, %s5736_s28  ;;  %2571 = vrot.lane.b32.xlu1 %v2562_v43, %s5737_s29  ;;  %v5395_v61 = vpop.f32.mrb[33].mxu0 }
 0xcbb   :  { %v6353_v37 = vpop.f32.mrb[34].mxu0 }
 0xcbc   :  { %v5396_v46 = vpop.f32.mrb[35].mxu0 }
 0xcbe   :  { %2583 = vrot.lane.b32.xlu1 %v2562_v43, %s5738_s30  ;;  %2585 = vrot.lane.b32.xlu0 %v6353_v37, %s5738_s30 }
 0xcc2   :  { %2573 = vrot.lane.b32.xlu1 %v6353_v37, %s5737_s29 }
 0xcc6   :  { %2579 = vrot.lane.b32.xlu1 %v6353_v37, %s5736_s28 }
 0xcca   :  { %2869 = vrot.lane.b32.xlu1 %v2562_v43, %s5739_s6 }
 0xd2c   :  { %v6363_v39 = vpop.permute.xlu0 %2577  ;;  %v6365_v12 = vpop.permute.xlu1 %2571 }
 0xd2d   :  { %2873 = vrot.lane.b32.xlu0 %v6365_v12, %s5739_s6  ;;  %2877 = vrot.lane.b32.xlu1 %v6363_v39, %s5739_s6  ;;  %v2589_v48 = vcombine.low %v2562_v43, %v6363_v39  ;;  %v2590_v57 = vcombine.high %v2562_v43, %v6363_v39 }
 0xd2f   :  { %v2597_v41 = vrot.slane %v2589_v48, %v5868_v56  ;;  %v2604_v5 = vrot.slane %v2590_v57, %v5868_v56 }
 0xd30   :  { %v6371_v16 = vpop.permute.xlu1 %2583  ;;  %v6381_v42 = vpop.permute.xlu0 %2585 }
 0xd31   :  { %2881 = vrot.lane.b32.xlu0 %v6371_v16, %s5739_s6  ;;  %2871 = vrot.lane.b32.xlu1 %v6353_v37, %s5739_s6  ;;  %v2605_v51 = vcombine.low %v6365_v12, %v6371_v16  ;;  %v2606_v52 = vcombine.high %v6365_v12, %v6371_v16 }
 0xd33   :  { %v2613_v60 = vrot.slane %v2605_v51, %v5868_v56  ;;  %v2620_v59 = vrot.slane %v2606_v52, %v5868_v56 }
 0xd34   :  { %v6377_v40 = vpop.permute.xlu1 %2573 }
 0xd35   :  { %2875 = vrot.lane.b32.xlu0 %v6377_v40, %s5739_s6  ;;  %v2621_v29 = vcombine.low %v2597_v41, %v2613_v60  ;;  %v2622_v2 = vcombine.high %v2597_v41, %v2613_v60  ;;  %v2637_v10 = vcombine.low %v2604_v5, %v2620_v59  ;;  %v2638_v38 = vcombine.high %v2604_v5, %v2620_v59 }
 0xd36   :  { %v2673_v4 = vcombine.low %v6377_v40, %v6381_v42  ;;  %v2674_v13 = vcombine.high %v6377_v40, %v6381_v42 }
 0xd37   :  { %v2629_v11 = vrot.slane %v2621_v29, %v5879_v0  ;;  %v2636_v54 = vrot.slane %v2622_v2, %v5879_v0  ;;  %v2645_v62 = vrot.slane %v2637_v10, %v5879_v0  ;;  %v2652_v63 = vrot.slane %v2638_v38, %v5879_v0 }
 0xd38   :  { %v6383_v49 = vpop.permute.xlu1 %2579  ;;  %v2681_v31 = vrot.slane %v2673_v4, %v5868_v56  ;;  %v2688_v58 = vrot.slane %v2674_v13, %v5868_v56 }
 0xd39   :  { %2883 = vrot.lane.b32.xlu0 %v6381_v42, %s5739_s6  ;;  %2879 = vrot.lane.b32.xlu1 %v6383_v49, %s5739_s6  ;;  %v2657_v18 = vcombine.low %v6353_v37, %v6383_v49  ;;  %v2658_v1 = vcombine.high %v6353_v37, %v6383_v49  ;;  %v2725_v17 = vcombine.low %v2629_v11, %v2636_v54 }
 0xd3a   :  { %v5099_v19 = vcombine.high %v2629_v11, %v2636_v54  ;;  %v2741_v20 = vcombine.low %v2645_v62, %v2652_v63  ;;  %v5100_v9 = vcombine.high %v2645_v62, %v2652_v63 }
 0xd3b   :  { %v2665_v21 = vrot.slane %v2657_v18, %v5868_v56  ;;  %v2672_v14 = vrot.slane %v2658_v1, %v5868_v56  ;;  %v2732_v47 = vrot.slane %v2725_v17, %v5868_v56 }
 0xd3c   :  { %v2870_v3 = vpop.permute.xlu1 %2869  ;;  %v2740_v33 = vrot.slane %v5099_v19, %v5868_v56  ;;  %v2748_v22 = vrot.slane %v2741_v20, %v5868_v56  ;;  %v2756_v50 = vrot.slane %v5100_v9, %v5868_v56 }
 0xd3d   :  { %3173 = vrot.lane.b32.xlu1 %v2562_v43, %s5742_s7  ;;  %v2689_v34 = vcombine.low %v2665_v21, %v2681_v31  ;;  %v2690_v6 = vcombine.high %v2665_v21, %v2681_v31  ;;  %v2705_v35 = vcombine.low %v2672_v14, %v2688_v58  ;;  %v2706_v43 = vcombine.high %v2672_v14, %v2688_v58 }
 0xd3e   :  { %v2757_v52 = vcombine.low %v2732_v47, %v2740_v33  ;;  %v2773_v48 = vcombine.low %v2748_v22, %v2756_v50  ;;  %v2758_v57 = vcombine.high %v2732_v47, %v2740_v33  ;;  %v2774_v60 = vcombine.high %v2748_v22, %v2756_v50 }
 0xd3f   :  { %v2697_v2 = vrot.slane %v2689_v34, %v5879_v0  ;;  %v2704_v10 = vrot.slane %v2690_v6, %v5879_v0  ;;  %v6427_v38 = vrot.slane %v2705_v35, %v5879_v0  ;;  %v6430_v11 = vrot.slane %v2706_v43, %v5879_v0 }
 0xd40   :  { %v6433_v4 = vrot.slane %v2757_v52, %v5879_v0  ;;  %v6436_v13 = vrot.slane %v2773_v48, %v5879_v0  ;;  %v6439_v17 = vrot.slane %v2758_v57, %v5879_v0  ;;  %v6442_v19 = vrot.slane %v2774_v60, %v5879_v0 }
 0xd41   :  { %v2809_v31 = vcombine.low %v6427_v38, %v6430_v11  ;;  %v5102_v58 = vcombine.high %v6427_v38, %v6430_v11 }
 0xd9f   :  { %v2874_v55 = vpop.permute.xlu0 %2873  ;;  %v2878_v26 = vpop.permute.xlu1 %2877 }
 0xda0   :  { %v2893_v28 = vcombine.low %v2870_v3, %v2878_v26  ;;  %v2894_v44 = vcombine.high %v2870_v3, %v2878_v26  ;;  %v5101_v26 = vcombine.high %v2697_v2, %v2704_v10 }
 0xda2   :  { %v2901_v59 = vrot.slane %v2893_v28, %v5868_v56  ;;  %v2908_v41 = vrot.slane %v2894_v44, %v5868_v56 }
 0xda3   :  { %v2882_v61 = vpop.permute.xlu0 %2881  ;;  %v2872_v3 = vpop.permute.xlu1 %2871 }
 0xda4   :  { %v2909_v46 = vcombine.low %v2874_v55, %v2882_v61  ;;  %v2910_v51 = vcombine.high %v2874_v55, %v2882_v61  ;;  %v2793_v55 = vcombine.low %v2697_v2, %v2704_v10 }
 0xda6   :  { %v2917_v5 = vrot.slane %v2909_v46, %v5868_v56  ;;  %v2924_v29 = vrot.slane %v2910_v51, %v5868_v56 }
 0xda7   :  { %v2876_v54 = vpop.permute.xlu0 %2875 }
 0xda8   :  { %v2925_v62 = vcombine.low %v2901_v59, %v2917_v5  ;;  %v2926_v63 = vcombine.high %v2901_v59, %v2917_v5  ;;  %v2941_v18 = vcombine.low %v2908_v41, %v2924_v29  ;;  %v2942_v1 = vcombine.high %v2908_v41, %v2924_v29 }
 0xdaa   :  { %v2933_v20 = vrot.slane %v2925_v62, %v5879_v0  ;;  %v2940_v9 = vrot.slane %v2926_v63, %v5879_v0  ;;  %v2949_v21 = vrot.slane %v2941_v18, %v5879_v0  ;;  %v2956_v14 = vrot.slane %v2942_v1, %v5879_v0 }
 0xdab   :  { %v2884_v47 = vpop.permute.xlu0 %2883  ;;  %v2880_v44 = vpop.permute.xlu1 %2879 }
 0xdac   :  { %v3029_v33 = vcombine.low %v2933_v20, %v2940_v9  ;;  %v5103_v22 = vcombine.high %v2933_v20, %v2940_v9  ;;  %v3045_v50 = vcombine.low %v2949_v21, %v2956_v14  ;;  %v5104_v28 = vcombine.high %v2949_v21, %v2956_v14 }
 0xdad   :  { %v2977_v34 = vcombine.low %v2876_v54, %v2884_v47  ;;  %v2978_v6 = vcombine.high %v2876_v54, %v2884_v47  ;;  %v2961_v35 = vcombine.low %v2872_v3, %v2880_v44  ;;  %v2962_v43 = vcombine.high %v2872_v3, %v2880_v44 }
 0xdae   :  { %v3036_v61 = vrot.slane %v3029_v33, %v5868_v56  ;;  %v3044_v46 = vrot.slane %v5103_v22, %v5868_v56  ;;  %v3052_v51 = vrot.slane %v3045_v50, %v5868_v56  ;;  %v3060_v52 = vrot.slane %v5104_v28, %v5868_v56 }
 0xdaf   :  { %v2985_v48 = vrot.slane %v2977_v34, %v5868_v56  ;;  %v2992_v57 = vrot.slane %v2978_v6, %v5868_v56  ;;  %v2969_v60 = vrot.slane %v2961_v35, %v5868_v56  ;;  %v2976_v59 = vrot.slane %v2962_v43, %v5868_v56 }
 0xdb0   :  { %v3061_v41 = vcombine.low %v3036_v61, %v3044_v46  ;;  %v3077_v5 = vcombine.low %v3052_v51, %v3060_v52  ;;  %v3062_v29 = vcombine.high %v3036_v61, %v3044_v46  ;;  %v3078_v2 = vcombine.high %v3052_v51, %v3060_v52 }
 0xdb1   :  { %v2993_v10 = vcombine.low %v2969_v60, %v2985_v48  ;;  %v2994_v38 = vcombine.high %v2969_v60, %v2985_v48  ;;  %v3009_v11 = vcombine.low %v2976_v59, %v2992_v57  ;;  %v3010_v54 = vcombine.high %v2976_v59, %v2992_v57 }
 0xdb2   :  { %v3069_v62 = vrot.slane %v3061_v41, %v5879_v0  ;;  %v3085_v63 = vrot.slane %v3077_v5, %v5879_v0  ;;  %v3076_v18 = vrot.slane %v3062_v29, %v5879_v0  ;;  %v3092_v1 = vrot.slane %v3078_v2, %v5879_v0 }
 0xdb3   :  { %v3001_v3 = vrot.slane %v2993_v10, %v5879_v0  ;;  %v3008_v20 = vrot.slane %v2994_v38, %v5879_v0  ;;  %v3017_v9 = vrot.slane %v3009_v11, %v5879_v0  ;;  %v3024_v21 = vrot.slane %v3010_v54, %v5879_v0 }
 0xdb4   :  { %v6469_v14 = vrot.slane %v2793_v55, %v5868_v56  ;;  %v2808_v47 = vrot.slane %v5101_v26, %v5868_v56  ;;  %v3093_v33 = vcombine.low %v3069_v62, %v3085_v63  ;;  %v3096_v22 = vcombine.high %v3076_v18, %v3092_v1 }
 0xdb5   :  { %v3097_v50 = vcombine.low %v3001_v3, %v3008_v20  ;;  %v5105_v28 = vcombine.high %v3001_v3, %v3008_v20  ;;  %v3113_v44 = vcombine.low %v3017_v9, %v3024_v21  ;;  %v5106_v34 = vcombine.high %v3017_v9, %v3024_v21 }
 0xdb6   :  { %v2816_v6 = vrot.slane %v2809_v31, %v5868_v56  ;;  %v2824_v35 = vrot.slane %v5102_v58, %v5868_v56  ;;  %v3165_v43 = vpack.c.bf16 %v3093_v33, %v3093_v33  ;;  %v3168_v61 = vpack.c.bf16 %v3096_v22, %v3096_v22 }
 0xdb7   :  { %v3104_v46 = vrot.slane %v3097_v50, %v5868_v56  ;;  %v3112_v51 = vrot.slane %v5105_v28, %v5868_v56  ;;  %v3120_v55 = vrot.slane %v3113_v44, %v5868_v56  ;;  %v3128_v26 = vrot.slane %v5106_v34, %v5868_v56 }
 0xdb8   :  { %v3481_v52 = vsel %vm1050_vm2, %v3165_v43, 0  ;;  %v3619_v48 = vsel %vm1050_vm2, %v3168_v61, 0  ;;  %v3094_v57 = vcombine.high %v3069_v62, %v3085_v63  ;;  %v2789_v59 = vcombine.low %v6433_v4, %v6436_v13 }
 0xdb9   :  { %5398 = vmatpush3.bf16.xpose.msra.mxu0 %v3481_v52  ;;  %5416 = vmatpush3.bf16.xpose.msra.mxu1 %v3619_v48  ;;  %v3129_v31 = vcombine.low %v3104_v46, %v3112_v51  ;;  %v3145_v60 = vcombine.low %v3120_v55, %v3128_v26  ;;  %v3130_v58 = vcombine.high %v3104_v46, %v3112_v51 }
 0xdba   :  { %5403 = vmatprep.subr.bf16.mxu0 %v5734_v15  ;;  %v2792_v41 = vcombine.high %v6439_v17, %v6442_v19  ;;  %5427 = vmatprep.subr.bf16.mxu1 %v5734_v15  ;;  %v3146_v5 = vcombine.high %v3120_v55, %v3128_v26  ;;  %v2825_v10 = vcombine.low %v6469_v14, %v2808_v47 }
 0xdbb   :  { %v3137_v29 = vrot.slane %v3129_v31, %v5879_v0  ;;  %v3153_v2 = vrot.slane %v3145_v60, %v5879_v0  ;;  %v2841_v38 = vcombine.low %v2816_v6, %v2824_v35  ;;  %v3166_v11 = vpack.c.bf16 %v3094_v57, %v3094_v57 }
 0xdbc   :  { %v3144_v62 = vrot.slane %v3130_v58, %v5879_v0  ;;  %v3160_v63 = vrot.slane %v3146_v5, %v5879_v0  ;;  %v2861_v3 = vpack.c.bf16 %v2789_v59, %v2789_v59  ;;  %v2864_v20 = vpack.c.bf16 %v2792_v41, %v2792_v41 }
 0xdbd   :  { %v3162_v54 = vcombine.high %v3137_v29, %v3153_v2  ;;  %v2833_v21 = vrot.slane %v2825_v10, %v5879_v0  ;;  %v2849_v33 = vrot.slane %v2841_v38, %v5879_v0  ;;  %v3527_v22 = vsel %vm1050_vm2, %v3166_v11, 0 }
 0xdbe   :  { %v3095_v50 = vcombine.low %v3076_v18, %v3092_v1  ;;  %v3164_v44 = vcombine.high %v3144_v62, %v3160_v63  ;;  %v2790_v34 = vcombine.high %v6433_v4, %v6436_v13  ;;  %v2826_v18 = vcombine.high %v6469_v14, %v2808_v47 }
 0xdbf   :  { %v3170_v9 = vpack.c.bf16 %v3162_v54, %v3162_v54  ;;  %v2858_v43 = vcombine.high %v2833_v21, %v2849_v33  ;;  %v2842_v1 = vcombine.high %v2816_v6, %v2824_v35  ;;  %v3161_v13 = vcombine.low %v3137_v29, %v3153_v2 }
 0xdc0   :  { %5400 = vmatmul.mubr.msk.bf16.vlgmr.msra.gmra.mrb[36].mxu0 %vm1050_vm2, %v2861_v3  ;;  %5418 = vmatmul.mubr.msk.bf16.vlgmr.msra.gmra.mrb[48].mxu1 %vm1050_vm2, %v2864_v20  ;;  %v3167_v61 = vpack.c.bf16 %v3095_v50, %v3095_v50  ;;  %v3172_v46 = vpack.c.bf16 %v3164_v44, %v3164_v44  ;;  %v2862_v51 = vpack.c.bf16 %v2790_v34, %v2790_v34 }
 0xdc1   :  { %5404 = vmatpush3.bf16.xpose.msra.mxu0 %v3527_v22  ;;  %v3711_v28 = vsel %vm1050_vm2, %v3170_v9, 0  ;;  %5405 = vmatprep.mubr.msk.bf16.mxu0 %vm5735_vm1, %v5734_v15  ;;  %v2866_v55 = vpack.c.bf16 %v2858_v43, %v2858_v43  ;;  %v2840_v26 = vrot.slane %v2826_v18, %v5879_v0  ;;  %v2856_v52 = vrot.slane %v2842_v1, %v5879_v0 }
 0xdc2   :  { %5428 = vmatpush3.bf16.xpose.msra.mxu1 %v3711_v28  ;;  %5429 = vmatprep.mubr.msk.bf16.mxu1 %vm5735_vm1, %v5734_v15  ;;  %v3573_v4 = vsel %vm1050_vm2, %v3167_v61, 0  ;;  %v3803_v48 = vsel %vm1050_vm2, %v3172_v46, 0  ;;  %v2791_v14 = vcombine.low %v6439_v17, %v6442_v19  ;;  %v3169_v6 = vpack.c.bf16 %v3161_v13, %v3161_v13 }
 0xdc3   :  { %5409 = vmatprep.subr.bf16.mxu0 %v5734_v15  ;;  %5439 = vmatprep.subr.bf16.mxu1 %v5734_v15  ;;  %v2860_v47 = vcombine.high %v2840_v26, %v2856_v52  ;;  %v3163_v60 = vcombine.low %v3144_v62, %v3160_v63  ;;  %v2857_v17 = vcombine.low %v2833_v21, %v2849_v33 }
 0xdc4   :  { %v2863_v35 = vpack.c.bf16 %v2791_v14, %v2791_v14  ;;  %v3665_v31 = vsel %vm1050_vm2, %v3169_v6, 0  ;;  %v2859_v41 = vcombine.low %v2840_v26, %v2856_v52 }
 0xdc5   :  { %v2868_v57 = vpack.c.bf16 %v2860_v47, %v2860_v47  ;;  %v3171_v19 = vpack.c.bf16 %v3163_v60, %v3163_v60  ;;  %v2865_v58 = vpack.c.bf16 %v2857_v17, %v2857_v17 }
 0xdc6   :  { %v2867_v5 = vpack.c.bf16 %v2859_v41, %v2859_v41 }
 0xdc7   :  { %v3757_v59 = vsel %vm1050_vm2, %v3171_v19, 0 }
 0xdc8   :  { %5406 = vmatmul.mubr.msk.bf16.vlgmr.msra.gmra.mrb[40].mxu0 %vm1050_vm2, %v2862_v51 }
 0xdc9   :  { %5430 = vmatmul.mubr.msk.bf16.vlgmr.msra.gmra.mrb[52].mxu1 %vm1050_vm2, %v2866_v55  ;;  %5410 = vmatpush3.bf16.xpose.msra.mxu0 %v3573_v4 }
 0xdca   :  { %5440 = vmatpush3.bf16.xpose.msra.mxu1 %v3803_v48  ;;  %5411 = vmatprep.mubr.msk.bf16.mxu0 %vm5735_vm1, %v5734_v15 }
 0xdcb   :  { %5441 = vmatprep.mubr.msk.bf16.mxu1 %vm5735_vm1, %v5734_v15  ;;  %5421 = vmatprep.subr.bf16.mxu0 %v5734_v15 }
 0xdcc   :  { %5451 = vmatprep.subr.bf16.mxu1 %v5734_v15 }
 0xdd0   :  { %5412 = vmatmul.mubr.msk.bf16.vlgmr.msra.gmra.mrb[44].mxu0 %vm1050_vm2, %v2863_v35 }
 0xdd1   :  { %5442 = vmatmul.mubr.msk.bf16.vlgmr.msra.gmra.mrb[56].mxu1 %vm1050_vm2, %v2868_v57  ;;  %5422 = vmatpush3.bf16.xpose.msra.mxu0 %v3665_v31 }
 0xdd2   :  { %5423 = vmatprep.mubr.msk.bf16.mxu0 %vm5735_vm1, %v5734_v15  ;;  %5433 = vmatprep.subr.bf16.mxu0 %v5734_v15 }
 0xdd3   :  { %5453 = vmatprep.mubr.msk.bf16.mxu1 %vm5735_vm1, %v5734_v15 }
 0xdd8   :  { %5424 = vmatmul.mubr.msk.bf16.vlgmr.msra.gmra.mrb[48].mxu0 %vm1050_vm2, %v2865_v58 }
 0xdd9   :  { %5434 = vmatpush3.bf16.xpose.msra.mxu0 %v3757_v59  ;;  %5435 = vmatprep.mubr.msk.bf16.mxu0 %vm5735_vm1, %v5734_v15 }
 0xdda   :  { %5445 = vmatprep.subr.bf16.mxu0 %v5734_v15 }
 0xde0   :  { %5436 = vmatmul.mubr.msk.bf16.vlgmr.msra.gmra.mrb[52].mxu0 %vm1050_vm2, %v2867_v5 }
 0xde1   :  { %5447 = vmatprep.mubr.msk.bf16.mxu0 %vm5735_vm1, %v5734_v15 }
 0xe93   :  { %v3517_v29 = vpop.f32.mrb[36].mxu0  ;;  %v3655_v2 = vpop.f32.mrb[48].mxu1 }
 0xe94   :  { %v6536_v10 = vmul.f32 0.35355338, %v3517_v29  ;;  %v6538_v38 = vmul.f32 0.35355338, %v3655_v2  ;;  %v5401_v11 = vpop.f32.mrb[37].mxu0  ;;  %v5419_v54 = vpop.f32.mrb[49].mxu1 }
 0xe95   :  { %v3520_v62 = vpop.f32.mrb[38].mxu0  ;;  %v3658_v63 = vpop.f32.mrb[50].mxu1 }
 0xe96   :  { %v5402_v3 = vpop.f32.mrb[39].mxu0  ;;  %v5420_v20 = vpop.f32.mrb[51].mxu1  ;;  %v3853_v9 = vsel %vm1050_vm2, %v6536_v10, -inf  ;;  %v3862_v21 = vsel %vm1050_vm2, %v6538_v38, -inf }
 0xe97   :  { %3854 = vmax.xlane.f32.xlu1 %v3853_v9  ;;  %3863 = vmax.xlane.f32.xlu0 %v3862_v21  ;;  %v3174_v54 = vpop.permute.xlu1 %3173 }
 0xe9b   :  { %v3563_v33 = vpop.f32.mrb[40].mxu0 }
 0xe9c   :  { %v3846_v22 = vmul.f32 0.35355338, %v3563_v33  ;;  %v3747_v50 = vpop.f32.mrb[52].mxu1  ;;  %v5407_v28 = vpop.f32.mrb[41].mxu0 }
 0xe9d   :  { %v5431_v44 = vpop.f32.mrb[53].mxu1  ;;  %v3566_v34 = vpop.f32.mrb[42].mxu0  ;;  %v3850_v43 = vmul.f32 0.35355338, %v3747_v50 }
 0xe9e   :  { %v3750_v18 = vpop.f32.mrb[54].mxu1  ;;  %v5408_v1 = vpop.f32.mrb[43].mxu0  ;;  %v3856_v61 = vsel %vm1050_vm2, %v3846_v22, -inf }
 0xe9f   :  { %v5432_v46 = vpop.f32.mrb[55].mxu1  ;;  %3857 = vmax.xlane.f32.xlu0 %v3856_v61  ;;  %v3868_v51 = vsel %vm1050_vm2, %v3850_v43, -inf }
 0xea3   :  { %v3609_v55 = vpop.f32.mrb[44].mxu0  ;;  %3869 = vmax.xlane.f32.xlu0 %v3868_v51 }
 0xea4   :  { %v3847_v26 = vmul.f32 0.35355338, %v3609_v55  ;;  %v3839_v52 = vpop.f32.mrb[56].mxu1  ;;  %v5413_v4 = vpop.f32.mrb[45].mxu0 }
 0xea5   :  { %v5443_v13 = vpop.f32.mrb[57].mxu1  ;;  %v3612_v48 = vpop.f32.mrb[46].mxu0  ;;  %v6546_v14 = vmul.f32 0.35355338, %v3839_v52 }
 0xea6   :  { %v3842_v47 = vpop.f32.mrb[58].mxu1  ;;  %v5414_v6 = vpop.f32.mrb[47].mxu0  ;;  %v3859_v35 = vsel %vm1050_vm2, %v3847_v26, -inf }
 0xea7   :  { %v5444_v57 = vpop.f32.mrb[59].mxu1  ;;  %3860 = vmax.xlane.f32.xlu0 %v3859_v35  ;;  %v3874_v31 = vsel %vm1050_vm2, %v6546_v14, -inf }
 0xea8   :  { %3181 = vrot.lane.b32.xlu1 %v6363_v39, %s5742_s7 }
 0xeab   :  { %v3701_v60 = vpop.f32.mrb[48].mxu0  ;;  %3875 = vmax.xlane.f32.xlu0 %v3874_v31 }
 0xeac   :  { %3185 = vrot.lane.b32.xlu1 %v6371_v16, %s5742_s7  ;;  %v5425_v17 = vpop.f32.mrb[49].mxu0  ;;  %v6557_v2 = vmul.f32 0.35355338, %v3701_v60 }
 0xead   :  { %v3704_v19 = vpop.f32.mrb[50].mxu0 }
 0xeae   :  { %v5426_v58 = vpop.f32.mrb[51].mxu0  ;;  %v3865_v11 = vsel %vm1050_vm2, %v6557_v2, -inf }
 0xeb3   :  { %v3793_v59 = vpop.f32.mrb[52].mxu0 }
 0xeb4   :  { %v5437_v41 = vpop.f32.mrb[53].mxu0  ;;  %v6559_v39 = vmul.f32 0.35355338, %v3793_v59 }
 0xeb5   :  { %v3796_v5 = vpop.f32.mrb[54].mxu0 }
 0xeb6   :  { %v5438_v29 = vpop.f32.mrb[55].mxu0  ;;  %v3871_v16 = vsel %vm1050_vm2, %v6559_v39, -inf }
 0xec1   :  { %3177 = vrot.lane.b32.xlu0 %v6365_v12, %s5742_s7 }
 0xed0   :  { %3866 = vmax.xlane.f32.xlu1 %v3865_v11 }
 0xed4   :  { %3872 = vmax.xlane.f32.xlu1 %v3871_v16 }
 0xee5   :  { %3175 = vrot.lane.b32.xlu1 %v6353_v37, %s5742_s7 }
 0xf24   :  { %v3855_v62 = vpop.xlane.xlu1 %3854  ;;  %v3864_v63 = vpop.xlane.xlu0 %3863 }
 0xf25   :  { %v3877_v12 = vsub.f32 %v6536_v10, %v3855_v62  ;;  %v3880_v3 = vsub.f32 %v6538_v38, %v3864_v63 }
 0xf27   :  { %v3885_v20 = vmul.f32 1.442695, %v3877_v12  ;;  %v3891_v9 = vmul.f32 1.442695, %v3880_v3 }
 0xf29   :  { %5663 = vpow2.f32 %v3885_v20 }
 0xf2a   :  { %5665 = vpow2.f32 %v3891_v9 }
 0xf2c   :  { %v3858_v21 = vpop.xlane.xlu0 %3857 }
 0xf2d   :  { %v3878_v33 = vsub.f32 %v3846_v22, %v3858_v21  ;;  %v3182_v22 = vpop.permute.xlu1 %3181 }
 0xf2e   :  { %v3197_v55 = vcombine.low %v3174_v54, %v3182_v22  ;;  %v3198_v52 = vcombine.high %v3174_v54, %v3182_v22 }
 0xf2f   :  { %v3887_v50 = vmul.f32 1.442695, %v3878_v33 }
 0xf30   :  { %v3870_v28 = vpop.xlane.xlu0 %3869  ;;  %v3205_v35 = vrot.slane %v3197_v55, %v5868_v56  ;;  %v3212_v57 = vrot.slane %v3198_v52, %v5868_v56 }
 0xf31   :  { %5667 = vpow2.f32 %v3887_v50  ;;  %v3882_v44 = vsub.f32 %v3850_v43, %v3870_v28  ;;  %v3186_v4 = vpop.permute.xlu1 %3185 }
 0xf33   :  { %v6569_v34 = vpop.eup %5663  ;;  %v3895_v37 = vmul.f32 1.442695, %v3882_v44 }
 0xf34   :  { %v6571_v18 = vpop.eup %5665  ;;  %v3861_v1 = vpop.xlane.xlu0 %3860  ;;  %v3901_v10 = vsel %vm1050_vm2, %v6569_v34, 0.0 }
 0xf35   :  { %5669 = vpow2.f32 %v3895_v37  ;;  %v3879_v38 = vsub.f32 %v3847_v26, %v3861_v1  ;;  %3902 = vadd.xlane.f32.xlu1 %v3901_v10  ;;  %v3910_v61 = vsel %vm1050_vm2, %v6571_v18, 0.0 }
 0xf36   :  { %3911 = vadd.xlane.f32.xlu0 %v3910_v61 }
 0xf37   :  { %v3889_v46 = vmul.f32 1.442695, %v3879_v38 }
 0xf38   :  { %v6577_v51 = vpop.xlane.xlu0 %3875 }
 0xf39   :  { %5671 = vpow2.f32 %v3889_v46 }
 0xf3b   :  { %v6579_v43 = vpop.eup %5667 }
 0xf3c   :  { %v3178_v13 = vpop.permute.xlu0 %3177  ;;  %v3904_v48 = vsel %vm1050_vm2, %v6579_v43, 0.0 }
 0xf3d   :  { %v3213_v26 = vcombine.low %v3178_v13, %v3186_v4  ;;  %v3214_v47 = vcombine.high %v3178_v13, %v3186_v4  ;;  %3905 = vadd.xlane.f32.xlu0 %v3904_v48 }
 0xf3f   :  { %v6583_v6 = vpop.eup %5669  ;;  %v3221_v31 = vrot.slane %v3213_v26, %v5868_v56  ;;  %v3228_v60 = vrot.slane %v3214_v47, %v5868_v56 }
 0xf40   :  { %v3916_v17 = vsel %vm1050_vm2, %v6583_v6, 0.0 }
 0xf41   :  { %v3229_v19 = vcombine.low %v3205_v35, %v3221_v31  ;;  %v3230_v58 = vcombine.high %v3205_v35, %v3221_v31  ;;  %v3245_v59 = vcombine.low %v3212_v57, %v3228_v60  ;;  %v3246_v41 = vcombine.high %v3212_v57, %v3228_v60  ;;  %3917 = vadd.xlane.f32.xlu0 %v3916_v17 }
 0xf43   :  { %v6591_v5 = vpop.eup %5671  ;;  %v3237_v29 = vrot.slane %v3229_v19, %v5879_v0  ;;  %v3244_v11 = vrot.slane %v3230_v58, %v5879_v0  ;;  %v3253_v16 = vrot.slane %v3245_v59, %v5879_v0  ;;  %v3260_v54 = vrot.slane %v3246_v41, %v5879_v0 }
 0xf44   :  { %v3907_v62 = vsel %vm1050_vm2, %v6591_v5, 0.0 }
 0xf45   :  { %v3333_v63 = vcombine.low %v3237_v29, %v3244_v11  ;;  %v5107_v12 = vcombine.high %v3237_v29, %v3244_v11  ;;  %v3349_v3 = vcombine.low %v3253_v16, %v3260_v54  ;;  %v5108_v20 = vcombine.high %v3253_v16, %v3260_v54  ;;  %3908 = vadd.xlane.f32.xlu1 %v3907_v62 }
 0xf47   :  { %v3340_v9 = vrot.slane %v3333_v63, %v5868_v56  ;;  %v3348_v21 = vrot.slane %v5107_v12, %v5868_v56  ;;  %v3356_v33 = vrot.slane %v3349_v3, %v5868_v56  ;;  %v3364_v50 = vrot.slane %v5108_v20, %v5868_v56 }
 0xf49   :  { %v3365_v28 = vcombine.low %v3340_v9, %v3348_v21  ;;  %v3381_v44 = vcombine.low %v3356_v33, %v3364_v50  ;;  %v3366_v37 = vcombine.high %v3340_v9, %v3348_v21  ;;  %v3382_v1 = vcombine.high %v3356_v33, %v3364_v50 }
 0xf4b   :  { %v3373_v10 = vrot.slane %v3365_v28, %v5879_v0  ;;  %v3389_v38 = vrot.slane %v3381_v44, %v5879_v0  ;;  %v3380_v61 = vrot.slane %v3366_v37, %v5879_v0  ;;  %v3396_v22 = vrot.slane %v3382_v1, %v5879_v0 }
 0xf4d   :  { %v3397_v46 = vcombine.low %v3373_v10, %v3389_v38  ;;  %v3398_v55 = vcombine.high %v3373_v10, %v3389_v38  ;;  %v3399_v52 = vcombine.low %v3380_v61, %v3396_v22  ;;  %v3400_v4 = vcombine.high %v3380_v61, %v3396_v22 }
 0xf4f   :  { %v3469_v13 = vpack.c.bf16 %v3397_v46, %v3397_v46  ;;  %v3470_v48 = vpack.c.bf16 %v3398_v55, %v3398_v55  ;;  %v3472_v9 = vpack.c.bf16 %v3400_v4, %v3400_v4 }
 0xf51   :  { %v3953_v26 = vsel %vm1526_vm3, %v3469_v13, 0  ;;  %v3999_v47 = vsel %vm1526_vm3, %v3470_v48, 0  ;;  %v4091_v33 = vsel %vm1526_vm3, %v3472_v9, 0 }
 0xf52   :  { %5446 = vmatpush3.bf16.msra.mxu0 %v3953_v26  ;;  %5452 = vmatpush3.bf16.msra.mxu1 %v3999_v47 }
 0xf53   :  { %5457 = vmatprep.subr.bf16.mxu0 %v5734_v15  ;;  %5463 = vmatprep.subr.bf16.mxu1 %v5734_v15 }
 0xf56   :  { %3183 = vrot.lane.b32.xlu1 %v6383_v49, %s5742_s7 }
 0xf5a   :  { %3187 = vrot.lane.b32.xlu1 %v6381_v42, %s5742_s7 }
 0xf5d   :  { %v3867_v35 = vpop.xlane.xlu1 %3866 }
 0xf5e   :  { %v3881_v57 = vsub.f32 %v6557_v2, %v3867_v35  ;;  %v3884_v2 = vsub.f32 %v6546_v14, %v6577_v51  ;;  %v3471_v51 = vpack.c.bf16 %v3399_v52, %v3399_v52 }
 0xf60   :  { %v3893_v31 = vmul.f32 1.442695, %v3881_v57  ;;  %v4045_v3 = vsel %vm1526_vm3, %v3471_v51, 0 }
 0xf61   :  { %v3873_v60 = vpop.xlane.xlu1 %3872 }
 0xf62   :  { %5673 = vpow2.f32 %v3893_v31  ;;  %v3883_v17 = vsub.f32 %v6559_v39, %v3873_v60  ;;  %v3899_v39 = vmul.f32 1.442695, %v3884_v2 }
 0xf64   :  { %v3897_v58 = vmul.f32 1.442695, %v3883_v17 }
 0xf65   :  { %v3176_v11 = vpop.permute.xlu1 %3175 }
 0xf66   :  { %5675 = vpow2.f32 %v3897_v58 }
 0xf67   :  { %5677 = vpow2.f32 %v3899_v39 }
 0xf6c   :  { %v6617_v19 = vpop.eup %5673 }
 0xf6d   :  { %v3913_v59 = vsel %vm1050_vm2, %v6617_v19, 0.0 }
 0xf6e   :  { %3914 = vadd.xlane.f32.xlu0 %v3913_v59 }
 0xf70   :  { %v6621_v49 = vpop.eup %5675 }
 0xf71   :  { %v3919_v42 = vsel %vm1050_vm2, %v6621_v49, 0.0  ;;  %v6629_v41 = vpop.eup %5677 }
 0xf72   :  { %v3922_v29 = vsel %vm1050_vm2, %v6629_v41, 0.0 }
 0xf7e   :  { %3920 = vadd.xlane.f32.xlu1 %v3919_v42 }
 0xf84   :  { %3179 = vrot.lane.b32.xlu0 %v6377_v40, %s5742_s7 }
 0xfa3   :  { %3923 = vadd.xlane.f32.xlu0 %v3922_v29 }
 0xfb9   :  { %4620 = vrot.lane.b32.xlu0 %v6335_v36, %s5743_s14 }
 0xfc2   :  { %v3903_v16 = vpop.xlane.xlu1 %3902 }
 0xfc3   :  { %5679 = vrcp.f32 %v3903_v16  ;;  %v3912_v54 = vpop.xlane.xlu0 %3911 }
 0xfca   :  { %v3906_v62 = vpop.xlane.xlu0 %3905 }
 0xfcb   :  { %5681 = vrcp.f32 %v3906_v62 }
 0xfcc   :  { %5683 = vrcp.f32 %v3912_v54 }
 0xfcd   :  { %v5680_v40 = vpop.eup %5679 }
 0xfce   :  { %v3926_v14 = vmul.f32 %v5680_v40, %v6569_v34  ;;  %v3918_v1 = vpop.xlane.xlu0 %3917 }
 0xfd0   :  { %v3941_v63 = vpack.c.bf16 %v3926_v14, %v3926_v14 }
 0xfd2   :  { %v3909_v12 = vpop.xlane.xlu1 %3908  ;;  %5448 = vmatmul.mubr.msk.bf16.vlgmr.msra.gmra.mrb[56].mxu0 %vm1050_vm2, %v3941_v63 }
 0xfd3   :  { %5685 = vrcp.f32 %v3909_v12  ;;  %5458 = vmatpush3.bf16.msra.mxu0 %v4045_v3  ;;  %5459 = vmatprep.mubr.msk.bf16.mxu0 %vm5735_vm1, %v5734_v15 }
 0xfd4   :  { %5469 = vmatprep.subr.bf16.mxu0 %v5734_v15  ;;  %5687 = vrcp.f32 %v3918_v1 }
 0xfd5   :  { %v5682_v36 = vpop.eup %5681 }
 0xfd6   :  { %v3928_v20 = vmul.f32 %v5682_v36, %v6579_v43  ;;  %v5684_v21 = vpop.eup %5683  ;;  %v3184_v10 = vpop.permute.xlu1 %3183 }
 0xfd7   :  { %v3932_v50 = vmul.f32 %v5684_v21, %v6571_v18  ;;  %v3265_v38 = vcombine.low %v3176_v11, %v3184_v10  ;;  %v3266_v61 = vcombine.high %v3176_v11, %v3184_v10 }
 0xfd8   :  { %v3942_v34 = vpack.c.bf16 %v3928_v20, %v3928_v20 }
 0xfd9   :  { %v3944_v43 = vpack.c.bf16 %v3932_v50, %v3932_v50  ;;  %v3273_v52 = vrot.slane %v3265_v38, %v5868_v56  ;;  %v3280_v4 = vrot.slane %v3266_v61, %v5868_v56 }
 0xfda   :  { %5454 = vmatmul.mubr.msk.bf16.vlgmr.msra.gmra.mrb[60].mxu1 %vm1050_vm2, %v3942_v34  ;;  %v3188_v22 = vpop.permute.xlu1 %3187 }
 0xfdb   :  { %5464 = vmatpush3.bf16.msra.mxu1 %v4091_v33  ;;  %5465 = vmatprep.mubr.msk.bf16.mxu1 %vm5735_vm1, %v5734_v15 }
 0xfdc   :  { %5475 = vmatprep.subr.bf16.mxu1 %v5734_v15 }
 0xfdd   :  { %v5686_v28 = vpop.eup %5685 }
 0xfde   :  { %v3930_v44 = vmul.f32 %v5686_v28, %v6591_v5  ;;  %v5688_v63 = vpop.eup %5687 }
 0xfe0   :  { %v3943_v37 = vpack.c.bf16 %v3930_v44, %v3930_v44  ;;  %v3936_v44 = vmul.f32 %v5688_v63, %v6583_v6 }
 0xfe2   :  { %5460 = vmatmul.mubr.msk.bf16.vlgmr.msra.gmra.mrb[60].mxu0 %vm1050_vm2, %v3943_v37  ;;  %5466 = vmatmul.mubr.msk.bf16.vlgmr.msra.gmra.mrb[64].mxu1 %vm1050_vm2, %v3944_v43 }
 0xfe3   :  { %5471 = vmatprep.mubr.msk.bf16.mxu0 %vm5735_vm1, %v5734_v15  ;;  %5477 = vmatprep.mubr.msk.bf16.mxu1 %vm5735_vm1, %v5734_v15 }
 0xffb   :  { %v3915_v18 = vpop.xlane.xlu0 %3914 }
 0xffc   :  { %5689 = vrcp.f32 %v3915_v18 }
 0xfff   :  { %v3180_v46 = vpop.permute.xlu0 %3179 }
0x1000   :  { %v3281_v5 = vcombine.low %v3180_v46, %v3188_v22  ;;  %v3282_v55 = vcombine.high %v3180_v46, %v3188_v22  ;;  %v3946_v46 = vpack.c.bf16 %v3936_v44, %v3936_v44 }
0x1002   :  { %v3289_v13 = vrot.slane %v3281_v5, %v5868_v56  ;;  %v3296_v48 = vrot.slane %v3282_v55, %v5868_v56 }
0x1004   :  { %v3297_v26 = vcombine.low %v3273_v52, %v3289_v13  ;;  %v3298_v47 = vcombine.high %v3273_v52, %v3289_v13  ;;  %v3313_v35 = vcombine.low %v3280_v4, %v3296_v48  ;;  %v3314_v57 = vcombine.high %v3280_v4, %v3296_v48 }
0x1006   :  { %v3305_v31 = vrot.slane %v3297_v26, %v5879_v0  ;;  %v3312_v60 = vrot.slane %v3298_v47, %v5879_v0  ;;  %v3321_v17 = vrot.slane %v3313_v35, %v5879_v0  ;;  %v3328_v58 = vrot.slane %v3314_v57, %v5879_v0  ;;  %v5690_v9 = vpop.eup %5689 }
0x1007   :  { %v3934_v37 = vmul.f32 %v5690_v9, %v6617_v19 }
0x1008   :  { %v3401_v59 = vcombine.low %v3305_v31, %v3312_v60  ;;  %v5109_v42 = vcombine.high %v3305_v31, %v3312_v60  ;;  %v3417_v2 = vcombine.low %v3321_v17, %v3328_v58  ;;  %v5110_v39 = vcombine.high %v3321_v17, %v3328_v58 }
0x1009   :  { %v3945_v22 = vpack.c.bf16 %v3934_v37, %v3934_v37 }
0x100a   :  { %v3408_v29 = vrot.slane %v3401_v59, %v5868_v56  ;;  %v3416_v11 = vrot.slane %v5109_v42, %v5868_v56  ;;  %v3424_v16 = vrot.slane %v3417_v2, %v5868_v56  ;;  %v3432_v54 = vrot.slane %v5110_v39, %v5868_v56 }
0x100b   :  { %v3921_v62 = vpop.xlane.xlu1 %3920 }
0x100c   :  { %v3433_v40 = vcombine.low %v3408_v29, %v3416_v11  ;;  %v3449_v14 = vcombine.low %v3424_v16, %v3432_v54  ;;  %v3434_v51 = vcombine.high %v3408_v29, %v3416_v11  ;;  %5691 = vrcp.f32 %v3921_v62 }
0x100d   :  { %v3450_v12 = vcombine.high %v3424_v16, %v3432_v54 }
0x100e   :  { %v3441_v3 = vrot.slane %v3433_v40, %v5879_v0  ;;  %v3457_v36 = vrot.slane %v3449_v14, %v5879_v0  ;;  %v3448_v20 = vrot.slane %v3434_v51, %v5879_v0 }
0x100f   :  { %v3464_v34 = vrot.slane %v3450_v12, %v5879_v0 }
0x1010   :  { %v3465_v21 = vcombine.low %v3441_v3, %v3457_v36  ;;  %v3466_v33 = vcombine.high %v3441_v3, %v3457_v36 }
0x1011   :  { %v3467_v50 = vcombine.low %v3448_v20, %v3464_v34  ;;  %v3468_v28 = vcombine.high %v3448_v20, %v3464_v34 }
0x1012   :  { %v3473_v43 = vpack.c.bf16 %v3465_v21, %v3465_v21  ;;  %v3474_v1 = vpack.c.bf16 %v3466_v33, %v3466_v33 }
0x1013   :  { %v3475_v38 = vpack.c.bf16 %v3467_v50, %v3467_v50  ;;  %v3476_v61 = vpack.c.bf16 %v3468_v28, %v3468_v28 }
0x1014   :  { %v4137_v10 = vsel %vm1526_vm3, %v3473_v43, 0  ;;  %v4183_v18 = vsel %vm1526_vm3, %v3474_v1, 0 }
0x1015   :  { %5470 = vmatpush3.bf16.msra.mxu0 %v4137_v10  ;;  %5476 = vmatpush3.bf16.msra.mxu1 %v4183_v18  ;;  %v4229_v6 = vsel %vm1526_vm3, %v3475_v38, 0  ;;  %v4275_v19 = vsel %vm1526_vm3, %v3476_v61, 0 }
0x1016   :  { %5481 = vmatprep.subr.bf16.mxu0 %v5734_v15  ;;  %5487 = vmatprep.subr.bf16.mxu1 %v5734_v15  ;;  %v5692_v5 = vpop.eup %5691 }
0x1017   :  { %v3938_v55 = vmul.f32 %v5692_v5, %v6621_v49 }
0x1018   :  { %5472 = vmatmul.mubr.msk.bf16.vlgmr.msra.gmra.mrb[64].mxu0 %vm1050_vm2, %v3945_v22  ;;  %5478 = vmatmul.mubr.msk.bf16.vlgmr.msra.gmra.mrb[68].mxu1 %vm1050_vm2, %v3946_v46 }
0x1019   :  { %5482 = vmatpush3.bf16.msra.mxu0 %v4229_v6  ;;  %5488 = vmatpush3.bf16.msra.mxu1 %v4275_v19  ;;  %v3947_v52 = vpack.c.bf16 %v3938_v55, %v3938_v55 }
0x101a   :  { %5483 = vmatprep.mubr.msk.bf16.mxu0 %vm5735_vm1, %v5734_v15  ;;  %5489 = vmatprep.mubr.msk.bf16.mxu1 %vm5735_vm1, %v5734_v15 }
0x101b   :  { %5493 = vmatprep.subr.bf16.mxu0 %v5734_v15  ;;  %5501 = vmatprep.subr.bf16.mxu1 %v5734_v15 }
0x1020   :  { %5484 = vmatmul.mubr.msk.bf16.vlgmr.msra.gmra.mrb[68].mxu0 %vm1050_vm2, %v3947_v52 }
0x1021   :  { %5497 = vmatprep.mubr.msk.bf16.mxu0 %vm5735_vm1, %v5734_v15 }
0x1030   :  { %v3924_v4 = vpop.xlane.xlu0 %3923 }
0x1031   :  { %5693 = vrcp.f32 %v3924_v4 }
0x1034   :  { %v4621_v59 = vpop.permute.xlu0 %4620 }
0x1035   :  { %5494 = vmatpush3.bf16.msra.mxu0 %v4621_v59 }
0x1036   :  { %5495 = vmatprep.subr.bf16.mxu0 %v5734_v15 }
0x103b   :  { %v5694_v13 = vpop.eup %5693 }
0x103c   :  { %v3940_v49 = vmul.f32 %v5694_v13, %v6629_v41 }
0x103e   :  { %v3948_v48 = vpack.c.bf16 %v3940_v49, %v3940_v49 }
0x1040   :  { %5490 = vmatmul.mubr.msk.bf16.vlgmr.msra.gmra.mrb[72].mxu1 %vm1050_vm2, %v3948_v48 }
0x1041   :  { %5505 = vmatprep.mubr.msk.bf16.mxu1 %vm5735_vm1, %v5734_v15 }
0x10a5   :  { %v3989_v26 = vpop.f32.mrb[56].mxu0 }
0x10a6   :  { %v5449_v47 = vpop.f32.mrb[57].mxu0 }
0x10a7   :  { %v3992_v35 = vpop.f32.mrb[58].mxu0 }
0x10a8   :  { %v5450_v57 = vpop.f32.mrb[59].mxu0 }
0x10ad   :  { %v4035_v31 = vpop.f32.mrb[60].mxu1 }
0x10ae   :  { %v5455_v60 = vpop.f32.mrb[61].mxu1 }
0x10af   :  { %v4038_v17 = vpop.f32.mrb[62].mxu1 }
0x10b0   :  { %v5456_v58 = vpop.f32.mrb[63].mxu1 }
0x10b5   :  { %v4081_v42 = vpop.f32.mrb[60].mxu0  ;;  %v4127_v41 = vpop.f32.mrb[64].mxu1 }
0x10b6   :  { %v4317_v2 = vcombine.low %v3989_v26, %v4081_v42  ;;  %v4318_v39 = vcombine.high %v3989_v26, %v4081_v42  ;;  %v4333_v29 = vcombine.low %v4035_v31, %v4127_v41  ;;  %v4334_v11 = vcombine.high %v4035_v31, %v4127_v41  ;;  %v5461_v16 = vpop.f32.mrb[61].mxu0  ;;  %v5467_v54 = vpop.f32.mrb[65].mxu1 }
0x10b7   :  { %v4084_v62 = vpop.f32.mrb[62].mxu0  ;;  %v4130_v40 = vpop.f32.mrb[66].mxu1 }
0x10b8   :  { %v4325_v14 = vrot.slane %v4317_v2, %v5868_v56  ;;  %v4332_v51 = vrot.slane %v4318_v39, %v5868_v56  ;;  %v4341_v63 = vrot.slane %v4333_v29, %v5868_v56  ;;  %v4348_v12 = vrot.slane %v4334_v11, %v5868_v56  ;;  %v5462_v3 = vpop.f32.mrb[63].mxu0  ;;  %v5468_v36 = vpop.f32.mrb[67].mxu1 }
0x10ba   :  { %v4349_v20 = vcombine.low %v4325_v14, %v4341_v63  ;;  %v4350_v9 = vcombine.high %v4325_v14, %v4341_v63  ;;  %v4365_v34 = vcombine.low %v4332_v51, %v4348_v12  ;;  %v4366_v21 = vcombine.high %v4332_v51, %v4348_v12 }
0x10bc   :  { %v4357_v33 = vrot.slane %v4349_v20, %v5879_v0  ;;  %v4364_v50 = vrot.slane %v4350_v9, %v5879_v0  ;;  %v4373_v28 = vrot.slane %v4365_v34, %v5879_v0  ;;  %v4380_v44 = vrot.slane %v4366_v21, %v5879_v0 }
0x10be   :  { %v4453_v37 = vcombine.low %v4357_v33, %v4364_v50  ;;  %v5127_v43 = vcombine.high %v4357_v33, %v4364_v50  ;;  %v4469_v1 = vcombine.low %v4373_v28, %v4380_v44  ;;  %v5128_v10 = vcombine.high %v4373_v28, %v4380_v44 }
0x10c0   :  { %v4460_v18 = vrot.slane %v4453_v37, %v5868_v56  ;;  %v4468_v38 = vrot.slane %v5127_v43, %v5868_v56  ;;  %v4476_v61 = vrot.slane %v4469_v1, %v5868_v56  ;;  %v4484_v22 = vrot.slane %v5128_v10, %v5868_v56 }
0x10c2   :  { %v4486_v46 = vcombine.high %v4460_v18, %v4468_v38  ;;  %v4502_v5 = vcombine.high %v4476_v61, %v4484_v22  ;;  %v4485_v6 = vcombine.low %v4460_v18, %v4468_v38  ;;  %v4501_v19 = vcombine.low %v4476_v61, %v4484_v22 }
0x10c4   :  { %v6709_v55 = vrot.slane %v4486_v46, %v5879_v0  ;;  %v4516_v52 = vrot.slane %v4502_v5, %v5879_v0  ;;  %v6713_v4 = vrot.slane %v4485_v6, %v5879_v0  ;;  %v6716_v13 = vrot.slane %v4501_v19, %v5879_v0 }
0x10c6   :  { %v4520_v49 = vcombine.high %v6709_v55, %v4516_v52  ;;  %v4517_v48 = vcombine.low %v6713_v4, %v6716_v13  ;;  %v4518_v26 = vcombine.high %v6713_v4, %v6716_v13  ;;  %v4519_v47 = vcombine.low %v6709_v55, %v4516_v52  ;;  %v6763_v4 = vld [vmem:[%s6876_s3 + $0x8] sm:$0xff] }
0x10c7   :  { %v4675_v13 = vrot.slane %v6763_v4, %v2251_v23 }
0x10eb   :  { %v4173_v35 = vpop.f32.mrb[64].mxu0  ;;  %v4219_v57 = vpop.f32.mrb[68].mxu1 }
0x10ec   :  { %v5473_v31 = vpop.f32.mrb[65].mxu0  ;;  %v5479_v60 = vpop.f32.mrb[69].mxu1 }
0x10ed   :  { %v4176_v17 = vpop.f32.mrb[66].mxu0  ;;  %v4222_v58 = vpop.f32.mrb[70].mxu1 }
0x10ee   :  { %v5474_v59 = vpop.f32.mrb[67].mxu0  ;;  %v5480_v42 = vpop.f32.mrb[71].mxu1 }
0x10f3   :  { %v4265_v41 = vpop.f32.mrb[68].mxu0 }
0x10f4   :  { %v4385_v2 = vcombine.low %v4173_v35, %v4265_v41  ;;  %v4386_v39 = vcombine.high %v4173_v35, %v4265_v41  ;;  %v5485_v29 = vpop.f32.mrb[69].mxu0 }
0x10f5   :  { %v4268_v11 = vpop.f32.mrb[70].mxu0 }
0x10f6   :  { %v5486_v16 = vpop.f32.mrb[71].mxu0  ;;  %v4393_v63 = vrot.slane %v4385_v2, %v5868_v56  ;;  %v4400_v12 = vrot.slane %v4386_v39, %v5868_v56 }
0x1113   :  { %v4311_v54 = vpop.f32.mrb[72].mxu1 }
0x1114   :  { %v4401_v62 = vcombine.low %v4219_v57, %v4311_v54  ;;  %v4402_v40 = vcombine.high %v4219_v57, %v4311_v54  ;;  %v5491_v14 = vpop.f32.mrb[73].mxu1 }
0x1115   :  { %v4314_v51 = vpop.f32.mrb[74].mxu1 }
0x1116   :  { %v4409_v3 = vrot.slane %v4401_v62, %v5868_v56  ;;  %v4416_v36 = vrot.slane %v4402_v40, %v5868_v56  ;;  %v5492_v20 = vpop.f32.mrb[75].mxu1 }
0x1118   :  { %v4417_v9 = vcombine.low %v4393_v63, %v4409_v3  ;;  %v4418_v34 = vcombine.high %v4393_v63, %v4409_v3  ;;  %v4433_v21 = vcombine.low %v4400_v12, %v4416_v36  ;;  %v4434_v33 = vcombine.high %v4400_v12, %v4416_v36 }
0x111a   :  { %v4425_v50 = vrot.slane %v4417_v9, %v5879_v0  ;;  %v4432_v28 = vrot.slane %v4418_v34, %v5879_v0  ;;  %v4441_v44 = vrot.slane %v4433_v21, %v5879_v0  ;;  %v4448_v37 = vrot.slane %v4434_v33, %v5879_v0 }
0x111c   :  { %v4521_v43 = vcombine.low %v4425_v50, %v4432_v28  ;;  %v5129_v1 = vcombine.high %v4425_v50, %v4432_v28  ;;  %v4537_v10 = vcombine.low %v4441_v44, %v4448_v37  ;;  %v5130_v18 = vcombine.high %v4441_v44, %v4448_v37 }
0x111e   :  { %v4528_v38 = vrot.slane %v4521_v43, %v5868_v56  ;;  %v4536_v61 = vrot.slane %v5129_v1, %v5868_v56  ;;  %v4544_v22 = vrot.slane %v4537_v10, %v5868_v56  ;;  %v4552_v46 = vrot.slane %v5130_v18, %v5868_v56  ;;  %v5708_v56 = vld [vmem:[%s6874_s1 + $0x30] ss:$8 sps:$4 sm:$0xff]  }
0x1120   :  { %v4554_v5 = vcombine.high %v4528_v38, %v4536_v61  ;;  %v4570_v6 = vcombine.high %v4544_v22, %v4552_v46  ;;  %v4553_v19 = vcombine.low %v4528_v38, %v4536_v61  ;;  %v4569_v55 = vcombine.low %v4544_v22, %v4552_v46  ;;  %v5609_v46 = vld [vmem:[%s6874_s1 + $0x24] ss:$8 sps:$4 sm:$0xff]  }
0x1121   :  { %5502 = vmatpush3.bf16.msra.mxu1 %v5609_v46  ;;  %v5747_v46 = vmov 0.0|0.0  }
0x1122   :  { %v4568_v52 = vrot.slane %v4554_v5, %v5879_v0  ;;  %v4584_v35 = vrot.slane %v4570_v6, %v5879_v0  ;;  %v4561_v57 = vrot.slane %v4553_v19, %v5879_v0  ;;  %v4577_v31 = vrot.slane %v4569_v55, %v5879_v0  ;;  %v5610_v5 = vld [vmem:[%s6874_s1 + $0x34] ss:$8 sps:$4 sm:$0xff]   ;;  %5503 = vmatprep.subr.bf16.mxu1 %v5734_v15  ;;  %v5611_v6 = vld [vmem:[%s6875_s2 + $0x40] sm:$0xff]   ;;  %v5612_v19 = vld [vmem:[%s6875_s2 + $0x48] sm:$0xff]  }
0x1123   :  { %v5613_v55 = vld [vmem:[%s6875_s2 + $0x50] sm:$0xff]  }
0x1124   :  { %v4588_v60 = vcombine.high %v4568_v52, %v4584_v35  ;;  %v4586_v17 = vcombine.high %v4561_v57, %v4577_v31  ;;  %v4585_v58 = vcombine.low %v4561_v57, %v4577_v31  ;;  %v4587_v59 = vcombine.low %v4568_v52, %v4584_v35  ;;  %v5614_v52 = vld [vmem:[%s6875_s2 + $0x58] sm:$0xff]   ;;  %v5615_v35 = vld [vmem:[%s6875_s2 + $0x60] sm:$0xff]   ;;  %v5616_v57 = vld [vmem:[%s6875_s2 + $0x68] sm:$0xff]  }
0x1125   :  { %5504 = vmatpush3.bf16.msra.mxu1 %v5610_v5 }
0x1126   :  { %v5586_v42 = vpack.i.bf16 %v4588_v60, %v4520_v49  ;;  %v5576_v41 = vpack.i.bf16 %v4586_v17, %v4518_v26  ;;  %v5581_v2 = vpack.i.bf16 %v4587_v59, %v4519_v47  ;;  %5540 = vmatprep.subr.bf16.mxu1 %v5747_v46 }
0x1128   :  { %5587 = vrot.lane.b32.xlu0 %v5586_v42, %s5746_s17  ;;  %5577 = vrot.lane.b32.xlu1 %v5576_v41, %s5745_s16 }
0x112c   :  { %5582 = vrot.lane.b32.xlu1 %v5581_v2, %s5744_s15  ;;  %v4707_v2 = vrot.slane %v6763_v4, %v6289_v27 }
0x1130   :  { %4622 = vrot.lane.b32.xlu1 %v5708_v56, %s5743_s14 }
0x119a   :  { %v5578_v0 = vpop.permute.xlu1 %5577  ;;  %v5588_v11 = vpop.permute.xlu0 %5587 }
0x119b   :  { %v5580_v39 = vunpack.i.h.bf16 %v5578_v0  ;;  %v5579_v29 = vunpack.i.l.bf16 %v5578_v0  ;;  %v5590_v47 = vunpack.i.h.bf16 %v5588_v11  ;;  %v5589_v54 = vunpack.i.l.bf16 %v5588_v11 }
0x119c   :  { %v4713_v11 = vrot.slane %v6763_v4, %v2289_v32  ;;  %v5618_v32 = vld [vmem:[%s6875_s2 + $0x78] sm:$0xff]  }
0x119d   :  { %v4613_v62 = vsel %vm1050_vm2, %v4517_v48, %v5579_v29  ;;  %v4614_v40 = vsel %vm1050_vm2, %v4585_v58, %v5580_v39 }
0x119e   :  { %v5583_v16 = vpop.permute.xlu1 %5582 }
0x119f   :  { %v5585_v49 = vunpack.i.h.bf16 %v5583_v16  ;;  %v5584_v26 = vunpack.i.l.bf16 %v5583_v16 }
0x11a1   :  { %v4615_v14 = vsel %vm2190_vm4, %v4613_v62, %v5584_v26  ;;  %v4616_v51 = vsel %vm2190_vm4, %v4614_v40, %v5585_v49  ;;  %v4720_v62 = vrot.slane %v6763_v4, %v2296_v45 }
0x11a2   :  { %v4617_v63 = vsel %vm2193_vm5, %v4615_v14, %v5589_v54  ;;  %v4618_v12 = vsel %vm2193_vm5, %v4616_v51, %v5590_v47  ;;  %v4623_v3 = vpop.permute.xlu1 %4622  ;;  %v5617_v54 = vld [vmem:[%s6875_s2 + $0x70] sm:$0xff]  }
0x11a3   :  { %v4619_v36 = vpack.c.bf16 %v4618_v12, %v4617_v63  ;;  %5496 = vmatpush3.bf16.msra.mxu0 %v4623_v3 }
0x11a4   :  { %5509 = vmatprep.subr.bf16.mxu0 %v5734_v15 }
0x11a6   :  { %5498 = vmatmul.mubr.msk.bf16.vlgmr.msra.gmra.mrb[72].mxu0 %vm45_vm0, %v4619_v36 }
0x11a7   :  { %5525 = vmatprep.mubr.msk.bf16.mxu0 %vm5735_vm1, %v5734_v15  ;;  %5510 = vmatpush3.bf16.msra.mxu0 %v5611_v6  ;;  %v4877_v6 = vld [vmem:[%s6877_s4 + $0x20] sm:$0xff] }
0x11a8   :  { %5511 = vmatprep.subr.bf16.mxu0 %v5734_v15 }
0x11ab   :  { %5512 = vmatpush3.bf16.msra.mxu0 %v5612_v19 }
0x11ac   :  { %5513 = vmatprep.subr.bf16.mxu0 %v5734_v15 }
0x11af   :  { %5514 = vmatpush3.bf16.msra.mxu0 %v5613_v55 }
0x11b0   :  { %5515 = vmatprep.subr.bf16.mxu0 %v5734_v15 }
0x11b3   :  { %5516 = vmatpush3.bf16.msra.mxu0 %v5614_v52 }
0x11b4   :  { %5517 = vmatprep.subr.bf16.mxu0 %v5734_v15 }
0x11b7   :  { %5518 = vmatpush3.bf16.msra.mxu0 %v5615_v35 }
0x11b8   :  { %5519 = vmatprep.subr.bf16.mxu0 %v5734_v15 }
0x11bb   :  { %5520 = vmatpush3.bf16.msra.mxu0 %v5616_v57 }
0x11bc   :  { %5521 = vmatprep.subr.bf16.mxu0 %v5734_v15 }
0x11bf   :  { %5522 = vmatpush3.bf16.msra.mxu0 %v5617_v54 }
0x11c0   :  { %5523 = vmatprep.subr.bf16.mxu0 %v5734_v15 }
0x11c3   :  { %5524 = vmatpush3.bf16.msra.mxu0 %v5618_v32 }
0x1279   :  { %v4663_v48 = vpop.f32.mrb[72].mxu0 }
0x127a   :  { %v4670_v20 = vadd.f32 %v4663_v48, %v6319_v7  ;;  %v5499_v9 = vpop.f32.mrb[73].mxu0 }
0x127b   :  { %v4666_v34 = vpop.f32.mrb[74].mxu0 }
0x127c   :  { %v6769_v21 = vadd.f32 %v4675_v13, %v4670_v20  ;;  %v4671_v33 = vadd.f32 %v4666_v34, %v6322_v8  ;;  %v5500_v50 = vpop.f32.mrb[75].mxu0 }
0x127e   :  { %v6772_v28 = vadd.f32 %v4675_v13, %v4671_v33  ;;  %v4678_v44 = vsel %vm45_vm0, %v6769_v21, 0.0 }
0x127f   :  { %4679 = vadd.xlane.f32.xlu0 %v4678_v44 }
0x1280   :  { %v4681_v37 = vsel %vm45_vm0, %v6772_v28, 0.0 }
0x1281   :  { %4682 = vadd.xlane.f32.xlu1 %v4681_v37 }
0x130c   :  { %v4680_v23 = vpop.xlane.xlu0 %4679 }
0x130d   :  { %v4684_v43 = vmul.f32 0.03125, %v4680_v23 }
0x130e   :  { %v4683_v7 = vpop.xlane.xlu1 %4682 }
0x130f   :  { %v4686_v1 = vsub.f32 %v6769_v21, %v4684_v43  ;;  %v4685_v10 = vmul.f32 0.03125, %v4683_v7 }
0x1311   :  { %v4687_v18 = vsub.f32 %v6772_v28, %v4685_v10  ;;  %v4688_v8 = vmul.f32 %v4686_v1, %v4686_v1 }
0x1313   :  { %v4690_v38 = vsel %vm45_vm0, %v4688_v8, 0.0  ;;  %v4689_v61 = vmul.f32 %v4687_v18, %v4687_v18 }
0x1314   :  { %4691 = vadd.xlane.f32.xlu0 %v4690_v38  ;;  %v4874_v38 = vld [vmem:[%s6877_s4 + $0x8] sm:$0xff] }
0x1315   :  { %v4693_v22 = vsel %vm45_vm0, %v4689_v61, 0.0  ;;  %v4875_v61 = vld [vmem:[%s6877_s4 + $0x10] sm:$0xff] }
0x1316   :  { %v5541_v5 = vpack.c.bf16 %v4875_v61, %v4874_v38 }
0x1318   :  { %4694 = vadd.xlane.f32.xlu0 %v4693_v22  ;;  %v4876_v22 = vld [vmem:[%s6877_s4 + $0x18] sm:$0xff] }
0x1319   :  { %v5544_v19 = vpack.c.bf16 %v4877_v6, %v4876_v22 }
0x13a1   :  { %v4692_v31 = vpop.xlane.xlu0 %4691 }
0x13a2   :  { %v4696_v60 = vmul.f32 0.03125, %v4692_v31 }
0x13a4   :  { %v4698_v17 = vadd.f32 1e-05, %v4696_v60 }
0x13a5   :  { %v4695_v58 = vpop.xlane.xlu0 %4694 }
0x13a6   :  { %5695 = vrsqrt.f32 %v4698_v17  ;;  %v4697_v59 = vmul.f32 0.03125, %v4695_v58  ;;  %v4873_v17 = vld [vmem:[%s6877_s4] sm:$0xff]  ;;  %s5748_s4 = smov [#allocation2]  }
0x13a7   :  { %v4907_v58 = vrot.slane %v4873_v17, %v5806_v25  ;;  %s5020_s7 = sshll.u32 %s5748_s4, 4  ;;  %s5021_s7 = int_to_ptr.vmem [resolvable:$true] %s5020_s7 }
0x13a8   :  { %v4699_v42 = vadd.f32 1e-05, %v4697_v59  ;;  %s5710_s14 = scalar_lea.vmem %s5021_s7, 32  ;;  %p5715_p1 = scmp.lt.s32.totalorder %s5021_s7, %s5021_s7 }
0x13a9   :  { %p5711_p0 = scmp.ne.s32.totalorder %s5021_s7, %s5710_s14  ;;  %p5716_p2 = scmp.lt.s32.totalorder %s5710_s14, %s5710_s14 }
0x13aa   :  { %5697 = vrsqrt.f32 %v4699_v42  ;;  %v4913_v42 = vrot.slane %v4873_v17, %v5813_v30 }
0x13ab   :  { %p5717_p3 = por %p5716_p2, %p5715_p1 }
0x13ad   :  { %p5718_p4 = pnand %p5717_p3, %p5711_p0 }
0x13b0   :  { %v5696_v41 = vpop.eup %5695 }
0x13b1   :  { %v4702_v56 = vmul.f32 %v5696_v41, %v4686_v1 }
0x13b3   :  { %v4708_v39 = vmul.f32 %v4707_v2, %v4702_v56 }
0x13b4   :  { %v5698_v0 = vpop.eup %5697 }
0x13b5   :  { %v4703_v29 = vmul.f32 %v5698_v0, %v4687_v18  ;;  %v4714_v49 = vadd.f32 %v4713_v11, %v4708_v39 }
0x13b7   :  { %v4709_v16 = vmul.f32 %v4707_v2, %v4703_v29 }
0x13b9   :  { %v4715_v26 = vadd.f32 %v4713_v11, %v4709_v16 }
0x13bb   :  { %v4716_v47 = vpack.c.bf16 %v4715_v26, %v4714_v49 }
0x13bd   :  { %5506 = vmatmul.mubr.msk.bf16.vlgmr.msra.gmra.mrb[76].mxu1 %vm45_vm0, %v4716_v47 }
0x13be   :  { %5537 = vmatprep.mubr.msk.f32.mxu1 %vm5735_vm1, %v5734_v15  ;;  %v4870_v15 = vrot.slane %v6763_v4, %v2446_v53  ;;  %5542 = vmatpush3.bf16.msra.mxu1 %v5541_v5 }
0x13bf   :  { %5543 = vmatprep.subr.bf16.mxu1 %v5747_v46 }
0x13c2   :  { %5545 = vmatpush3.bf16.msra.mxu1 %v5544_v19 }
0x1490   :  { %v4766_v40 = vpop.f32.mrb[76].mxu1 }
0x1491   :  { %v4767_v14 = vadd.f32 %v4766_v40, %v4720_v62  ;;  %v5507_v51 = vpop.f32.mrb[77].mxu1 }
0x1492   :  { %v4769_v63 = vpop.f32.mrb[78].mxu1 }
0x1493   :  { %v4770_v12 = vadd.f32 %v4769_v63, %v4720_v62  ;;  %v5508_v3 = vpop.f32.mrb[79].mxu1  ;;  %v4773_v36 = vmax.f32 %v4767_v14, 0.0 }
0x1495   :  { %v4774_v13 = vmax.f32 %v4770_v12, 0.0 }
0x1497   :  { %v4775_v48 = vpack.c.bf16 %v4774_v13, %v4773_v36 }
0x1499   :  { %5526 = vmatmul.mubr.bf16.vlgmr.msra.gmra.mrb[76].mxu0 %v4775_v48  ;;  %v4936_v48 = vrot.slane %v4873_v17, %v6289_v27 }
0x156c   :  { %v4858_v20 = vpop.f32.mrb[76].mxu0 }
0x156d   :  { %v4865_v9 = vadd.f32 %v4858_v20, %v6769_v21  ;;  %v5527_v34 = vpop.f32.mrb[77].mxu0 }
0x156e   :  { %v4861_v33 = vpop.f32.mrb[78].mxu0 }
0x156f   :  { %v4871_v45 = vadd.f32 %v4870_v15, %v4865_v9  ;;  %v4866_v50 = vadd.f32 %v4861_v33, %v6772_v28  ;;  %v5528_v44 = vpop.f32.mrb[79].mxu0 }
0x1571   :  { %v4872_v37 = vadd.f32 %v4870_v15, %v4866_v50  ;;  %v4878_v23 = vsel %vm45_vm0, %v4871_v45, 0.0 }
0x1572   :  { %4879 = vadd.xlane.f32.xlu0 %v4878_v23 }
0x1573   :  { %v4881_v43 = vsel %vm45_vm0, %v4872_v37, 0.0 }
0x1574   :  { %4882 = vadd.xlane.f32.xlu1 %v4881_v43 }
0x15ff   :  { %v4880_v7 = vpop.xlane.xlu0 %4879 }
0x1600   :  { %v4884_v24 = vmul.f32 0.03125, %v4880_v7 }
0x1601   :  { %v4883_v1 = vpop.xlane.xlu1 %4882 }
0x1602   :  { %v4886_v53 = vsub.f32 %v4871_v45, %v4884_v24  ;;  %v4885_v4 = vmul.f32 0.03125, %v4883_v1 }
0x1604   :  { %v4887_v10 = vsub.f32 %v4872_v37, %v4885_v4  ;;  %v4888_v21 = vmul.f32 %v4886_v53, %v4886_v53 }
0x1606   :  { %v4890_v18 = vsel %vm45_vm0, %v4888_v21, 0.0  ;;  %v4889_v8 = vmul.f32 %v4887_v10, %v4887_v10 }
0x1607   :  { %4891 = vadd.xlane.f32.xlu0 %v4890_v18 }
0x1608   :  { %v4893_v28 = vsel %vm45_vm0, %v4889_v8, 0.0 }
0x1609   :  { %4894 = vadd.xlane.f32.xlu1 %v4893_v28 }
0x1694   :  { %v4892_v55 = vpop.xlane.xlu0 %4891 }
0x1695   :  { %v4896_v52 = vmul.f32 0.03125, %v4892_v55 }
0x1696   :  { %v4895_v35 = vpop.xlane.xlu1 %4894 }
0x1697   :  { %v4898_v57 = vadd.f32 1e-05, %v4896_v52  ;;  %v4897_v31 = vmul.f32 0.03125, %v4895_v35 }
0x1699   :  { %5699 = vrsqrt.f32 %v4898_v57  ;;  %v4899_v60 = vadd.f32 1e-05, %v4897_v31 }
0x169b   :  { %5701 = vrsqrt.f32 %v4899_v60 }
0x16a3   :  { %v5700_v59 = vpop.eup %5699 }
0x16a4   :  { %v4902_v41 = vmul.f32 %v5700_v59, %v4886_v53 }
0x16a5   :  { %v5702_v2 = vpop.eup %5701 }
0x16a6   :  { %v4908_v56 = vmul.f32 %v4907_v58, %v4902_v41  ;;  %v4903_v0 = vmul.f32 %v5702_v2, %v4887_v10 }
0x16a8   :  { %v4914_v39 = vadd.f32 %v4913_v42, %v4908_v56  ;;  %v4909_v29 = vmul.f32 %v4907_v58, %v4903_v0 }
0x16aa   :  { %v4915_v11 = vadd.f32 %v4913_v42, %v4909_v29  ;;  %v4916_v16 = vsel %vm45_vm0, %v4914_v39, 0.0 }
0x16ab   :  { %v4917_v49 = vrot.slane %v4916_v16, 4 }
0x16ac   :  { %v4923_v26 = vsel %vm45_vm0, %v4915_v11, 0.0 }
0x16ad   :  { %v4918_v47 = vadd.f32 %v4917_v49, %v4916_v16  ;;  %v4924_v54 = vrot.slane %v4923_v26, 4 }
0x16af   :  { %v4919_v32 = vrot.slane %v4918_v47, 2  ;;  %v4925_v62 = vadd.f32 %v4924_v54, %v4923_v26 }
0x16b1   :  { %v4920_v25 = vadd.f32 %v4919_v32, %v4918_v47  ;;  %v4926_v40 = vrot.slane %v4925_v62, 2 }
0x16b3   :  { %v4921_v14 = vrot.slane %v4920_v25, 1  ;;  %v4927_v30 = vadd.f32 %v4926_v40, %v4925_v62 }
0x16b5   :  { %v4922_v51 = vadd.f32 %v4921_v14, %v4920_v25  ;;  %v4928_v63 = vrot.slane %v4927_v30, 1 }
0x16b7   :  { %v4929_v12 = vadd.f32 %v4928_v63, %v4927_v30  ;;  %v4931_v3 = vmul.f32 0.125, %v4922_v51 }
0x16b9   :  { %v4932_v36 = vmul.f32 0.125, %v4929_v12 }
0x16bb   :  { %v4940_v13 = vsel %vm4939_vm6, %v4932_v36, %v4931_v3 }
0x16bc   :  { %5538 = vmatmul.mubr.msk.f32.vlgmr.msra.gmra.mrb[80].mxu1 %vm45_vm0, %v4940_v13 }
0x178f   :  { %v5009_v15 = vpop.f32.mrb[80].mxu1 }
0x1790   :  { %v5010_v20 = vadd.f32 %v5009_v15, %v4936_v48  ;;  %v5539_v9 = vpop.f32.mrb[81].mxu1 }
0x1792   :  { %5013 = vst [vmem:[#allocation2] sm:$0x3] %v5010_v20 }
0x1793   :  { %5721 = shalt.err (!%p5718_p4)
}
0x1794   :  { %s5722_s17 = scalar_lea.hbm %s6878_s5, 32 }
0x1795   :  { %p5723_p5 = scmp.ne.s32.totalorder %s6878_s5, %s5722_s17  ;;  %p5726_p6 = scmp.lt.u32.totalorder %s5722_s17, %s6878_s5 }
0x1797   :  { %p5728_p7 = pnand %p5726_p6, %p5723_p5 }
0x1799   :  { %5731 = shalt.err (!%p5728_p7)
}
0x179a   :  { %5023 = dma.vmem_to_hbm [thread:$0]  %s5021_s7, 32, %s6878_s5, [#allocation3]  }
0x179b   :  { %5732 = dma.done.wait [#allocation3], 32  }
0x179c   :  { %5733 = vsyncadd [#allocation3], 4294967264 }
0x179d   :  { %5027 = vsyncpa [#allocation3], 1 }

</bundles_post_ra>
